<compile_context>
chip_gen: v7x
topology: tpu7x:2x2x1
jax: 0.10.0
libtpu: 0.0.40
codegen_flags: <defaults>
</compile_context>

<pallas_src>
import jax
import jax.numpy as jnp
from jax.experimental import pallas as pl
from jax.experimental.pallas import tpu as pltpu

# ---- synthetic "config" (standard NeuS volume-color setup) -------------------
INPUT_FEATURE_DIM = 16      # config.input_feature_dim
N_NEURONS = 64              # mlp_network_config.n_neurons
N_OUTPUT_DIMS = 3           # RGB

FOLD = 4                    # rows folded into the lane axis (4 on v6e/v7x; 2 on v5e)
TILE_ROWS = 4096            # original rows per grid step
TILE_P = TILE_ROWS // FOLD  # packed rows per grid step


def _mlp_color_kernel(x_ref, w1_ref, b1_ref, w2_ref, b2_ref, w3_ref, b3_ref,
                      o_ref):
    """One packed row-tile through the block-diagonal MLP.

    x_ref: (TILE_P, F*FOLD), weights block-diagonal, o_ref: (TILE_P, 3*FOLD).
    """
    x = x_ref[...].astype(jnp.float32)
    h = jnp.dot(x, w1_ref[...], preferred_element_type=jnp.float32)
    h = jnp.maximum(h + b1_ref[...], 0.0)                      # (TP, H*FOLD)
    h = jnp.dot(h, w2_ref[...], preferred_element_type=jnp.float32)
    h = jnp.maximum(h + b2_ref[...], 0.0)                      # (TP, H*FOLD)
    y = jnp.dot(h, w3_ref[...], preferred_element_type=jnp.float32)
    y = y + b3_ref[...]                                        # (TP, 3*FOLD)
    o_ref[...] = jax.nn.sigmoid(y)


def _block_diag(w, f):
    """(K, N) -> (K*f, N*f) with f copies of w on the diagonal."""
    k, n = w.shape
    eye = jnp.eye(f, dtype=w.dtype)
    return (eye[:, None, :, None] * w[None, :, None, :]).reshape(k * f, n * f)


@jax.jit
def volume_color_forward(features, params):
    """features: (..., F) float -> colors: (..., 3) float32."""
    w1, b1, w2, b2, w3, b3 = params
    feat_dim = features.shape[-1]
    lead_shape = features.shape[:-1]

    # view(-1, F); keep native dtype (cast happens inside the kernel).
    x = features.reshape(-1, feat_dim)
    n = x.shape[0]
    n_pad = pl.cdiv(n, FOLD) * FOLD
    if n_pad != n:
        x = jnp.pad(x, ((0, n_pad - n), (0, 0)))
    # Free row-major repack: packed row r holds original rows r*FOLD .. r*FOLD+FOLD-1.
    xp = x.reshape(n_pad // FOLD, feat_dim * FOLD)

    # Block-diagonal packed weights / tiled biases (f32, MXU + VPU in f32).
    w1b = _block_diag(w1.astype(jnp.float32), FOLD)              # (F*f, H*f)
    w2b = _block_diag(w2.astype(jnp.float32), FOLD)              # (H*f, H*f)
    w3b = _block_diag(w3.astype(jnp.float32), FOLD)              # (H*f, 3*f)
    b1b = jnp.tile(b1.astype(jnp.float32).reshape(1, -1), (1, FOLD))
    b2b = jnp.tile(b2.astype(jnp.float32).reshape(1, -1), (1, FOLD))
    b3b = jnp.tile(b3.astype(jnp.float32).reshape(1, -1), (1, FOLD))

    rows_p = n_pad // FOLD
    grid = (pl.cdiv(rows_p, TILE_P),)

    # Weights/biases: full-array blocks, constant index_map (fetched once).
    full = lambda arr: pl.BlockSpec(arr.shape, lambda i: (0, 0))

    out = pl.pallas_call(
        _mlp_color_kernel,
        out_shape=jax.ShapeDtypeStruct((rows_p, N_OUTPUT_DIMS * FOLD),
                                       jnp.float32),
        grid_spec=pltpu.PrefetchScalarGridSpec(
            num_scalar_prefetch=0,
            grid=grid,
            in_specs=[
                pl.BlockSpec((TILE_P, feat_dim * FOLD), lambda i: (i, 0)),
                full(w1b), full(b1b),
                full(w2b), full(b2b),
                full(w3b), full(b3b),
            ],
            out_specs=pl.BlockSpec((TILE_P, N_OUTPUT_DIMS * FOLD),
                                   lambda i: (i, 0)),
        ),
        compiler_params=pltpu.CompilerParams(
            dimension_semantics=("parallel",)),
    )(xp, w1b, b1b, w2b, b2b, w3b, b3b)

    # (rows_p, 3*FOLD) -> (n_pad, 3) is a free row-major reshape; slice pads off.
    colors = out.reshape(n_pad, N_OUTPUT_DIMS)[:n]
    return colors.reshape(*lead_shape, N_OUTPUT_DIMS)


def init_params(key):
    """Deterministic init of the VanillaMLP weights (shapes from __init__)."""
    ks = jax.random.split(key, 6)
    scale1 = 1.0 / jnp.sqrt(INPUT_FEATURE_DIM)
    scale2 = 1.0 / jnp.sqrt(N_NEURONS)
    w1 = jax.random.uniform(ks[0], (INPUT_FEATURE_DIM, N_NEURONS),
                            jnp.float32, -scale1, scale1)
    b1 = jax.random.uniform(ks[1], (1, N_NEURONS), jnp.float32, -scale1, scale1)
    w2 = jax.random.uniform(ks[2], (N_NEURONS, N_NEURONS),
                            jnp.float32, -scale2, scale2)
    b2 = jax.random.uniform(ks[3], (1, N_NEURONS), jnp.float32, -scale2, scale2)
    w3 = jax.random.uniform(ks[4], (N_NEURONS, N_OUTPUT_DIMS),
                            jnp.float32, -scale2, scale2)
    b3 = jax.random.uniform(ks[5], (1, N_OUTPUT_DIMS), jnp.float32,
                            -scale2, scale2)
    return (w1, b1, w2, b2, w3, b3)


def _reference(features, params):
    """Pure-JAX f32 reference of the same forward pass."""
    w1, b1, w2, b2, w3, b3 = params
    x = features.reshape(-1, features.shape[-1]).astype(jnp.float32)
    h = jnp.maximum(x @ w1 + b1, 0.0)
    h = jnp.maximum(h @ w2 + b2, 0.0)
    y = jax.nn.sigmoid(h @ w3 + b3)
    return y.reshape(*features.shape[:-1], N_OUTPUT_DIMS)


if __name__ == "__main__":
    key = jax.random.PRNGKey(0)
    k_feat, k_feat2, k_params = jax.random.split(key, 3)
    params = init_params(k_params)

    # Case 1: small (n_rays=2, n_samples=96, F=16) -> 192 rows, one partial tile.
    features = jax.random.normal(k_feat, (2, 96, INPUT_FEATURE_DIM),
                                 dtype=jnp.float32)
    color = volume_color_forward(features, params)
    jax.block_until_ready(color)
    ref = _reference(features, params)
    assert color.shape == (2, 96, N_OUTPUT_DIMS)
    assert color.dtype == jnp.float32
    assert jnp.max(jnp.abs(color - ref)) < 1e-4

    # Case 2: exercises a full packed tile + partial tail tile (5000 rows).
    features2 = jax.random.normal(k_feat2, (5, 1000, INPUT_FEATURE_DIM),
                                  dtype=jnp.float32)
    color2 = volume_color_forward(features2, params)
    jax.block_until_ready(color2)
    ref2 = _reference(features2, params)
    assert color2.shape == (5, 1000, N_OUTPUT_DIMS)
    assert jnp.max(jnp.abs(color2 - ref2)) < 1e-4

    print("KERNEL_OK")
</pallas_src>

<mosaic_0001>
module attributes {stable_mosaic.version = 11 : i64} {
  func.func @_mlp_color_kernel(%arg0: i32, %arg1: memref<1024x64xf32, #tpu.memory_space<vmem>>, %arg2: memref<64x256xf32, #tpu.memory_space<vmem>>, %arg3: memref<1x256xf32, #tpu.memory_space<vmem>>, %arg4: memref<256x256xf32, #tpu.memory_space<vmem>>, %arg5: memref<1x256xf32, #tpu.memory_space<vmem>>, %arg6: memref<256x12xf32, #tpu.memory_space<vmem>>, %arg7: memref<1x12xf32, #tpu.memory_space<vmem>>, %arg8: memref<1024x12xf32, #tpu.memory_space<vmem>>) attributes {dimension_semantics = [#tpu.dimension_semantics<parallel>], iteration_bounds = array<i64: 1>, scalar_prefetch = 0 : i64, scratch_operands = 0 : i64, tpu.core_type = #tpu.core_type<tc>, window_params = [{transform_indices = @transform_0, window_bounds = array<i64: 1024, 64>}, {pipeline_mode = #tpu.pipeline_mode<synchronous>, transform_indices = @transform_1, window_bounds = array<i64: 64, 256>}, {pipeline_mode = #tpu.pipeline_mode<synchronous>, transform_indices = @transform_2, window_bounds = array<i64: 1, 256>}, {pipeline_mode = #tpu.pipeline_mode<synchronous>, transform_indices = @transform_3, window_bounds = array<i64: 256, 256>}, {pipeline_mode = #tpu.pipeline_mode<synchronous>, transform_indices = @transform_4, window_bounds = array<i64: 1, 256>}, {pipeline_mode = #tpu.pipeline_mode<synchronous>, transform_indices = @transform_5, window_bounds = array<i64: 256, 12>}, {pipeline_mode = #tpu.pipeline_mode<synchronous>, transform_indices = @transform_6, window_bounds = array<i64: 1, 12>}, {transform_indices = @transform_7, window_bounds = array<i64: 1024, 12>}]} {
    %c0 = arith.constant 0 : index
    %c0_0 = arith.constant 0 : index
    %0 = vector.load %arg1[%c0, %c0_0] : memref<1024x64xf32, #tpu.memory_space<vmem>>, vector<1024x64xf32>
    %c0_1 = arith.constant 0 : index
    %c0_2 = arith.constant 0 : index
    %1 = vector.load %arg2[%c0_1, %c0_2] : memref<64x256xf32, #tpu.memory_space<vmem>>, vector<64x256xf32>
    %cst = arith.constant dense<0.000000e+00> : vector<1024x256xf32>
    %2 = tpu.matmul %0, %1, %cst {dimension_numbers = #tpu.dot_dimension_numbers<[1], [0], [0], [1], [0, 0, 1, 1], [], []>} : vector<1024x64xf32>, vector<64x256xf32>, vector<1024x256xf32> -> vector<1024x256xf32>
    %c0_3 = arith.constant 0 : index
    %c0_4 = arith.constant 0 : index
    %3 = vector.load %arg3[%c0_3, %c0_4] : memref<1x256xf32, #tpu.memory_space<vmem>>, vector<1x256xf32>
    %4 = vector.broadcast %3 : vector<1x256xf32> to vector<1024x256xf32>
    %5 = arith.addf %2, %4 : vector<1024x256xf32>
    %cst_5 = arith.constant 0.000000e+00 : f32
    %6 = vector.broadcast %cst_5 : f32 to vector<1024x256xf32>
    %7 = arith.maximumf %5, %6 : vector<1024x256xf32>
    %c0_6 = arith.constant 0 : index
    %c0_7 = arith.constant 0 : index
    %8 = vector.load %arg4[%c0_6, %c0_7] : memref<256x256xf32, #tpu.memory_space<vmem>>, vector<256x256xf32>
    %cst_8 = arith.constant dense<0.000000e+00> : vector<1024x256xf32>
    %9 = tpu.matmul %7, %8, %cst_8 {dimension_numbers = #tpu.dot_dimension_numbers<[1], [0], [0], [1], [0, 0, 1, 1], [], []>} : vector<1024x256xf32>, vector<256x256xf32>, vector<1024x256xf32> -> vector<1024x256xf32>
    %c0_9 = arith.constant 0 : index
    %c0_10 = arith.constant 0 : index
    %10 = vector.load %arg5[%c0_9, %c0_10] : memref<1x256xf32, #tpu.memory_space<vmem>>, vector<1x256xf32>
    %11 = vector.broadcast %10 : vector<1x256xf32> to vector<1024x256xf32>
    %12 = arith.addf %9, %11 : vector<1024x256xf32>
    %cst_11 = arith.constant 0.000000e+00 : f32
    %13 = vector.broadcast %cst_11 : f32 to vector<1024x256xf32>
    %14 = arith.maximumf %12, %13 : vector<1024x256xf32>
    %c0_12 = arith.constant 0 : index
    %c0_13 = arith.constant 0 : index
    %15 = vector.load %arg6[%c0_12, %c0_13] : memref<256x12xf32, #tpu.memory_space<vmem>>, vector<256x12xf32>
    %cst_14 = arith.constant dense<0.000000e+00> : vector<1024x12xf32>
    %16 = tpu.matmul %14, %15, %cst_14 {dimension_numbers = #tpu.dot_dimension_numbers<[1], [0], [0], [1], [0, 0, 1, 1], [], []>} : vector<1024x256xf32>, vector<256x12xf32>, vector<1024x12xf32> -> vector<1024x12xf32>
    %c0_15 = arith.constant 0 : index
    %c0_16 = arith.constant 0 : index
    %17 = vector.load %arg7[%c0_15, %c0_16] : memref<1x12xf32, #tpu.memory_space<vmem>>, vector<1x12xf32>
    %18 = vector.broadcast %17 : vector<1x12xf32> to vector<1024x12xf32>
    %19 = arith.addf %16, %18 : vector<1024x12xf32>
    %20 = arith.negf %19 : vector<1024x12xf32>
    %21 = math.exp %20 : vector<1024x12xf32>
    %cst_17 = arith.constant 1.000000e+00 : f32
    %22 = vector.broadcast %cst_17 : f32 to vector<1024x12xf32>
    %23 = arith.addf %22, %21 : vector<1024x12xf32>
    %24 = arith.divf %22, %23 : vector<1024x12xf32>
    %c0_18 = arith.constant 0 : index
    %c0_19 = arith.constant 0 : index
    %25 = vector.load %arg8[%c0_18, %c0_19] : memref<1024x12xf32, #tpu.memory_space<vmem>>, vector<1024x12xf32>
    tpu.vector_store %arg8[%c0_18, %c0_19], %24 {strides = array<i32>} : memref<1024x12xf32, #tpu.memory_space<vmem>>, vector<1024x12xf32>,
    return
  }
  func.func @transform_0(%arg0: i32) -> (i32, i32) {
    %c0_i32 = arith.constant 0 : i32
    %c0_i32_0 = arith.constant 0 : i32
    return %arg0, %c0_i32 : i32, i32
  }
  func.func @transform_1(%arg0: i32) -> (i32, i32) {
    %c0_i32 = arith.constant 0 : i32
    %c0_i32_0 = arith.constant 0 : i32
    %c0_i32_1 = arith.constant 0 : i32
    return %c0_i32, %c0_i32_0 : i32, i32
  }
  func.func @transform_2(%arg0: i32) -> (i32, i32) {
    %c0_i32 = arith.constant 0 : i32
    %c0_i32_0 = arith.constant 0 : i32
    %c0_i32_1 = arith.constant 0 : i32
    return %c0_i32, %c0_i32_0 : i32, i32
  }
  func.func @transform_3(%arg0: i32) -> (i32, i32) {
    %c0_i32 = arith.constant 0 : i32
    %c0_i32_0 = arith.constant 0 : i32
    %c0_i32_1 = arith.constant 0 : i32
    return %c0_i32, %c0_i32_0 : i32, i32
  }
  func.func @transform_4(%arg0: i32) -> (i32, i32) {
    %c0_i32 = arith.constant 0 : i32
    %c0_i32_0 = arith.constant 0 : i32
    %c0_i32_1 = arith.constant 0 : i32
    return %c0_i32, %c0_i32_0 : i32, i32
  }
  func.func @transform_5(%arg0: i32) -> (i32, i32) {
    %c0_i32 = arith.constant 0 : i32
    %c0_i32_0 = arith.constant 0 : i32
    %c0_i32_1 = arith.constant 0 : i32
    return %c0_i32, %c0_i32_0 : i32, i32
  }
  func.func @transform_6(%arg0: i32) -> (i32, i32) {
    %c0_i32 = arith.constant 0 : i32
    %c0_i32_0 = arith.constant 0 : i32
    %c0_i32_1 = arith.constant 0 : i32
    return %c0_i32, %c0_i32_0 : i32, i32
  }
  func.func @transform_7(%arg0: i32) -> (i32, i32) {
    %c0_i32 = arith.constant 0 : i32
    %c0_i32_0 = arith.constant 0 : i32
    return %arg0, %c0_i32 : i32, i32
  }
}

</mosaic_0001>

<bundles_post_ra>
// kernel: volume_color_forward.1
= control target key start
LH: loop header
LB: loop body
LE: loop exit
PB: predicated region body
PF: predicated region fallthrough
CT: control target
= control target key end

     0   :  { %v5432_v7 = vmov 0.0   ;;  %vm182_vm0 = vcmask 523264   ;;  %vm4333_vm1 = vcmask 97280   ;;  %s7944_s0 = inlined_call_operand.vmem [shape: f32[48,64], index: 0, kind: input, shape index: {}]   ;;  %s7945_s1 = inlined_call_operand.vmem [shape: f32[64,256], index: 1, kind: input, shape index: {}]   ;;  %s7946_s2 = inlined_call_operand.vmem [shape: f32[1,256], index: 2, kind: input, shape index: {}]   ;;  %s7947_s3 = inlined_call_operand.vmem [shape: f32[256,256], index: 3, kind: input, shape index: {}]   ;;  %s7948_s4 = inlined_call_operand.vmem [shape: f32[1,256], index: 4, kind: input, shape index: {}]   ;;  %s7949_s5 = inlined_call_operand.vmem [shape: f32[256,12], index: 5, kind: input, shape index: {}]   ;;  %s7950_s6 = inlined_call_operand.vmem [shape: f32[1,12], index: 6, kind: input, shape index: {}]   ;;  %s7951_s7 = inlined_call_operand.vmem [shape: f32[48,12], index: 7, kind: output, shape index: {}]  }
   0x1   :  { %v155_v0 = vld [vmem:[%s7945_s1 + $0x8] sm:$0xff]  ;;  %v157_v1 = vld [vmem:[%s7945_s1 + $0x18] sm:$0xff]  ;;  %v154_v2 = vld [vmem:[%s7945_s1] sm:$0xff]  ;;  %1015 = vmatprep.mubr.f32.mxu1 %v5432_v7  ;;  %631 = vmatprep.mubr.f32.mxu0 %v5432_v7 }
   0x2   :  { %v4779_v3 = vpack.c.bf16 %v157_v1, %v155_v0  ;;  %v156_v4 = vld [vmem:[%s7945_s1 + $0x10] sm:$0xff]  ;;  %v159_v5 = vld [vmem:[%s7945_s1 + $0x28] sm:$0xff]  ;;  %v161_v6 = vld [vmem:[%s7945_s1 + $0x38] sm:$0xff] }
   0x3   :  { %v4781_v8 = vpack.c.bf16 %v156_v4, %v154_v2  ;;  %v4783_v9 = vpack.c.bf16 %v161_v6, %v159_v5  ;;  %v158_v10 = vld [vmem:[%s7945_s1 + $0x20] sm:$0xff]  ;;  %v160_v11 = vld [vmem:[%s7945_s1 + $0x30] sm:$0xff]  ;;  %v163_v12 = vld [vmem:[%s7945_s1 + $0x48] sm:$0xff] }
   0x4   :  { %4907 = vmatprep.subr.bf16.mxu1 %v4779_v3  ;;  %v165_v13 = vld [vmem:[%s7945_s1 + $0x58] sm:$0xff]  ;;  %4780 = vmatprep.subr.bf16.mxu0 %v4779_v3  ;;  %v4785_v14 = vpack.c.bf16 %v160_v11, %v158_v10  ;;  %v162_v16 = vld [vmem:[%s7945_s1 + $0x40] sm:$0xff]  ;;  %v164_v17 = vld [vmem:[%s7945_s1 + $0x50] sm:$0xff] }
   0x5   :  { %4911 = vmatpush1.bf16.msra.mxu1 %v4781_v8  ;;  %4782 = vmatpush1.bf16.msra.mxu0 %v4781_v8  ;;  %v4787_v15 = vpack.c.bf16 %v165_v13, %v163_v12  ;;  %v167_v18 = vld [vmem:[%s7945_s1 + $0x68] sm:$0xff]  ;;  %v169_v19 = vld [vmem:[%s7945_s1 + $0x78] sm:$0xff]  ;;  %v4789_v20 = vpack.c.bf16 %v164_v17, %v162_v16  ;;  %v166_v22 = vld [vmem:[%s7945_s1 + $0x60] sm:$0xff] }
   0x6   :  { %4908 = vmatprep.subr.bf16.mxu1 %v4783_v9  ;;  %4784 = vmatprep.subr.bf16.mxu0 %v4783_v9  ;;  %v4791_v21 = vpack.c.bf16 %v169_v19, %v167_v18  ;;  %v168_v23 = vld [vmem:[%s7945_s1 + $0x70] sm:$0xff]  ;;  %v1657_v24 = vld [vmem:[%s7947_s3 + $0x8] sm:$0xff]  ;;  %v1659_v25 = vld [vmem:[%s7947_s3 + $0x18] sm:$0xff] }
   0x7   :  { %v4793_v26 = vpack.c.bf16 %v168_v23, %v166_v22  ;;  %v4795_v27 = vpack.c.bf16 %v1659_v25, %v1657_v24  ;;  %v1656_v28 = vld [vmem:[%s7947_s3] sm:$0xff]  ;;  %v1658_v29 = vld [vmem:[%s7947_s3 + $0x10] sm:$0xff]  ;;  %v1661_v30 = vld [vmem:[%s7947_s3 + $0x28] sm:$0xff] }
   0x8   :  { %v1663_v31 = vld [vmem:[%s7947_s3 + $0x38] sm:$0xff]  ;;  %v90_v32 = vld [vmem:[%s7944_s0 + $0x200] sm:$0xff]  ;;  %v4797_v33 = vpack.c.bf16 %v1658_v29, %v1656_v28  ;;  %v1662_v37 = vld [vmem:[%s7947_s3 + $0x30] sm:$0xff] }
   0x9   :  { %4912 = vmatpush1.bf16.msra.mxu1 %v4785_v14  ;;  %4786 = vmatpush1.bf16.msra.mxu0 %v4785_v14  ;;  %v26_v34 = vld [vmem:[%s7944_s0] sm:$0xff]  ;;  %v4799_v35 = vpack.c.bf16 %v1663_v31, %v1661_v30  ;;  %v1665_v38 = vld [vmem:[%s7947_s3 + $0x48] sm:$0xff]  ;;  %v1667_v39 = vld [vmem:[%s7947_s3 + $0x58] sm:$0xff] }
   0xa   :  { %4909 = vmatprep.subr.bf16.mxu1 %v4787_v15  ;;  %4788 = vmatprep.subr.bf16.mxu0 %v4787_v15  ;;  %v1660_v36 = vld [vmem:[%s7947_s3 + $0x20] sm:$0xff]  ;;  %v91_v40 = vld [vmem:[%s7944_s0 + $0x208] sm:$0xff]  ;;  %v4803_v43 = vpack.c.bf16 %v1667_v39, %v1665_v38  ;;  %v1666_v45 = vld [vmem:[%s7947_s3 + $0x50] sm:$0xff] }
   0xb   :  { %v4801_v41 = vpack.c.bf16 %v1662_v37, %v1660_v36  ;;  %v27_v42 = vld [vmem:[%s7944_s0 + $0x8] sm:$0xff]  ;;  %v1664_v44 = vld [vmem:[%s7947_s3 + $0x40] sm:$0xff]  ;;  %v1671_v47 = vld [vmem:[%s7947_s3 + $0x78] sm:$0xff] }
   0xc   :  { %v1669_v46 = vld [vmem:[%s7947_s3 + $0x68] sm:$0xff]  ;;  %v92_v48 = vld [vmem:[%s7944_s0 + $0x210] sm:$0xff]  ;;  %v4805_v49 = vpack.c.bf16 %v1666_v45, %v1664_v44  ;;  %v1668_v52 = vld [vmem:[%s7947_s3 + $0x60] sm:$0xff] }
   0xd   :  { %4913 = vmatpush1.bf16.msra.mxu1 %v4789_v20  ;;  %4790 = vmatpush1.bf16.msra.mxu0 %v4789_v20  ;;  %v28_v50 = vld [vmem:[%s7944_s0 + $0x10] sm:$0xff]  ;;  %v4807_v51 = vpack.c.bf16 %v1671_v47, %v1669_v46  ;;  %v1673_v54 = vld [vmem:[%s7947_s3 + $0x88] sm:$0xff]  ;;  %v1675_v55 = vld [vmem:[%s7947_s3 + $0x98] sm:$0xff] }
   0xe   :  { %4910 = vmatprep.subr.bf16.mxu1 %v4791_v21  ;;  %4792 = vmatprep.subr.bf16.mxu0 %v4791_v21  ;;  %v1670_v53 = vld [vmem:[%s7947_s3 + $0x70] sm:$0xff]  ;;  %v93_v56 = vld [vmem:[%s7944_s0 + $0x218] sm:$0xff]  ;;  %v4811_v59 = vpack.c.bf16 %v1675_v55, %v1673_v54  ;;  %v1672_v60 = vld [vmem:[%s7947_s3 + $0x80] sm:$0xff] }
   0xf   :  { %v4809_v57 = vpack.c.bf16 %v1670_v53, %v1668_v52  ;;  %v29_v58 = vld [vmem:[%s7944_s0 + $0x18] sm:$0xff]  ;;  %v1674_v61 = vld [vmem:[%s7947_s3 + $0x90] sm:$0xff]  ;;  %v1677_v62 = vld [vmem:[%s7947_s3 + $0xa8] sm:$0xff] }
  0x10   :  { %v1679_v63 = vld [vmem:[%s7947_s3 + $0xb8] sm:$0xff]  ;;  %v94_v0 = vld [vmem:[%s7944_s0 + $0x220] sm:$0xff]  ;;  %v4813_v2 = vpack.c.bf16 %v1674_v61, %v1672_v60  ;;  %v1678_v5 = vld [vmem:[%s7947_s3 + $0xb0] sm:$0xff] }
  0x11   :  { %4914 = vmatpush1.bf16.msra.mxu1 %v4793_v26  ;;  %4794 = vmatpush1.bf16.msra.mxu0 %v4793_v26  ;;  %v30_v1 = vld [vmem:[%s7944_s0 + $0x20] sm:$0xff]  ;;  %v4815_v3 = vpack.c.bf16 %v1679_v63, %v1677_v62  ;;  %v1681_v6 = vld [vmem:[%s7947_s3 + $0xc8] sm:$0xff]  ;;  %v1683_v8 = vld [vmem:[%s7947_s3 + $0xd8] sm:$0xff] }
  0x12   :  { %4796 = vmatprep.subr.bf16.mxu1 %v4795_v27  ;;  %v1676_v4 = vld [vmem:[%s7947_s3 + $0xa0] sm:$0xff]  ;;  %v95_v9 = vld [vmem:[%s7944_s0 + $0x228] sm:$0xff]  ;;  %v4819_v12 = vpack.c.bf16 %v1683_v8, %v1681_v6  ;;  %v1682_v14 = vld [vmem:[%s7947_s3 + $0xd0] sm:$0xff] }
  0x13   :  { %v31_v10 = vld [vmem:[%s7944_s0 + $0x28] sm:$0xff]  ;;  %v4817_v11 = vpack.c.bf16 %v1678_v5, %v1676_v4  ;;  %v1680_v13 = vld [vmem:[%s7947_s3 + $0xc0] sm:$0xff]  ;;  %v1687_v16 = vld [vmem:[%s7947_s3 + $0xf8] sm:$0xff] }
  0x14   :  { %4586 = vmatmul.mubr.msk.f32.vlgmr.msra.gmra.mrb[0].mxu1 %vm182_vm0, %v90_v32  ;;  %4522 = vmatmul.mubr.msk.f32.vlgmr.msra.gmra.mrb[0].mxu0 %vm182_vm0, %v26_v34  ;;  %v1685_v15 = vld [vmem:[%s7947_s3 + $0xe8] sm:$0xff]  ;;  %v96_v17 = vld [vmem:[%s7944_s0 + $0x230] sm:$0xff]  ;;  %v4821_v19 = vpack.c.bf16 %v1682_v14, %v1680_v13  ;;  %v1684_v21 = vld [vmem:[%s7947_s3 + $0xe0] sm:$0xff] }
  0x15   :  { %4798 = vmatpush1.bf16.msra.mxu1 %v4797_v33  ;;  %1021 = vmatprep.mubr.f32.mxu1 %v5432_v7  ;;  %v32_v18 = vld [vmem:[%s7944_s0 + $0x30] sm:$0xff]  ;;  %v4823_v20 = vpack.c.bf16 %v1687_v16, %v1685_v15  ;;  %v1689_v23 = vld [vmem:[%s7947_s3 + $0x108] sm:$0xff]  ;;  %v1691_v24 = vld [vmem:[%s7947_s3 + $0x118] sm:$0xff] }
  0x16   :  { %4800 = vmatprep.subr.bf16.mxu1 %v4799_v35  ;;  %637 = vmatprep.mubr.f32.mxu0 %v5432_v7  ;;  %v1686_v22 = vld [vmem:[%s7947_s3 + $0xf0] sm:$0xff]  ;;  %v97_v25 = vld [vmem:[%s7944_s0 + $0x238] sm:$0xff]  ;;  %v4827_v28 = vpack.c.bf16 %v1691_v24, %v1689_v23  ;;  %v1688_v29 = vld [vmem:[%s7947_s3 + $0x100] sm:$0xff] }
  0x17   :  { %v33_v26 = vld [vmem:[%s7944_s0 + $0x38] sm:$0xff]  ;;  %v4825_v27 = vpack.c.bf16 %v1686_v22, %v1684_v21  ;;  %v1690_v30 = vld [vmem:[%s7947_s3 + $0x110] sm:$0xff]  ;;  %v1693_v31 = vld [vmem:[%s7947_s3 + $0x128] sm:$0xff] }
  0x18   :  { %4587 = vmatmul.mubr.msk.f32.gmra.mrb[2].mxu1 %vm182_vm0, %v91_v40  ;;  %4523 = vmatmul.mubr.msk.f32.gmra.mrb[2].mxu0 %vm182_vm0, %v27_v42  ;;  %v1695_v32 = vld [vmem:[%s7947_s3 + $0x138] sm:$0xff]  ;;  %v98_v33 = vld [vmem:[%s7944_s0 + $0x240] sm:$0xff]  ;;  %v4829_v35 = vpack.c.bf16 %v1690_v30, %v1688_v29  ;;  %v1694_v38 = vld [vmem:[%s7947_s3 + $0x130] sm:$0xff] }
  0x19   :  { %1027 = vmatprep.mubr.f32.mxu1 %v5432_v7  ;;  %4802 = vmatpush1.bf16.msra.mxu1 %v4801_v41  ;;  %v34_v34 = vld [vmem:[%s7944_s0 + $0x40] sm:$0xff]  ;;  %v4831_v36 = vpack.c.bf16 %v1695_v32, %v1693_v31  ;;  %v1697_v39 = vld [vmem:[%s7947_s3 + $0x148] sm:$0xff]  ;;  %v1699_v40 = vld [vmem:[%s7947_s3 + $0x158] sm:$0xff]  ;;  %v7954_v31 = vmov 0.0|0.0  }
  0x1a   :  { %4804 = vmatprep.subr.bf16.mxu1 %v4803_v43  ;;  %643 = vmatprep.mubr.f32.mxu0 %v5432_v7  ;;  %v1692_v37 = vld [vmem:[%s7947_s3 + $0x120] sm:$0xff]  ;;  %v99_v41 = vld [vmem:[%s7944_s0 + $0x248] sm:$0xff]  ;;  %v4835_v44 = vpack.c.bf16 %v1699_v40, %v1697_v39  ;;  %v1698_v46 = vld [vmem:[%s7947_s3 + $0x150] sm:$0xff] }
  0x1b   :  { %v35_v42 = vld [vmem:[%s7944_s0 + $0x48] sm:$0xff]  ;;  %v4833_v43 = vpack.c.bf16 %v1694_v38, %v1692_v37  ;;  %v1696_v45 = vld [vmem:[%s7947_s3 + $0x140] sm:$0xff]  ;;  %v100_v47 = vld [vmem:[%s7944_s0 + $0x250] sm:$0xff]  ;;  %4859 = vmatprep.subr.bf16.mxu0 %v7954_v31 }
  0x1c   :  { %4588 = vmatmul.mubr.msk.f32.gmra.mrb[4].mxu1 %vm182_vm0, %v92_v48  ;;  %4524 = vmatmul.mubr.msk.f32.gmra.mrb[4].mxu0 %vm182_vm0, %v28_v50  ;;  %v36_v48 = vld [vmem:[%s7944_s0 + $0x50] sm:$0xff]  ;;  %v101_v50 = vld [vmem:[%s7944_s0 + $0x258] sm:$0xff]  ;;  %v102_v52 = vld [vmem:[%s7944_s0 + $0x260] sm:$0xff] }
  0x1d   :  { %1033 = vmatprep.mubr.f32.mxu1 %v5432_v7  ;;  %4806 = vmatpush1.bf16.msra.mxu1 %v4805_v49  ;;  %v4837_v49 = vpack.c.bf16 %v1698_v46, %v1696_v45  ;;  %v38_v53 = vld [vmem:[%s7944_s0 + $0x60] sm:$0xff]  ;;  %v1701_v54 = vld [vmem:[%s7947_s3 + $0x168] sm:$0xff]  ;;  %v1703_v55 = vld [vmem:[%s7947_s3 + $0x178] sm:$0xff] }
  0x1e   :  { %4808 = vmatprep.subr.bf16.mxu1 %v4807_v51  ;;  %649 = vmatprep.mubr.f32.mxu0 %v5432_v7  ;;  %v37_v51 = vld [vmem:[%s7944_s0 + $0x58] sm:$0xff]  ;;  %v1702_v60 = vld [vmem:[%s7947_s3 + $0x170] sm:$0xff]  ;;  %v1705_v4 = vld [vmem:[%s7947_s3 + $0x188] sm:$0xff] }
  0x1f   :  { %v104_v62 = vld [vmem:[%s7944_s0 + $0x270] sm:$0xff]  ;;  %v1707_v5 = vld [vmem:[%s7947_s3 + $0x198] sm:$0xff]  ;;  %v1704_v6 = vld [vmem:[%s7947_s3 + $0x180] sm:$0xff] }
  0x20   :  { %4589 = vmatmul.mubr.msk.f32.gmra.mrb[6].mxu1 %vm182_vm0, %v93_v56  ;;  %4525 = vmatmul.mubr.msk.f32.gmra.mrb[6].mxu0 %vm182_vm0, %v29_v58  ;;  %v1700_v56 = vld [vmem:[%s7947_s3 + $0x160] sm:$0xff]  ;;  %v39_v58 = vld [vmem:[%s7944_s0 + $0x68] sm:$0xff]  ;;  %v40_v63 = vld [vmem:[%s7944_s0 + $0x70] sm:$0xff] }
  0x21   :  { %1039 = vmatprep.mubr.f32.mxu1 %v5432_v7  ;;  %4810 = vmatpush1.bf16.msra.mxu1 %v4809_v57  ;;  %v103_v57 = vld [vmem:[%s7944_s0 + $0x268] sm:$0xff]  ;;  %v4841_v61 = vpack.c.bf16 %v1702_v60, %v1700_v56  ;;  %v108_v13 = vld [vmem:[%s7944_s0 + $0x290] sm:$0xff]  ;;  %v109_v15 = vld [vmem:[%s7944_s0 + $0x298] sm:$0xff] }
  0x22   :  { %655 = vmatprep.mubr.f32.mxu0 %v5432_v7  ;;  %4812 = vmatprep.subr.bf16.mxu1 %v4811_v59  ;;  %v4839_v59 = vpack.c.bf16 %v1703_v55, %v1701_v54  ;;  %v107_v8 = vld [vmem:[%s7944_s0 + $0x288] sm:$0xff]  ;;  %v44_v14 = vld [vmem:[%s7944_s0 + $0x90] sm:$0xff]  ;;  %v45_v16 = vld [vmem:[%s7944_s0 + $0x98] sm:$0xff] }
  0x23   :  { %v1708_v21 = vld [vmem:[%s7947_s3 + $0x1a0] sm:$0xff]  ;;  %v111_v22 = vld [vmem:[%s7944_s0 + $0x2a8] sm:$0xff]  ;;  %v113_v29 = vld [vmem:[%s7944_s0 + $0x2b8] sm:$0xff] }
  0x24   :  { %4590 = vmatmul.mubr.msk.f32.gmra.mrb[8].mxu1 %vm182_vm0, %v94_v0  ;;  %4526 = vmatmul.mubr.msk.f32.gmra.mrb[8].mxu0 %vm182_vm0, %v30_v1  ;;  %v105_v0 = vld [vmem:[%s7944_s0 + $0x278] sm:$0xff]  ;;  %v47_v23 = vld [vmem:[%s7944_s0 + $0xa8] sm:$0xff]  ;;  %v114_v32 = vld [vmem:[%s7944_s0 + $0x2c0] sm:$0xff] }
  0x25   :  { %1045 = vmatprep.mubr.f32.mxu1 %v5432_v7  ;;  %661 = vmatprep.mubr.f32.mxu0 %v5432_v7  ;;  %v41_v1 = vld [vmem:[%s7944_s0 + $0x78] sm:$0xff]  ;;  %v115_v37 = vld [vmem:[%s7944_s0 + $0x2c8] sm:$0xff]  ;;  %v116_v45 = vld [vmem:[%s7944_s0 + $0x2d0] sm:$0xff] }
  0x26   :  { %4814 = vmatpush1.bf16.msra.mxu1 %v4813_v2  ;;  %v106_v2 = vld [vmem:[%s7944_s0 + $0x280] sm:$0xff]  ;;  %v49_v30 = vld [vmem:[%s7944_s0 + $0xb8] sm:$0xff]  ;;  %v51_v38 = vld [vmem:[%s7944_s0 + $0xc8] sm:$0xff] }
  0x27   :  { %4816 = vmatprep.subr.bf16.mxu1 %v4815_v3  ;;  %v42_v3 = vld [vmem:[%s7944_s0 + $0x80] sm:$0xff]  ;;  %v1713_v39 = vld [vmem:[%s7947_s3 + $0x1c8] sm:$0xff]  ;;  %v1715_v40 = vld [vmem:[%s7947_s3 + $0x1d8] sm:$0xff] }
  0x28   :  { %4591 = vmatmul.mubr.msk.f32.gmra.mrb[10].mxu1 %vm182_vm0, %v95_v9  ;;  %4527 = vmatmul.mubr.msk.f32.gmra.mrb[10].mxu0 %vm182_vm0, %v31_v10  ;;  %v43_v9 = vld [vmem:[%s7944_s0 + $0x88] sm:$0xff]  ;;  %v4843_v10 = vpack.c.bf16 %v1707_v5, %v1705_v4  ;;  %v52_v46 = vld [vmem:[%s7944_s0 + $0xd0] sm:$0xff]  ;;  %v2825_v4 = vld [vmem:[%s7949_s5 + $0x20] sm:$0xff] }
  0x29   :  { %1051 = vmatprep.mubr.f32.mxu1 %v5432_v7  ;;  %667 = vmatprep.mubr.f32.mxu0 %v5432_v7  ;;  %v119_v54 = vld [vmem:[%s7944_s0 + $0x2e8] sm:$0xff]  ;;  %v1718_v60 = vld [vmem:[%s7947_s3 + $0x1f0] sm:$0xff] }
  0x2a   :  { %4818 = vmatpush1.bf16.msra.mxu1 %v4817_v11  ;;  %v1706_v11 = vld [vmem:[%s7947_s3 + $0x190] sm:$0xff]  ;;  %v55_v55 = vld [vmem:[%s7944_s0 + $0xe8] sm:$0xff] }
  0x2b   :  { %4820 = vmatprep.subr.bf16.mxu1 %v4819_v12  ;;  %v4845_v12 = vpack.c.bf16 %v1706_v11, %v1704_v6  ;;  %v1717_v56 = vld [vmem:[%s7947_s3 + $0x1e8] sm:$0xff]  ;;  %v60_v11 = vld [vmem:[%s7944_s0 + $0x110] sm:$0xff] }
  0x2c   :  { %4592 = vmatmul.mubr.msk.f32.gmra.mrb[12].mxu1 %vm182_vm0, %v96_v17  ;;  %4528 = vmatmul.mubr.msk.f32.gmra.mrb[12].mxu0 %vm182_vm0, %v32_v18  ;;  %v110_v17 = vld [vmem:[%s7944_s0 + $0x2a0] sm:$0xff]  ;;  %v2826_v5 = vld [vmem:[%s7949_s5 + $0x28] sm:$0xff] }
  0x2d   :  { %1057 = vmatprep.mubr.f32.mxu1 %v5432_v7  ;;  %673 = vmatprep.mubr.f32.mxu0 %v5432_v7  ;;  %v46_v18 = vld [vmem:[%s7944_s0 + $0xa0] sm:$0xff]  ;;  %v4866_v6 = vpack.c.bf16 %v2826_v5, %v2825_v4 }
  0x2e   :  { %4822 = vmatpush1.bf16.msra.mxu1 %v4821_v19  ;;  %v1709_v19 = vld [vmem:[%s7947_s3 + $0x1a8] sm:$0xff] }
  0x2f   :  { %4824 = vmatprep.subr.bf16.mxu1 %v4823_v20  ;;  %v1711_v20 = vld [vmem:[%s7947_s3 + $0x1b8] sm:$0xff] }
  0x30   :  { %4593 = vmatmul.mubr.msk.f32.gmra.mrb[14].mxu1 %vm182_vm0, %v97_v25  ;;  %4529 = vmatmul.mubr.msk.f32.gmra.mrb[14].mxu0 %vm182_vm0, %v33_v26  ;;  %v4847_v24 = vpack.c.bf16 %v1711_v20, %v1709_v19  ;;  %v1710_v25 = vld [vmem:[%s7947_s3 + $0x1b0] sm:$0xff]  ;;  %v127_v19 = vld [vmem:[%s7944_s0 + $0x328] sm:$0xff] }
  0x31   :  { %1063 = vmatprep.mubr.f32.mxu1 %v5432_v7  ;;  %679 = vmatprep.mubr.f32.mxu0 %v5432_v7  ;;  %v4849_v26 = vpack.c.bf16 %v1710_v25, %v1708_v21  ;;  %v63_v20 = vld [vmem:[%s7944_s0 + $0x128] sm:$0xff]  ;;  %v128_v21 = vld [vmem:[%s7944_s0 + $0x330] sm:$0xff]  ;;  %v130_v25 = vld [vmem:[%s7944_s0 + $0x340] sm:$0xff] }
  0x32   :  { %4826 = vmatpush1.bf16.msra.mxu1 %v4825_v27  ;;  %v112_v27 = vld [vmem:[%s7944_s0 + $0x2b0] sm:$0xff] }
  0x33   :  { %4828 = vmatprep.subr.bf16.mxu1 %v4827_v28  ;;  %v48_v28 = vld [vmem:[%s7944_s0 + $0xb0] sm:$0xff] }
  0x34   :  { %4594 = vmatmul.mubr.msk.f32.gmra.mrb[16].mxu1 %vm182_vm0, %v98_v33  ;;  %4530 = vmatmul.mubr.msk.f32.gmra.mrb[16].mxu0 %vm182_vm0, %v34_v34  ;;  %v50_v33 = vld [vmem:[%s7944_s0 + $0xc0] sm:$0xff] }
  0x35   :  { %1069 = vmatprep.mubr.f32.mxu1 %v5432_v7  ;;  %685 = vmatprep.mubr.f32.mxu0 %v5432_v7  ;;  %v2821_v34 = vld [vmem:[%s7949_s5] sm:$0xff] }
  0x36   :  { %4830 = vmatpush1.bf16.msra.mxu1 %v4829_v35  ;;  %v2822_v35 = vld [vmem:[%s7949_s5 + $0x8] sm:$0xff] }
  0x37   :  { %4832 = vmatprep.subr.bf16.mxu1 %v4831_v36  ;;  %v4860_v36 = vpack.c.bf16 %v2822_v35, %v2821_v34  ;;  %v68_v34 = vld [vmem:[%s7944_s0 + $0x150] sm:$0xff]  ;;  %v133_v35 = vld [vmem:[%s7944_s0 + $0x358] sm:$0xff] }
  0x38   :  { %4595 = vmatmul.mubr.msk.f32.gmra.mrb[18].mxu1 %vm182_vm0, %v99_v41  ;;  %4531 = vmatmul.mubr.msk.f32.gmra.mrb[18].mxu0 %vm182_vm0, %v35_v42  ;;  %v1712_v41 = vld [vmem:[%s7947_s3 + $0x1c0] sm:$0xff]  ;;  %v4851_v42 = vpack.c.bf16 %v1715_v40, %v1713_v39  ;;  %v2831_v39 = vld [vmem:[%s7949_s5 + $0x50] sm:$0xff]  ;;  %v2832_v40 = vld [vmem:[%s7949_s5 + $0x58] sm:$0xff] }
  0x39   :  { %1075 = vmatprep.mubr.f32.mxu1 %v5432_v7  ;;  %691 = vmatprep.mubr.f32.mxu0 %v5432_v7 }
  0x3a   :  { %4834 = vmatpush1.bf16.msra.mxu1 %v4833_v43  ;;  %4861 = vmatpush1.bf16.msra.mxu0 %v4860_v36  ;;  %v1714_v43 = vld [vmem:[%s7947_s3 + $0x1d0] sm:$0xff]  ;;  %v69_v36 = vld [vmem:[%s7944_s0 + $0x158] sm:$0xff] }
  0x3b   :  { %4836 = vmatprep.subr.bf16.mxu1 %v4835_v44  ;;  %4862 = vmatprep.subr.bf16.mxu0 %v7954_v31  ;;  %v4853_v44 = vpack.c.bf16 %v1714_v43, %v1712_v41  ;;  %v4875_v41 = vpack.c.bf16 %v2832_v40, %v2831_v39  ;;  %v71_v43 = vld [vmem:[%s7944_s0 + $0x168] sm:$0xff] }
  0x3c   :  { %4596 = vmatmul.mubr.msk.f32.gmra.mrb[20].mxu1 %vm182_vm0, %v100_v47  ;;  %4532 = vmatmul.mubr.msk.f32.gmra.mrb[20].mxu0 %vm182_vm0, %v36_v48  ;;  %v117_v47 = vld [vmem:[%s7944_s0 + $0x2d8] sm:$0xff] }
  0x3d   :  { %1081 = vmatprep.mubr.f32.mxu1 %v5432_v7  ;;  %697 = vmatprep.mubr.f32.mxu0 %v5432_v7  ;;  %v53_v48 = vld [vmem:[%s7944_s0 + $0xd8] sm:$0xff] }
  0x3e   :  { %4838 = vmatpush1.bf16.msra.mxu1 %v4837_v49  ;;  %v118_v49 = vld [vmem:[%s7944_s0 + $0x2e0] sm:$0xff] }
  0x3f   :  { %4840 = vmatprep.subr.bf16.mxu1 %v4839_v59 }
  0x40   :  { %4597 = vmatmul.mubr.msk.f32.gmra.mrb[22].mxu1 %vm182_vm0, %v101_v50  ;;  %4533 = vmatmul.mubr.msk.f32.gmra.mrb[22].mxu0 %vm182_vm0, %v37_v51  ;;  %v54_v50 = vld [vmem:[%s7944_s0 + $0xe0] sm:$0xff]  ;;  %v2823_v51 = vld [vmem:[%s7949_s5 + $0x10] sm:$0xff] }
  0x41   :  { %1087 = vmatprep.mubr.f32.mxu1 %v5432_v7  ;;  %703 = vmatprep.mubr.f32.mxu0 %v5432_v7 }
  0x42   :  { %4842 = vmatpush1.bf16.msra.mxu1 %v4841_v61 }
  0x43   :  { %4844 = vmatprep.subr.bf16.mxu1 %v4843_v10  ;;  %v124_v10 = vld [vmem:[%s7944_s0 + $0x310] sm:$0xff] }
  0x44   :  { %4598 = vmatmul.mubr.msk.f32.gmra.mrb[24].mxu1 %vm182_vm0, %v102_v52  ;;  %4534 = vmatmul.mubr.msk.f32.gmra.mrb[24].mxu0 %vm182_vm0, %v38_v53  ;;  %v2824_v52 = vld [vmem:[%s7949_s5 + $0x18] sm:$0xff] }
  0x45   :  { %1093 = vmatprep.mubr.f32.mxu1 %v5432_v7  ;;  %709 = vmatprep.mubr.f32.mxu0 %v5432_v7  ;;  %v4863_v53 = vpack.c.bf16 %v2824_v52, %v2823_v51  ;;  %v2834_v51 = vld [vmem:[%s7949_s5 + $0x68] sm:$0xff] }
  0x46   :  { %4846 = vmatpush1.bf16.msra.mxu1 %v4845_v12  ;;  %v125_v12 = vld [vmem:[%s7944_s0 + $0x318] sm:$0xff] }
  0x47   :  { %4848 = vmatprep.subr.bf16.mxu1 %v4847_v24  ;;  %4864 = vmatpush1.bf16.msra.mxu0 %v4863_v53  ;;  %v65_v24 = vld [vmem:[%s7944_s0 + $0x138] sm:$0xff]  ;;  %v139_v53 = vld [vmem:[%s7944_s0 + $0x388] sm:$0xff] }
  0x48   :  { %4599 = vmatmul.mubr.msk.f32.gmra.mrb[26].mxu1 %vm182_vm0, %v103_v57  ;;  %4535 = vmatmul.mubr.msk.f32.gmra.mrb[26].mxu0 %vm182_vm0, %v39_v58  ;;  %v1719_v57 = vld [vmem:[%s7947_s3 + $0x1f8] sm:$0xff]  ;;  %v1716_v58 = vld [vmem:[%s7947_s3 + $0x1e0] sm:$0xff] }
  0x49   :  { %1099 = vmatprep.mubr.f32.mxu1 %v5432_v7  ;;  %715 = vmatprep.mubr.f32.mxu0 %v5432_v7  ;;  %v4855_v59 = vpack.c.bf16 %v1719_v57, %v1717_v56  ;;  %v4857_v61 = vpack.c.bf16 %v1718_v60, %v1716_v58  ;;  %v76_v56 = vld [vmem:[%s7944_s0 + $0x190] sm:$0xff]  ;;  %v141_v57 = vld [vmem:[%s7944_s0 + $0x398] sm:$0xff]  ;;  %v78_v60 = vld [vmem:[%s7944_s0 + $0x1a0] sm:$0xff] }
  0x4a   :  { %4850 = vmatpush1.bf16.msra.mxu1 %v4849_v26  ;;  %4865 = vmatprep.subr.bf16.mxu0 %v7954_v31  ;;  %v66_v26 = vld [vmem:[%s7944_s0 + $0x140] sm:$0xff]  ;;  %v77_v58 = vld [vmem:[%s7944_s0 + $0x198] sm:$0xff] }
  0x4b   :  { %4852 = vmatprep.subr.bf16.mxu1 %v4851_v42  ;;  %4867 = vmatpush1.bf16.msra.mxu0 %v4866_v6  ;;  %v135_v42 = vld [vmem:[%s7944_s0 + $0x368] sm:$0xff]  ;;  %v144_v6 = vld [vmem:[%s7944_s0 + $0x3b0] sm:$0xff] }
  0x4c   :  { %4600 = vmatmul.mubr.msk.f32.gmra.mrb[28].mxu1 %vm182_vm0, %v104_v62  ;;  %4536 = vmatmul.mubr.msk.f32.gmra.mrb[28].mxu0 %vm182_vm0, %v40_v63  ;;  %v120_v62 = vld [vmem:[%s7944_s0 + $0x2f0] sm:$0xff] }
  0x4d   :  { %1105 = vmatprep.mubr.f32.mxu1 %v5432_v7  ;;  %721 = vmatprep.mubr.f32.mxu0 %v5432_v7  ;;  %v56_v63 = vld [vmem:[%s7944_s0 + $0xf0] sm:$0xff] }
  0x4e   :  { %4854 = vmatpush1.bf16.msra.mxu1 %v4853_v44  ;;  %4868 = vmatprep.subr.bf16.mxu0 %v7954_v31  ;;  %v136_v44 = vld [vmem:[%s7944_s0 + $0x370] sm:$0xff] }
  0x4f   :  { %4856 = vmatprep.subr.bf16.mxu1 %v4855_v59  ;;  %v142_v59 = vld [vmem:[%s7944_s0 + $0x3a0] sm:$0xff] }
  0x50   :  { %4601 = vmatmul.mubr.msk.f32.gmra.mrb[30].mxu1 %vm182_vm0, %v105_v0  ;;  %4537 = vmatmul.mubr.msk.f32.gmra.mrb[30].mxu0 %vm182_vm0, %v41_v1  ;;  %v121_v0 = vld [vmem:[%s7944_s0 + $0x2f8] sm:$0xff] }
  0x51   :  { %1111 = vmatprep.mubr.f32.mxu1 %v5432_v7  ;;  %727 = vmatprep.mubr.f32.mxu0 %v5432_v7  ;;  %v57_v1 = vld [vmem:[%s7944_s0 + $0xf8] sm:$0xff] }
  0x52   :  { %4858 = vmatpush1.bf16.msra.mxu1 %v4857_v61  ;;  %v2835_v61 = vld [vmem:[%s7949_s5 + $0x70] sm:$0xff] }
  0x54   :  { %4602 = vmatmul.mubr.msk.f32.gmra.mrb[32].mxu1 %vm182_vm0, %v106_v2  ;;  %4538 = vmatmul.mubr.msk.f32.gmra.mrb[32].mxu0 %vm182_vm0, %v42_v3  ;;  %v122_v2 = vld [vmem:[%s7944_s0 + $0x300] sm:$0xff] }
  0x55   :  { %1117 = vmatprep.mubr.f32.mxu1 %v5432_v7  ;;  %733 = vmatprep.mubr.f32.mxu0 %v5432_v7  ;;  %v58_v3 = vld [vmem:[%s7944_s0 + $0x100] sm:$0xff] }
  0x58   :  { %4603 = vmatmul.mubr.msk.f32.gmra.mrb[34].mxu1 %vm182_vm0, %v107_v8  ;;  %4539 = vmatmul.mubr.msk.f32.gmra.mrb[34].mxu0 %vm182_vm0, %v43_v9  ;;  %v123_v8 = vld [vmem:[%s7944_s0 + $0x308] sm:$0xff] }
  0x59   :  { %1123 = vmatprep.mubr.f32.mxu1 %v5432_v7  ;;  %739 = vmatprep.mubr.f32.mxu0 %v5432_v7  ;;  %v59_v9 = vld [vmem:[%s7944_s0 + $0x108] sm:$0xff] }
  0x5c   :  { %4604 = vmatmul.mubr.msk.f32.gmra.mrb[36].mxu1 %vm182_vm0, %v108_v13  ;;  %4540 = vmatmul.mubr.msk.f32.gmra.mrb[36].mxu0 %vm182_vm0, %v44_v14  ;;  %v61_v13 = vld [vmem:[%s7944_s0 + $0x118] sm:$0xff]  ;;  %v126_v14 = vld [vmem:[%s7944_s0 + $0x320] sm:$0xff] }
  0x5d   :  { %1129 = vmatprep.mubr.f32.mxu1 %v5432_v7  ;;  %745 = vmatprep.mubr.f32.mxu0 %v5432_v7 }
  0x60   :  { %4605 = vmatmul.mubr.msk.f32.gmra.mrb[38].mxu1 %vm182_vm0, %v109_v15  ;;  %4541 = vmatmul.mubr.msk.f32.gmra.mrb[38].mxu0 %vm182_vm0, %v45_v16  ;;  %v62_v15 = vld [vmem:[%s7944_s0 + $0x120] sm:$0xff]  ;;  %v2827_v16 = vld [vmem:[%s7949_s5 + $0x30] sm:$0xff] }
  0x61   :  { %1135 = vmatprep.mubr.f32.mxu1 %v5432_v7  ;;  %751 = vmatprep.mubr.f32.mxu0 %v5432_v7 }
  0x64   :  { %4606 = vmatmul.mubr.msk.f32.gmra.mrb[40].mxu1 %vm182_vm0, %v110_v17  ;;  %4542 = vmatmul.mubr.msk.f32.gmra.mrb[40].mxu0 %vm182_vm0, %v46_v18  ;;  %v2828_v17 = vld [vmem:[%s7949_s5 + $0x38] sm:$0xff] }
  0x65   :  { %1141 = vmatprep.mubr.f32.mxu1 %v5432_v7  ;;  %757 = vmatprep.mubr.f32.mxu0 %v5432_v7  ;;  %v4869_v18 = vpack.c.bf16 %v2828_v17, %v2827_v16 }
  0x67   :  { %4870 = vmatpush1.bf16.msra.mxu0 %v4869_v18 }
  0x68   :  { %4607 = vmatmul.mubr.msk.f32.gmra.mrb[42].mxu1 %vm182_vm0, %v111_v22  ;;  %4543 = vmatmul.mubr.msk.f32.gmra.mrb[42].mxu0 %vm182_vm0, %v47_v23  ;;  %v64_v22 = vld [vmem:[%s7944_s0 + $0x130] sm:$0xff]  ;;  %v129_v23 = vld [vmem:[%s7944_s0 + $0x338] sm:$0xff] }
  0x69   :  { %1147 = vmatprep.mubr.f32.mxu1 %v5432_v7  ;;  %763 = vmatprep.mubr.f32.mxu0 %v5432_v7 }
  0x6a   :  { %4871 = vmatprep.subr.bf16.mxu0 %v7954_v31 }
  0x6c   :  { %4608 = vmatmul.mubr.msk.f32.gmra.mrb[44].mxu1 %vm182_vm0, %v112_v27  ;;  %4544 = vmatmul.mubr.msk.f32.gmra.mrb[44].mxu0 %vm182_vm0, %v48_v28  ;;  %v2829_v27 = vld [vmem:[%s7949_s5 + $0x40] sm:$0xff]  ;;  %v2830_v28 = vld [vmem:[%s7949_s5 + $0x48] sm:$0xff] }
  0x6d   :  { %1153 = vmatprep.mubr.f32.mxu1 %v5432_v7  ;;  %769 = vmatprep.mubr.f32.mxu0 %v5432_v7 }
  0x70   :  { %4609 = vmatmul.mubr.msk.f32.gmra.mrb[46].mxu1 %vm182_vm0, %v113_v29  ;;  %4545 = vmatmul.mubr.msk.f32.gmra.mrb[46].mxu0 %vm182_vm0, %v49_v30  ;;  %v4872_v29 = vpack.c.bf16 %v2830_v28, %v2829_v27  ;;  %v131_v30 = vld [vmem:[%s7944_s0 + $0x348] sm:$0xff] }
  0x71   :  { %1159 = vmatprep.mubr.f32.mxu1 %v5432_v7  ;;  %775 = vmatprep.mubr.f32.mxu0 %v5432_v7  ;;  %v147_v28 = vld [vmem:[%s7944_s0 + $0x3c8] sm:$0xff] }
  0x72   :  { %4873 = vmatpush1.bf16.msra.mxu0 %v4872_v29  ;;  %v83_v29 = vld [vmem:[%s7944_s0 + $0x1c8] sm:$0xff] }
  0x73   :  { %4874 = vmatprep.subr.bf16.mxu0 %v7954_v31 }
  0x74   :  { %4610 = vmatmul.mubr.msk.f32.gmra.mrb[48].mxu1 %vm182_vm0, %v114_v32  ;;  %4546 = vmatmul.mubr.msk.f32.gmra.mrb[48].mxu0 %vm182_vm0, %v50_v33  ;;  %v67_v32 = vld [vmem:[%s7944_s0 + $0x148] sm:$0xff]  ;;  %v132_v33 = vld [vmem:[%s7944_s0 + $0x350] sm:$0xff] }
  0x75   :  { %1165 = vmatprep.mubr.f32.mxu1 %v5432_v7  ;;  %781 = vmatprep.mubr.f32.mxu0 %v5432_v7 }
  0x76   :  { %4876 = vmatpush1.bf16.msra.mxu0 %v4875_v41 }
  0x77   :  { %4877 = vmatprep.subr.bf16.mxu0 %v7954_v31 }
  0x78   :  { %4611 = vmatmul.mubr.msk.f32.gmra.mrb[50].mxu1 %vm182_vm0, %v115_v37  ;;  %4547 = vmatmul.mubr.msk.f32.gmra.mrb[50].mxu0 %vm182_vm0, %v51_v38  ;;  %v134_v37 = vld [vmem:[%s7944_s0 + $0x360] sm:$0xff] }
  0x79   :  { %1171 = vmatprep.mubr.f32.mxu1 %v5432_v7  ;;  %787 = vmatprep.mubr.f32.mxu0 %v5432_v7  ;;  %v70_v38 = vld [vmem:[%s7944_s0 + $0x160] sm:$0xff] }
  0x7c   :  { %4612 = vmatmul.mubr.msk.f32.gmra.mrb[52].mxu1 %vm182_vm0, %v116_v45  ;;  %4548 = vmatmul.mubr.msk.f32.gmra.mrb[52].mxu0 %vm182_vm0, %v52_v46  ;;  %v72_v45 = vld [vmem:[%s7944_s0 + $0x170] sm:$0xff]  ;;  %v137_v46 = vld [vmem:[%s7944_s0 + $0x378] sm:$0xff] }
  0x7d   :  { %1177 = vmatprep.mubr.f32.mxu1 %v5432_v7  ;;  %793 = vmatprep.mubr.f32.mxu0 %v5432_v7 }
  0x80   :  { %4613 = vmatmul.mubr.msk.f32.gmra.mrb[54].mxu1 %vm182_vm0, %v117_v47  ;;  %4549 = vmatmul.mubr.msk.f32.gmra.mrb[54].mxu0 %vm182_vm0, %v53_v48  ;;  %v73_v47 = vld [vmem:[%s7944_s0 + $0x178] sm:$0xff]  ;;  %v138_v48 = vld [vmem:[%s7944_s0 + $0x380] sm:$0xff] }
  0x81   :  { %1183 = vmatprep.mubr.f32.mxu1 %v5432_v7  ;;  %799 = vmatprep.mubr.f32.mxu0 %v5432_v7 }
  0x84   :  { %4614 = vmatmul.mubr.msk.f32.gmra.mrb[56].mxu1 %vm182_vm0, %v118_v49  ;;  %4550 = vmatmul.mubr.msk.f32.gmra.mrb[56].mxu0 %vm182_vm0, %v54_v50  ;;  %v74_v49 = vld [vmem:[%s7944_s0 + $0x180] sm:$0xff] }
  0x85   :  { %1189 = vmatprep.mubr.f32.mxu1 %v5432_v7  ;;  %805 = vmatprep.mubr.f32.mxu0 %v5432_v7  ;;  %v2833_v50 = vld [vmem:[%s7949_s5 + $0x60] sm:$0xff] }
  0x86   :  { %v4878_v52 = vpack.c.bf16 %v2834_v51, %v2833_v50  ;;  %v86_v50 = vld [vmem:[%s7944_s0 + $0x1e0] sm:$0xff]  ;;  %v2839_v51 = vld [vmem:[%s7949_s5 + $0x90] sm:$0xff] }
  0x88   :  { %4615 = vmatmul.mubr.msk.f32.gmra.mrb[58].mxu1 %vm182_vm0, %v119_v54  ;;  %4551 = vmatmul.mubr.msk.f32.gmra.mrb[58].mxu0 %vm182_vm0, %v55_v55  ;;  %v75_v54 = vld [vmem:[%s7944_s0 + $0x188] sm:$0xff]  ;;  %v140_v55 = vld [vmem:[%s7944_s0 + $0x390] sm:$0xff] }
  0x89   :  { %1195 = vmatprep.mubr.f32.mxu1 %v5432_v7  ;;  %811 = vmatprep.mubr.f32.mxu0 %v5432_v7 }
  0x8a   :  { %4879 = vmatpush1.bf16.msra.mxu0 %v4878_v52  ;;  %v2840_v52 = vld [vmem:[%s7949_s5 + $0x98] sm:$0xff] }
  0x8b   :  { %4880 = vmatprep.subr.bf16.mxu0 %v7954_v31 }
  0x8c   :  { %4616 = vmatmul.mubr.msk.f32.gmra.mrb[60].mxu1 %vm182_vm0, %v120_v62  ;;  %4552 = vmatmul.mubr.msk.f32.gmra.mrb[60].mxu0 %vm182_vm0, %v56_v63  ;;  %v2836_v62 = vld [vmem:[%s7949_s5 + $0x78] sm:$0xff] }
  0x8d   :  { %1201 = vmatprep.mubr.f32.mxu1 %v5432_v7  ;;  %817 = vmatprep.mubr.f32.mxu0 %v5432_v7  ;;  %v4881_v63 = vpack.c.bf16 %v2836_v62, %v2835_v61  ;;  %v87_v61 = vld [vmem:[%s7944_s0 + $0x1e8] sm:$0xff] }
  0x8f   :  { %4882 = vmatpush1.bf16.msra.mxu0 %v4881_v63 }
  0x90   :  { %4617 = vmatmul.mubr.msk.f32.gmra.mrb[62].mxu1 %vm182_vm0, %v121_v0  ;;  %4553 = vmatmul.mubr.msk.f32.gmra.mrb[62].mxu0 %vm182_vm0, %v57_v1  ;;  %v143_v0 = vld [vmem:[%s7944_s0 + $0x3a8] sm:$0xff] }
  0x91   :  { %1207 = vmatprep.mubr.f32.mxu1 %v5432_v7  ;;  %823 = vmatprep.mubr.f32.mxu0 %v5432_v7  ;;  %v79_v1 = vld [vmem:[%s7944_s0 + $0x1a8] sm:$0xff] }
  0x92   :  { %4883 = vmatprep.subr.bf16.mxu0 %v7954_v31 }
  0x94   :  { %4618 = vmatmul.mubr.msk.f32.gmra.mrb[64].mxu1 %vm182_vm0, %v122_v2  ;;  %4554 = vmatmul.mubr.msk.f32.gmra.mrb[64].mxu0 %vm182_vm0, %v58_v3 }
  0x95   :  { %1213 = vmatprep.mubr.f32.mxu1 %v5432_v7  ;;  %829 = vmatprep.mubr.f32.mxu0 %v5432_v7 }
  0x98   :  { %4619 = vmatmul.mubr.msk.f32.gmra.mrb[66].mxu1 %vm182_vm0, %v123_v8  ;;  %4555 = vmatmul.mubr.msk.f32.gmra.mrb[66].mxu0 %vm182_vm0, %v59_v9  ;;  %v80_v8 = vld [vmem:[%s7944_s0 + $0x1b0] sm:$0xff] }
  0x99   :  { %1219 = vmatprep.mubr.f32.mxu1 %v5432_v7  ;;  %835 = vmatprep.mubr.f32.mxu0 %v5432_v7 }
  0x9c   :  { %4620 = vmatmul.mubr.msk.f32.gmra.mrb[68].mxu1 %vm182_vm0, %v124_v10  ;;  %4556 = vmatmul.mubr.msk.f32.gmra.mrb[68].mxu0 %vm182_vm0, %v60_v11 }
  0x9d   :  { %1225 = vmatprep.mubr.f32.mxu1 %v5432_v7  ;;  %841 = vmatprep.mubr.f32.mxu0 %v5432_v7 }
  0xa0   :  { %4621 = vmatmul.mubr.msk.f32.gmra.mrb[70].mxu1 %vm182_vm0, %v125_v12  ;;  %4557 = vmatmul.mubr.msk.f32.gmra.mrb[70].mxu0 %vm182_vm0, %v61_v13  ;;  %v145_v13 = vld [vmem:[%s7944_s0 + $0x3b8] sm:$0xff] }
  0xa1   :  { %1231 = vmatprep.mubr.f32.mxu1 %v5432_v7  ;;  %847 = vmatprep.mubr.f32.mxu0 %v5432_v7 }
  0xa4   :  { %4622 = vmatmul.mubr.msk.f32.gmra.mrb[72].mxu1 %vm182_vm0, %v126_v14  ;;  %4558 = vmatmul.mubr.msk.f32.gmra.mrb[72].mxu0 %vm182_vm0, %v62_v15  ;;  %v81_v14 = vld [vmem:[%s7944_s0 + $0x1b8] sm:$0xff] }
  0xa5   :  { %1237 = vmatprep.mubr.f32.mxu1 %v5432_v7  ;;  %853 = vmatprep.mubr.f32.mxu0 %v5432_v7 }
  0xa8   :  { %4623 = vmatmul.mubr.msk.f32.gmra.mrb[74].mxu1 %vm182_vm0, %v127_v19  ;;  %4559 = vmatmul.mubr.msk.f32.gmra.mrb[74].mxu0 %vm182_vm0, %v63_v20  ;;  %v146_v19 = vld [vmem:[%s7944_s0 + $0x3c0] sm:$0xff] }
  0xa9   :  { %1243 = vmatprep.mubr.f32.mxu1 %v5432_v7  ;;  %859 = vmatprep.mubr.f32.mxu0 %v5432_v7  ;;  %v82_v20 = vld [vmem:[%s7944_s0 + $0x1c0] sm:$0xff] }
  0xac   :  { %4624 = vmatmul.mubr.msk.f32.gmra.mrb[76].mxu1 %vm182_vm0, %v128_v21  ;;  %4560 = vmatmul.mubr.msk.f32.gmra.mrb[76].mxu0 %vm182_vm0, %v64_v22  ;;  %v2837_v21 = vld [vmem:[%s7949_s5 + $0x80] sm:$0xff]  ;;  %v2838_v22 = vld [vmem:[%s7949_s5 + $0x88] sm:$0xff] }
  0xad   :  { %1249 = vmatprep.mubr.f32.mxu1 %v5432_v7  ;;  %865 = vmatprep.mubr.f32.mxu0 %v5432_v7 }
  0xb0   :  { %4625 = vmatmul.mubr.msk.f32.gmra.mrb[78].mxu1 %vm182_vm0, %v129_v23  ;;  %4561 = vmatmul.mubr.msk.f32.gmra.mrb[78].mxu0 %vm182_vm0, %v65_v24 }
  0xb1   :  { %1255 = vmatprep.mubr.f32.mxu1 %v5432_v7  ;;  %871 = vmatprep.mubr.f32.mxu0 %v5432_v7 }
  0xb4   :  { %4626 = vmatmul.mubr.msk.f32.gmra.mrb[80].mxu1 %vm182_vm0, %v130_v25  ;;  %4562 = vmatmul.mubr.msk.f32.gmra.mrb[80].mxu0 %vm182_vm0, %v66_v26  ;;  %v4884_v25 = vpack.c.bf16 %v2838_v22, %v2837_v21 }
  0xb5   :  { %1261 = vmatprep.mubr.f32.mxu1 %v5432_v7  ;;  %877 = vmatprep.mubr.f32.mxu0 %v5432_v7 }
  0xb6   :  { %4885 = vmatpush1.bf16.msra.mxu0 %v4884_v25 }
  0xb7   :  { %4886 = vmatprep.subr.bf16.mxu0 %v7954_v31 }
  0xb8   :  { %4627 = vmatmul.mubr.msk.f32.gmra.mrb[82].mxu1 %vm182_vm0, %v131_v30  ;;  %4563 = vmatmul.mubr.msk.f32.gmra.mrb[82].mxu0 %vm182_vm0, %v67_v32 }
  0xb9   :  { %1267 = vmatprep.mubr.f32.mxu1 %v5432_v7  ;;  %883 = vmatprep.mubr.f32.mxu0 %v5432_v7 }
  0xbc   :  { %4628 = vmatmul.mubr.msk.f32.gmra.mrb[84].mxu1 %vm182_vm0, %v132_v33  ;;  %4564 = vmatmul.mubr.msk.f32.gmra.mrb[84].mxu0 %vm182_vm0, %v68_v34 }
  0xbd   :  { %1273 = vmatprep.mubr.f32.mxu1 %v5432_v7  ;;  %889 = vmatprep.mubr.f32.mxu0 %v5432_v7 }
  0xc0   :  { %4629 = vmatmul.mubr.msk.f32.gmra.mrb[86].mxu1 %vm182_vm0, %v133_v35  ;;  %4565 = vmatmul.mubr.msk.f32.gmra.mrb[86].mxu0 %vm182_vm0, %v69_v36  ;;  %v148_v35 = vld [vmem:[%s7944_s0 + $0x3d0] sm:$0xff] }
  0xc1   :  { %1279 = vmatprep.mubr.f32.mxu1 %v5432_v7  ;;  %895 = vmatprep.mubr.f32.mxu0 %v5432_v7  ;;  %v84_v36 = vld [vmem:[%s7944_s0 + $0x1d0] sm:$0xff] }
  0xc4   :  { %4630 = vmatmul.mubr.msk.f32.gmra.mrb[88].mxu1 %vm182_vm0, %v134_v37  ;;  %4566 = vmatmul.mubr.msk.f32.gmra.mrb[88].mxu0 %vm182_vm0, %v70_v38  ;;  %v172_v37 = vlaneseq }
  0xc5   :  { %1285 = vmatprep.mubr.f32.mxu1 %v5432_v7  ;;  %901 = vmatprep.mubr.f32.mxu0 %v5432_v7 }
  0xc8   :  { %4631 = vmatmul.mubr.msk.f32.gmra.mrb[90].mxu1 %vm182_vm0, %v135_v42  ;;  %4567 = vmatmul.mubr.msk.f32.gmra.mrb[90].mxu0 %vm182_vm0, %v71_v43  ;;  %v149_v42 = vld [vmem:[%s7944_s0 + $0x3d8] sm:$0xff] }
  0xc9   :  { %1291 = vmatprep.mubr.f32.mxu1 %v5432_v7  ;;  %907 = vmatprep.mubr.f32.mxu0 %v5432_v7  ;;  %v85_v43 = vld [vmem:[%s7944_s0 + $0x1d8] sm:$0xff] }
  0xcc   :  { %4632 = vmatmul.mubr.msk.f32.gmra.mrb[92].mxu1 %vm182_vm0, %v136_v44  ;;  %4568 = vmatmul.mubr.msk.f32.gmra.mrb[92].mxu0 %vm182_vm0, %v72_v45  ;;  %v6424_v44 = vshrl.u32 %v172_v37, 7 }
  0xcd   :  { %1297 = vmatprep.mubr.f32.mxu1 %v5432_v7  ;;  %913 = vmatprep.mubr.f32.mxu0 %v5432_v7 }
  0xd0   :  { %4633 = vmatmul.mubr.msk.f32.gmra.mrb[94].mxu1 %vm182_vm0, %v137_v46  ;;  %4569 = vmatmul.mubr.msk.f32.gmra.mrb[94].mxu0 %vm182_vm0, %v73_v47 }
  0xd1   :  { %1303 = vmatprep.mubr.f32.mxu1 %v5432_v7  ;;  %919 = vmatprep.mubr.f32.mxu0 %v5432_v7 }
  0xd4   :  { %4634 = vmatmul.mubr.msk.f32.gmra.mrb[96].mxu1 %vm182_vm0, %v138_v48  ;;  %4570 = vmatmul.mubr.msk.f32.gmra.mrb[96].mxu0 %vm182_vm0, %v74_v49  ;;  %v150_v49 = vld [vmem:[%s7944_s0 + $0x3e0] sm:$0xff] }
  0xd5   :  { %1309 = vmatprep.mubr.f32.mxu1 %v5432_v7  ;;  %925 = vmatprep.mubr.f32.mxu0 %v5432_v7 }
  0xd8   :  { %4635 = vmatmul.mubr.msk.f32.gmra.mrb[98].mxu1 %vm182_vm0, %v139_v53  ;;  %4571 = vmatmul.mubr.msk.f32.gmra.mrb[98].mxu0 %vm182_vm0, %v75_v54  ;;  %v7952_v53 = vsub.s32 1, %v6424_v44 }
  0xd9   :  { %1315 = vmatprep.mubr.f32.mxu1 %v5432_v7  ;;  %931 = vmatprep.mubr.f32.mxu0 %v5432_v7 }
  0xdc   :  { %4636 = vmatmul.mubr.msk.f32.gmra.mrb[100].mxu1 %vm182_vm0, %v140_v55  ;;  %4572 = vmatmul.mubr.msk.f32.gmra.mrb[100].mxu0 %vm182_vm0, %v76_v56  ;;  %v4887_v56 = vpack.c.bf16 %v2840_v52, %v2839_v51  ;;  %v2841_v52 = vld [vmem:[%s7949_s5 + $0xa0] sm:$0xff] }
  0xdd   :  { %1321 = vmatprep.mubr.f32.mxu1 %v5432_v7  ;;  %937 = vmatprep.mubr.f32.mxu0 %v5432_v7 }
  0xde   :  { %4888 = vmatpush1.bf16.msra.mxu0 %v4887_v56  ;;  %v2842_v56 = vld [vmem:[%s7949_s5 + $0xa8] sm:$0xff] }
  0xdf   :  { %4889 = vmatprep.subr.bf16.mxu0 %v7954_v31 }
  0xe0   :  { %4637 = vmatmul.mubr.msk.f32.gmra.mrb[102].mxu1 %vm182_vm0, %v141_v57  ;;  %4573 = vmatmul.mubr.msk.f32.gmra.mrb[102].mxu0 %vm182_vm0, %v77_v58  ;;  %v170_v57 = vld [vmem:[%s7946_s2] sm:$0x3] }
  0xe1   :  { %1327 = vmatprep.mubr.f32.mxu1 %v5432_v7  ;;  %943 = vmatprep.mubr.f32.mxu0 %v5432_v7  ;;  %v6474_v62 = vrot.slane %v170_v57, %v7952_v53 }
  0xe4   :  { %4638 = vmatmul.mubr.msk.f32.gmra.mrb[104].mxu1 %vm182_vm0, %v142_v59  ;;  %4574 = vmatmul.mubr.msk.f32.gmra.mrb[104].mxu0 %vm182_vm0, %v78_v60  ;;  %v151_v60 = vld [vmem:[%s7944_s0 + $0x3e8] sm:$0xff] }
  0xe5   :  { %1333 = vmatprep.mubr.f32.mxu1 %v5432_v7  ;;  %949 = vmatprep.mubr.f32.mxu0 %v5432_v7 }
  0xe7   :  { %v6308_v2 = vpop.f32.mrb[0].mxu1  ;;  %v6310_v3 = vpop.f32.mrb[0].mxu0 }
  0xe8   :  { %v6313_v4 = vpop.f32.mrb[1].mxu1  ;;  %4639 = vmatmul.mubr.msk.f32.gmra.mrb[106].mxu1 %vm182_vm0, %v143_v0  ;;  %v6316_v5 = vpop.f32.mrb[1].mxu0  ;;  %4575 = vmatmul.mubr.msk.f32.gmra.mrb[106].mxu0 %vm182_vm0, %v79_v1  ;;  %v7953_v1 = vsub.s32 0, %v6424_v44 }
  0xe9   :  { %1339 = vmatprep.mubr.f32.mxu1 %v5432_v7  ;;  %955 = vmatprep.mubr.f32.mxu0 %v5432_v7 }
  0xea   :  { %v6504_v22 = vrot.slane %v170_v57, %v7953_v1 }
  0xeb   :  { %v6327_v9 = vpop.f32.mrb[2].mxu1  ;;  %v6329_v10 = vpop.f32.mrb[2].mxu0 }
  0xec   :  { %v6331_v11 = vpop.f32.mrb[3].mxu1  ;;  %4640 = vmatmul.mubr.msk.f32.gmra.mrb[108].mxu1 %vm182_vm0, %v144_v6  ;;  %v6334_v12 = vpop.f32.mrb[3].mxu0  ;;  %4576 = vmatmul.mubr.msk.f32.gmra.mrb[108].mxu0 %vm182_vm0, %v80_v8  ;;  %v634_v37 = vadd.f32 %v6310_v3, %v6504_v22  ;;  %v640_v3 = vadd.f32 %v6329_v10, %v6504_v22 }
  0xed   :  { %1345 = vmatprep.mubr.f32.mxu1 %v5432_v7  ;;  %961 = vmatprep.mubr.f32.mxu0 %v5432_v7 }
  0xee   :  { %v1400_v51 = vmax.f32 %v634_v37, 0.0 }
  0xef   :  { %v6345_v15 = vpop.f32.mrb[4].mxu1  ;;  %v6347_v16 = vpop.f32.mrb[4].mxu0 }
  0xf0   :  { %v6349_v17 = vpop.f32.mrb[5].mxu1  ;;  %4641 = vmatmul.mubr.msk.f32.gmra.mrb[110].mxu1 %vm182_vm0, %v145_v13  ;;  %v6352_v18 = vpop.f32.mrb[5].mxu0  ;;  %4577 = vmatmul.mubr.msk.f32.gmra.mrb[110].mxu0 %vm182_vm0, %v81_v14  ;;  %v152_v13 = vld [vmem:[%s7944_s0 + $0x3f0] sm:$0xff]  ;;  %v636_v14 = vadd.f32 %v6316_v5, %v6474_v62  ;;  %v153_v5 = vld [vmem:[%s7944_s0 + $0x3f8] sm:$0xff] }
  0xf1   :  { %1351 = vmatprep.mubr.f32.mxu1 %v5432_v7  ;;  %967 = vmatprep.mubr.f32.mxu0 %v5432_v7 }
  0xf3   :  { %v6369_v23 = vpop.f32.mrb[6].mxu1  ;;  %v6371_v24 = vpop.f32.mrb[6].mxu0 }
  0xf4   :  { %v6373_v26 = vpop.f32.mrb[7].mxu1  ;;  %4642 = vmatmul.mubr.msk.f32.gmra.mrb[112].mxu1 %vm182_vm0, %v146_v19  ;;  %v6376_v27 = vpop.f32.mrb[7].mxu0  ;;  %4578 = vmatmul.mubr.msk.f32.gmra.mrb[112].mxu0 %vm182_vm0, %v82_v20  ;;  %v88_v19 = vld [vmem:[%s7944_s0 + $0x1f0] sm:$0xff] }
  0xf5   :  { %1357 = vmatprep.mubr.f32.mxu1 %v5432_v7  ;;  %973 = vmatprep.mubr.f32.mxu0 %v5432_v7  ;;  %v654_v10 = vadd.f32 %v6376_v27, %v6474_v62 }
  0xf7   :  { %v6387_v30 = vpop.f32.mrb[8].mxu1  ;;  %v6389_v32 = vpop.f32.mrb[8].mxu0 }
  0xf8   :  { %v6392_v33 = vpop.f32.mrb[9].mxu1  ;;  %4643 = vmatmul.mubr.msk.f32.gmra.mrb[114].mxu1 %vm182_vm0, %v147_v28  ;;  %v6395_v34 = vpop.f32.mrb[9].mxu0  ;;  %4579 = vmatmul.mubr.msk.f32.gmra.mrb[114].mxu0 %vm182_vm0, %v83_v29  ;;  %v642_v29 = vadd.f32 %v6334_v12, %v6474_v62 }
  0xf9   :  { %1363 = vmatprep.mubr.f32.mxu1 %v5432_v7  ;;  %979 = vmatprep.mubr.f32.mxu0 %v5432_v7  ;;  %v660_v27 = vadd.f32 %v6395_v34, %v6474_v62  ;;  %v658_v34 = vadd.f32 %v6389_v32, %v6504_v22  ;;  %v2843_v32 = vld [vmem:[%s7949_s5 + $0xb0] sm:$0xff] }
  0xfa   :  { %v1403_v12 = vmax.f32 %v642_v29, 0.0 }
  0xfb   :  { %v6406_v38 = vpop.f32.mrb[10].mxu1  ;;  %v6408_v39 = vpop.f32.mrb[10].mxu0 }
  0xfc   :  { %v6410_v40 = vpop.f32.mrb[11].mxu1  ;;  %4644 = vmatmul.mubr.msk.f32.gmra.mrb[116].mxu1 %vm182_vm0, %v148_v35  ;;  %v6413_v41 = vpop.f32.mrb[11].mxu0  ;;  %4580 = vmatmul.mubr.msk.f32.gmra.mrb[116].mxu0 %vm182_vm0, %v84_v36  ;;  %v1401_v35 = vmax.f32 %v636_v14, 0.0  ;;  %v89_v36 = vld [vmem:[%s7944_s0 + $0x1f8] sm:$0xff] }
  0xfd   :  { %1369 = vmatprep.mubr.f32.mxu1 %v5432_v7  ;;  %985 = vmatprep.mubr.f32.mxu0 %v5432_v7 }
  0xff   :  { %v6426_v45 = vpop.f32.mrb[12].mxu1  ;;  %v6428_v46 = vpop.f32.mrb[12].mxu0 }
 0x100   :  { %v6430_v47 = vpop.f32.mrb[13].mxu1  ;;  %4645 = vmatmul.mubr.msk.f32.gmra.mrb[118].mxu1 %vm182_vm0, %v149_v42  ;;  %v6433_v48 = vpop.f32.mrb[13].mxu0  ;;  %4581 = vmatmul.mubr.msk.f32.gmra.mrb[118].mxu0 %vm182_vm0, %v85_v43 }
 0x101   :  { %1375 = vmatprep.mubr.f32.mxu1 %v5432_v7  ;;  %991 = vmatprep.mubr.f32.mxu0 %v5432_v7 }
 0x103   :  { %v6451_v54 = vpop.f32.mrb[14].mxu1  ;;  %v6453_v55 = vpop.f32.mrb[14].mxu0 }
 0x104   :  { %v6458_v58 = vpop.f32.mrb[15].mxu1  ;;  %4646 = vmatmul.mubr.msk.f32.gmra.mrb[120].mxu1 %vm182_vm0, %v150_v49  ;;  %v6461_v59 = vpop.f32.mrb[15].mxu0  ;;  %4582 = vmatmul.mubr.msk.f32.gmra.mrb[120].mxu0 %vm182_vm0, %v86_v50 }
 0x105   :  { %1381 = vmatprep.mubr.f32.mxu1 %v5432_v7  ;;  %997 = vmatprep.mubr.f32.mxu0 %v5432_v7 }
 0x107   :  { %v6476_v63 = vpop.f32.mrb[16].mxu1  ;;  %v6478_v0 = vpop.f32.mrb[16].mxu0 }
 0x108   :  { %v6482_v6 = vpop.f32.mrb[17].mxu1  ;;  %4647 = vmatmul.mubr.msk.f32.gmra.mrb[122].mxu1 %vm182_vm0, %v151_v60  ;;  %v6485_v8 = vpop.f32.mrb[17].mxu0  ;;  %4583 = vmatmul.mubr.msk.f32.gmra.mrb[122].mxu0 %vm182_vm0, %v87_v61  ;;  %v4890_v61 = vpack.c.bf16 %v2842_v56, %v2841_v52 }
 0x109   :  { %1387 = vmatprep.mubr.f32.mxu1 %v5432_v7  ;;  %1003 = vmatprep.mubr.f32.mxu0 %v5432_v7 }
 0x10a   :  { %4891 = vmatpush1.bf16.msra.mxu0 %v4890_v61  ;;  %v666_v61 = vadd.f32 %v6413_v41, %v6474_v62  ;;  %v664_v41 = vadd.f32 %v6408_v39, %v6504_v22  ;;  %v678_v39 = vadd.f32 %v6461_v59, %v6474_v62  ;;  %v684_v59 = vadd.f32 %v6485_v8, %v6474_v62 }
 0x10b   :  { %v6498_v20 = vpop.f32.mrb[18].mxu1  ;;  %v6500_v21 = vpop.f32.mrb[18].mxu0  ;;  %4892 = vmatprep.subr.bf16.mxu0 %v7954_v31  ;;  %v682_v8 = vadd.f32 %v6478_v0, %v6504_v22  ;;  %v2845_v0 = vld [vmem:[%s7949_s5 + $0xc0] sm:$0xff] }
 0x10c   :  { %v6506_v25 = vpop.f32.mrb[19].mxu1  ;;  %4648 = vmatmul.mubr.msk.f32.gmra.mrb[124].mxu1 %vm182_vm0, %v152_v13  ;;  %v6509_v28 = vpop.f32.mrb[19].mxu0  ;;  %4584 = vmatmul.mubr.msk.f32.gmra.mrb[124].mxu0 %vm182_vm0, %v88_v19  ;;  %v646_v19 = vadd.f32 %v6347_v16, %v6504_v22  ;;  %v652_v16 = vadd.f32 %v6371_v24, %v6504_v22 }
 0x10d   :  { %1393 = vmatprep.mubr.f32.mxu1 %v5432_v7  ;;  %1009 = vmatprep.mubr.f32.mxu0 %v5432_v7  ;;  %v648_v7 = vadd.f32 %v6352_v18, %v6474_v62 }
 0x10f   :  { %v6524_v42 = vpop.f32.mrb[20].mxu1  ;;  %v6526_v43 = vpop.f32.mrb[20].mxu0  ;;  %v1405_v14 = vmax.f32 %v648_v7, 0.0  ;;  %v1407_v7 = vmax.f32 %v654_v10, 0.0  ;;  %v1406_v10 = vmax.f32 %v652_v16, 0.0  ;;  %v2844_v16 = vld [vmem:[%s7949_s5 + $0xb8] sm:$0xff] }
 0x110   :  { %v6528_v49 = vpop.f32.mrb[21].mxu1  ;;  %4649 = vmatmul.mubr.msk.f32.gmra.mrb[126].mxu1 %vm182_vm0, %v153_v5  ;;  %v6531_v50 = vpop.f32.mrb[21].mxu0  ;;  %4585 = vmatmul.mubr.msk.f32.gmra.mrb[126].mxu0 %vm182_vm0, %v89_v36  ;;  %v1402_v5 = vmax.f32 %v640_v3, 0.0 }
 0x111   :  { %1796 = vmatprep.mubr.f32.mxu1 %v1401_v35 }
 0x113   :  { %v6544_v57 = vpop.f32.mrb[22].mxu1  ;;  %v6546_v60 = vpop.f32.mrb[22].mxu0 }
 0x114   :  { %v6548_v13 = vpop.f32.mrb[23].mxu1  ;;  %1797 = vmatmul.mubr.f32.vlgmr.msra.gmra.mrb[128].mxu1 %v1400_v51  ;;  %v6550_v18 = vpop.f32.mrb[23].mxu0 }
 0x115   :  { %1802 = vmatprep.mubr.f32.mxu1 %v1403_v12  ;;  %v1404_v12 = vmax.f32 %v646_v19, 0.0 }
 0x117   :  { %v6557_v29 = vpop.f32.mrb[24].mxu1  ;;  %v6559_v35 = vpop.f32.mrb[24].mxu0 }
 0x118   :  { %v6561_v36 = vpop.f32.mrb[25].mxu1  ;;  %1803 = vmatmul.mubr.f32.gmra.mrb[130].mxu1 %v1402_v5  ;;  %v6563_v37 = vpop.f32.mrb[25].mxu0 }
 0x119   :  { %1808 = vmatprep.mubr.f32.mxu1 %v1405_v14  ;;  %v1409_v14 = vmax.f32 %v660_v27, 0.0  ;;  %v1408_v27 = vmax.f32 %v658_v34, 0.0  ;;  %v670_v34 = vadd.f32 %v6428_v46, %v6504_v22  ;;  %v676_v46 = vadd.f32 %v6453_v55, %v6504_v22 }
 0x11b   :  { %v6569_v51 = vpop.f32.mrb[26].mxu1  ;;  %v6571_v3 = vpop.f32.mrb[26].mxu0 }
 0x11c   :  { %7956 = vst [vmem:[#allocation3_spill] sm:$0xff] %v6569_v51  ;;  %v6573_v52 = vpop.f32.mrb[27].mxu1  ;;  %1809 = vmatmul.mubr.f32.gmra.mrb[132].mxu1 %v1404_v12  ;;  %v6575_v56 = vpop.f32.mrb[27].mxu0  ;;  %v1411_v12 = vmax.f32 %v666_v61, 0.0 }
 0x11d   :  { %7957 = vst [vmem:[#allocation4_spill] sm:$0xff] %v6573_v52  ;;  %1814 = vmatprep.mubr.f32.mxu1 %v1407_v7  ;;  %v672_v7 = vadd.f32 %v6433_v48, %v6474_v62 }
 0x11f   :  { %v6581_v24 = vpop.f32.mrb[28].mxu1  ;;  %v6583_v19 = vpop.f32.mrb[28].mxu0  ;;  %v1413_v61 = vmax.f32 %v672_v7, 0.0  ;;  %v1415_v7 = vmax.f32 %v678_v39, 0.0  ;;  %v1414_v39 = vmax.f32 %v676_v46, 0.0  ;;  %v2846_v46 = vld [vmem:[%s7949_s5 + $0xc8] sm:$0xff] }
 0x120   :  { %7958 = vst [vmem:[#allocation5_spill] sm:$0xff] %v6581_v24  ;;  %v6585_v5 = vpop.f32.mrb[29].mxu1  ;;  %1815 = vmatmul.mubr.f32.gmra.mrb[134].mxu1 %v1406_v10  ;;  %v6587_v53 = vpop.f32.mrb[29].mxu0  ;;  %v1410_v24 = vmax.f32 %v664_v41, 0.0 }
 0x121   :  { %7959 = vst [vmem:[#allocation6_spill] sm:$0xff] %v6585_v5  ;;  %1820 = vmatprep.mubr.f32.mxu1 %v1409_v14  ;;  %v4893_v14 = vpack.c.bf16 %v2844_v16, %v2843_v32  ;;  %v7962_v5 = vmov 0.0|0.0  }
 0x123   :  { %v6599_v10 = vpop.f32.mrb[30].mxu1  ;;  %v6601_v1 = vpop.f32.mrb[30].mxu0  ;;  %4894 = vmatpush1.bf16.msra.mxu0 %v4893_v14 }
 0x124   :  { %7960 = vst [vmem:[#allocation7_spill] sm:$0xff] %v6599_v10  ;;  %v6603_v31 = vpop.f32.mrb[31].mxu1  ;;  %1821 = vmatmul.mubr.f32.gmra.mrb[136].mxu1 %v1408_v27  ;;  %v6605_v48 = vpop.f32.mrb[31].mxu0  ;;  %4895 = vmatprep.subr.bf16.mxu0 %v7962_v5 }
 0x125   :  { %7961 = vst [vmem:[#allocation8_spill] sm:$0xff] %v6603_v31  ;;  %1826 = vmatprep.mubr.f32.mxu1 %v1411_v12  ;;  %v1412_v12 = vmax.f32 %v670_v34, 0.0 }
 0x127   :  { %v6612_v10 = vpop.f32.mrb[32].mxu1  ;;  %v6614_v32 = vpop.f32.mrb[32].mxu0 }
 0x128   :  { %7963 = vst [vmem:[#allocation9_spill] sm:$0xff] %v6612_v10  ;;  %v6616_v16 = vpop.f32.mrb[33].mxu1  ;;  %1827 = vmatmul.mubr.f32.gmra.mrb[138].mxu1 %v1410_v24  ;;  %v6618_v27 = vpop.f32.mrb[33].mxu0  ;;  %v690_v24 = vadd.f32 %v6509_v28, %v6474_v62  ;;  %v688_v28 = vadd.f32 %v6500_v21, %v6504_v22  ;;  %v702_v21 = vadd.f32 %v6550_v18, %v6474_v62 }
 0x129   :  { %7964 = vst [vmem:[#allocation10_spill] sm:$0xff] %v6616_v16  ;;  %1832 = vmatprep.mubr.f32.mxu1 %v1413_v61  ;;  %v1417_v61 = vmax.f32 %v684_v59, 0.0  ;;  %v1416_v59 = vmax.f32 %v682_v8, 0.0  ;;  %v694_v8 = vadd.f32 %v6526_v43, %v6504_v22  ;;  %v708_v18 = vadd.f32 %v6563_v37, %v6474_v62 }
 0x12a   :  { %v1418_v31 = vmax.f32 %v688_v28, 0.0  ;;  %v700_v43 = vadd.f32 %v6546_v60, %v6504_v22  ;;  %v706_v37 = vadd.f32 %v6559_v35, %v6504_v22  ;;  %v2847_v35 = vld [vmem:[%s7949_s5 + $0xd0] sm:$0xff] }
 0x12b   :  { %v6624_v41 = vpop.f32.mrb[34].mxu1  ;;  %v6626_v14 = vpop.f32.mrb[34].mxu0 }
 0x12c   :  { %7965 = vst [vmem:[#allocation11_spill] sm:$0xff] %v6624_v41  ;;  %v6628_v10 = vpop.f32.mrb[35].mxu1  ;;  %1833 = vmatmul.mubr.f32.gmra.mrb[140].mxu1 %v1412_v12  ;;  %v6630_v16 = vpop.f32.mrb[35].mxu0  ;;  %v1419_v12 = vmax.f32 %v690_v24, 0.0 }
 0x12d   :  { %7966 = vst [vmem:[#allocation12_spill] sm:$0xff] %v6628_v10  ;;  %1838 = vmatprep.mubr.f32.mxu1 %v1415_v7  ;;  %v696_v7 = vadd.f32 %v6531_v50, %v6474_v62 }
 0x12f   :  { %v6636_v55 = vpop.f32.mrb[36].mxu1  ;;  %v6638_v34 = vpop.f32.mrb[36].mxu0  ;;  %v1421_v24 = vmax.f32 %v696_v7, 0.0  ;;  %v1423_v7 = vmax.f32 %v702_v21, 0.0  ;;  %v1422_v21 = vmax.f32 %v700_v43, 0.0  ;;  %v2848_v43 = vld [vmem:[%s7949_s5 + $0xd8] sm:$0xff] }
 0x130   :  { %7967 = vst [vmem:[#allocation13_spill] sm:$0xff] %v6636_v55  ;;  %v6640_v41 = vpop.f32.mrb[37].mxu1  ;;  %1839 = vmatmul.mubr.f32.gmra.mrb[142].mxu1 %v1414_v39  ;;  %v6642_v10 = vpop.f32.mrb[37].mxu0 }
 0x131   :  { %7968 = vst [vmem:[#allocation14_spill] sm:$0xff] %v6640_v41  ;;  %1844 = vmatprep.mubr.f32.mxu1 %v1417_v61  ;;  %v4896_v61 = vpack.c.bf16 %v2846_v46, %v2845_v0 }
 0x133   :  { %v6654_v39 = vpop.f32.mrb[38].mxu1  ;;  %v6656_v55 = vpop.f32.mrb[38].mxu0  ;;  %4897 = vmatpush1.bf16.msra.mxu0 %v4896_v61 }
 0x134   :  { %7969 = vst [vmem:[#allocation15_spill] sm:$0xff] %v6654_v39  ;;  %v6658_v41 = vpop.f32.mrb[39].mxu1  ;;  %1845 = vmatmul.mubr.f32.gmra.mrb[144].mxu1 %v1416_v59  ;;  %v6660_v50 = vpop.f32.mrb[39].mxu0  ;;  %4898 = vmatprep.subr.bf16.mxu0 %v7962_v5 }
 0x135   :  { %7970 = vst [vmem:[#allocation16_spill] sm:$0xff] %v6658_v41  ;;  %1850 = vmatprep.mubr.f32.mxu1 %v1419_v12  ;;  %v1420_v12 = vmax.f32 %v694_v8, 0.0 }
 0x137   :  { %v6667_v39 = vpop.f32.mrb[40].mxu1  ;;  %v6669_v0 = vpop.f32.mrb[40].mxu0 }
 0x138   :  { %7971 = vst [vmem:[#allocation17_spill] sm:$0xff] %v6667_v39  ;;  %v6671_v46 = vpop.f32.mrb[41].mxu1  ;;  %1851 = vmatmul.mubr.f32.gmra.mrb[146].mxu1 %v1418_v31  ;;  %v6673_v59 = vpop.f32.mrb[41].mxu0  ;;  %v714_v31 = vadd.f32 %v6575_v56, %v6474_v62  ;;  %v712_v56 = vadd.f32 %v6571_v3, %v6504_v22  ;;  %v726_v3 = vadd.f32 %v6605_v48, %v6474_v62 }
 0x139   :  { %7972 = vst [vmem:[#allocation18_spill] sm:$0xff] %v6671_v46  ;;  %1856 = vmatprep.mubr.f32.mxu1 %v1421_v24  ;;  %v1425_v24 = vmax.f32 %v708_v18, 0.0  ;;  %v1424_v18 = vmax.f32 %v706_v37, 0.0  ;;  %v718_v37 = vadd.f32 %v6583_v19, %v6504_v22  ;;  %v732_v48 = vadd.f32 %v6618_v27, %v6474_v62 }
 0x13a   :  { %v1426_v41 = vmax.f32 %v712_v56, 0.0  ;;  %v724_v19 = vadd.f32 %v6601_v1, %v6504_v22  ;;  %v730_v27 = vadd.f32 %v6614_v32, %v6504_v22  ;;  %v2849_v32 = vld [vmem:[%s7949_s5 + $0xe0] sm:$0xff] }
 0x13b   :  { %v6679_v28 = vpop.f32.mrb[42].mxu1  ;;  %v6681_v61 = vpop.f32.mrb[42].mxu0 }
 0x13c   :  { %7973 = vst [vmem:[#allocation19_spill] sm:$0xff] %v6679_v28  ;;  %v6683_v39 = vpop.f32.mrb[43].mxu1  ;;  %1857 = vmatmul.mubr.f32.gmra.mrb[148].mxu1 %v1420_v12  ;;  %v6685_v46 = vpop.f32.mrb[43].mxu0  ;;  %v1427_v12 = vmax.f32 %v714_v31, 0.0 }
 0x13d   :  { %7974 = vst [vmem:[#allocation20_spill] sm:$0xff] %v6683_v39  ;;  %1862 = vmatprep.mubr.f32.mxu1 %v1423_v7  ;;  %v720_v7 = vadd.f32 %v6587_v53, %v6474_v62 }
 0x13f   :  { %v6691_v60 = vpop.f32.mrb[44].mxu1  ;;  %v6693_v8 = vpop.f32.mrb[44].mxu0  ;;  %v1429_v31 = vmax.f32 %v720_v7, 0.0  ;;  %v1431_v7 = vmax.f32 %v726_v3, 0.0  ;;  %v1430_v3 = vmax.f32 %v724_v19, 0.0  ;;  %v2850_v19 = vld [vmem:[%s7949_s5 + $0xe8] sm:$0xff] }
 0x140   :  { %7975 = vst [vmem:[#allocation21_spill] sm:$0xff] %v6691_v60  ;;  %v6695_v28 = vpop.f32.mrb[45].mxu1  ;;  %1863 = vmatmul.mubr.f32.gmra.mrb[150].mxu1 %v1422_v21  ;;  %v6697_v39 = vpop.f32.mrb[45].mxu0 }
 0x141   :  { %7976 = vst [vmem:[#allocation22_spill] sm:$0xff] %v6695_v28  ;;  %1868 = vmatprep.mubr.f32.mxu1 %v1425_v24  ;;  %v4899_v24 = vpack.c.bf16 %v2848_v43, %v2847_v35 }
 0x143   :  { %v6709_v21 = vpop.f32.mrb[46].mxu1  ;;  %v6711_v60 = vpop.f32.mrb[46].mxu0  ;;  %4900 = vmatpush1.bf16.msra.mxu0 %v4899_v24 }
 0x144   :  { %7977 = vst [vmem:[#allocation23_spill] sm:$0xff] %v6709_v21  ;;  %v6713_v28 = vpop.f32.mrb[47].mxu1  ;;  %1869 = vmatmul.mubr.f32.gmra.mrb[152].mxu1 %v1424_v18  ;;  %v6715_v53 = vpop.f32.mrb[47].mxu0  ;;  %4901 = vmatprep.subr.bf16.mxu0 %v7962_v5 }
 0x145   :  { %7978 = vst [vmem:[#allocation24_spill] sm:$0xff] %v6713_v28  ;;  %1874 = vmatprep.mubr.f32.mxu1 %v1427_v12  ;;  %v1428_v12 = vmax.f32 %v718_v37, 0.0 }
 0x147   :  { %v6722_v21 = vpop.f32.mrb[48].mxu1  ;;  %v6724_v35 = vpop.f32.mrb[48].mxu0 }
 0x148   :  { %7979 = vst [vmem:[#allocation25_spill] sm:$0xff] %v6722_v21  ;;  %v6726_v43 = vpop.f32.mrb[49].mxu1  ;;  %1875 = vmatmul.mubr.f32.gmra.mrb[154].mxu1 %v1426_v41  ;;  %v6728_v18 = vpop.f32.mrb[49].mxu0  ;;  %v738_v41 = vadd.f32 %v6630_v16, %v6474_v62  ;;  %v736_v16 = vadd.f32 %v6626_v14, %v6504_v22  ;;  %v750_v14 = vadd.f32 %v6660_v50, %v6474_v62 }
 0x149   :  { %7980 = vst [vmem:[#allocation26_spill] sm:$0xff] %v6726_v43  ;;  %1880 = vmatprep.mubr.f32.mxu1 %v1429_v31  ;;  %v1433_v31 = vmax.f32 %v732_v48, 0.0  ;;  %v1432_v48 = vmax.f32 %v730_v27, 0.0  ;;  %v742_v27 = vadd.f32 %v6638_v34, %v6504_v22  ;;  %v756_v50 = vadd.f32 %v6673_v59, %v6474_v62 }
 0x14a   :  { %v1434_v28 = vmax.f32 %v736_v16, 0.0  ;;  %v748_v34 = vadd.f32 %v6656_v55, %v6504_v22  ;;  %v754_v59 = vadd.f32 %v6669_v0, %v6504_v22  ;;  %v2851_v0 = vld [vmem:[%s7949_s5 + $0xf0] sm:$0xff] }
 0x14b   :  { %v6734_v56 = vpop.f32.mrb[50].mxu1  ;;  %v6736_v24 = vpop.f32.mrb[50].mxu0 }
 0x14c   :  { %7981 = vst [vmem:[#allocation27_spill] sm:$0xff] %v6734_v56  ;;  %v6738_v21 = vpop.f32.mrb[51].mxu1  ;;  %1881 = vmatmul.mubr.f32.gmra.mrb[156].mxu1 %v1428_v12  ;;  %v6740_v43 = vpop.f32.mrb[51].mxu0  ;;  %v1435_v12 = vmax.f32 %v738_v41, 0.0 }
 0x14d   :  { %7982 = vst [vmem:[#allocation28_spill] sm:$0xff] %v6738_v21  ;;  %1886 = vmatprep.mubr.f32.mxu1 %v1431_v7  ;;  %v744_v7 = vadd.f32 %v6642_v10, %v6474_v62 }
 0x14f   :  { %v6746_v1 = vpop.f32.mrb[52].mxu1  ;;  %v6748_v37 = vpop.f32.mrb[52].mxu0  ;;  %v1437_v41 = vmax.f32 %v744_v7, 0.0  ;;  %v1439_v7 = vmax.f32 %v750_v14, 0.0  ;;  %v1438_v14 = vmax.f32 %v748_v34, 0.0  ;;  %v2852_v34 = vld [vmem:[%s7949_s5 + $0xf8] sm:$0xff] }
 0x150   :  { %7983 = vst [vmem:[#allocation29_spill] sm:$0xff] %v6746_v1  ;;  %v6750_v56 = vpop.f32.mrb[53].mxu1  ;;  %1887 = vmatmul.mubr.f32.gmra.mrb[158].mxu1 %v1430_v3  ;;  %v6752_v21 = vpop.f32.mrb[53].mxu0 }
 0x151   :  { %7984 = vst [vmem:[#allocation30_spill] sm:$0xff] %v6750_v56  ;;  %1892 = vmatprep.mubr.f32.mxu1 %v1433_v31  ;;  %v4902_v31 = vpack.c.bf16 %v2850_v19, %v2849_v32 }
 0x153   :  { %v6764_v3 = vpop.f32.mrb[54].mxu1  ;;  %v6766_v1 = vpop.f32.mrb[54].mxu0  ;;  %4903 = vmatpush1.bf16.msra.mxu0 %v4902_v31 }
 0x154   :  { %7985 = vst [vmem:[#allocation31_spill] sm:$0xff] %v6764_v3  ;;  %v6768_v56 = vpop.f32.mrb[55].mxu1  ;;  %1893 = vmatmul.mubr.f32.gmra.mrb[160].mxu1 %v1432_v48  ;;  %v6770_v10 = vpop.f32.mrb[55].mxu0  ;;  %4904 = vmatprep.subr.bf16.mxu0 %v7962_v5 }
 0x155   :  { %7986 = vst [vmem:[#allocation32_spill] sm:$0xff] %v6768_v56  ;;  %1898 = vmatprep.mubr.f32.mxu1 %v1435_v12  ;;  %v1436_v12 = vmax.f32 %v742_v27, 0.0 }
 0x157   :  { %v6777_v3 = vpop.f32.mrb[56].mxu1  ;;  %v6779_v32 = vpop.f32.mrb[56].mxu0 }
 0x158   :  { %7987 = vst [vmem:[#allocation33_spill] sm:$0xff] %v6777_v3  ;;  %v6781_v19 = vpop.f32.mrb[57].mxu1  ;;  %1899 = vmatmul.mubr.f32.gmra.mrb[162].mxu1 %v1434_v28  ;;  %v6783_v48 = vpop.f32.mrb[57].mxu0  ;;  %v762_v28 = vadd.f32 %v6685_v46, %v6474_v62  ;;  %v760_v46 = vadd.f32 %v6681_v61, %v6504_v22  ;;  %v774_v61 = vadd.f32 %v6715_v53, %v6474_v62 }
 0x159   :  { %7988 = vst [vmem:[#allocation34_spill] sm:$0xff] %v6781_v19  ;;  %1904 = vmatprep.mubr.f32.mxu1 %v1437_v41  ;;  %v1441_v41 = vmax.f32 %v756_v50, 0.0  ;;  %v1440_v50 = vmax.f32 %v754_v59, 0.0  ;;  %v766_v59 = vadd.f32 %v6693_v8, %v6504_v22 }
 0x15a   :  { %v1442_v19 = vmax.f32 %v760_v46, 0.0  ;;  %v1447_v53 = vmax.f32 %v774_v61, 0.0 }
 0x15b   :  { %v6789_v16 = vpop.f32.mrb[58].mxu1  ;;  %v6791_v5 = vpop.f32.mrb[58].mxu0 }
 0x15c   :  { %7989 = vst [vmem:[#allocation35_spill] sm:$0xff] %v6789_v16  ;;  %v6793_v31 = vpop.f32.mrb[59].mxu1  ;;  %1905 = vmatmul.mubr.f32.gmra.mrb[164].mxu1 %v1436_v12  ;;  %v6795_v3 = vpop.f32.mrb[59].mxu0  ;;  %v1443_v12 = vmax.f32 %v762_v28, 0.0 }
 0x15d   :  { %7990 = vst [vmem:[#allocation36_spill] sm:$0xff] %v6793_v31  ;;  %1910 = vmatprep.mubr.f32.mxu1 %v1439_v7  ;;  %v768_v7 = vadd.f32 %v6697_v39, %v6474_v62 }
 0x15f   :  { %v6801_v55 = vpop.f32.mrb[60].mxu1  ;;  %v6803_v27 = vpop.f32.mrb[60].mxu0  ;;  %v1445_v28 = vmax.f32 %v768_v7, 0.0  ;;  %v772_v7 = vadd.f32 %v6711_v60, %v6504_v22 }
 0x160   :  { %7991 = vst [vmem:[#allocation37_spill] sm:$0xff] %v6801_v55  ;;  %v6805_v16 = vpop.f32.mrb[61].mxu1  ;;  %1911 = vmatmul.mubr.f32.gmra.mrb[166].mxu1 %v1438_v14  ;;  %v6807_v31 = vpop.f32.mrb[61].mxu0 }
 0x161   :  { %7992 = vst [vmem:[#allocation38_spill] sm:$0xff] %v6805_v16  ;;  %1916 = vmatprep.mubr.f32.mxu1 %v1441_v41  ;;  %v4905_v41 = vpack.c.bf16 %v2852_v34, %v2851_v0  ;;  %v1444_v34 = vmax.f32 %v766_v59, 0.0  ;;  %v1446_v61 = vmax.f32 %v772_v7, 0.0 }
 0x163   :  { %v6819_v14 = vpop.f32.mrb[62].mxu1  ;;  %v6821_v55 = vpop.f32.mrb[62].mxu0  ;;  %4906 = vmatpush1.bf16.msra.mxu0 %v4905_v41 }
 0x164   :  { %7993 = vst [vmem:[#allocation39_spill] sm:$0xff] %v6819_v14  ;;  %v6823_v16 = vpop.f32.mrb[63].mxu1  ;;  %1917 = vmatmul.mubr.f32.gmra.mrb[168].mxu1 %v1440_v50  ;;  %v6825_v39 = vpop.f32.mrb[63].mxu0 }
 0x165   :  { %7994 = vst [vmem:[#allocation40_spill] sm:$0xff] %v6823_v16  ;;  %1922 = vmatprep.mubr.f32.mxu1 %v1443_v12  ;;  %v780_v12 = vadd.f32 %v6728_v18, %v6474_v62  ;;  %v778_v18 = vadd.f32 %v6724_v35, %v6504_v22 }
 0x167   :  { %v6831_v56 = vpop.f32.mrb[64].mxu1  ;;  %v6833_v14 = vpop.f32.mrb[64].mxu0 }
 0x168   :  { %7995 = vst [vmem:[#allocation41_spill] sm:$0xff] %v6831_v56  ;;  %v6835_v0 = vpop.f32.mrb[65].mxu1  ;;  %1923 = vmatmul.mubr.f32.gmra.mrb[170].mxu1 %v1442_v19  ;;  %v6837_v50 = vpop.f32.mrb[65].mxu0  ;;  %v786_v19 = vadd.f32 %v6740_v43, %v6474_v62  ;;  %v784_v43 = vadd.f32 %v6736_v24, %v6504_v22 }
 0x169   :  { %7996 = vst [vmem:[#allocation42_spill] sm:$0xff] %v6835_v0  ;;  %1928 = vmatprep.mubr.f32.mxu1 %v1445_v28  ;;  %v1449_v28 = vmax.f32 %v780_v12, 0.0  ;;  %v1448_v12 = vmax.f32 %v778_v18, 0.0 }
 0x16b   :  { %v6843_v8 = vpop.f32.mrb[66].mxu1  ;;  %v6845_v46 = vpop.f32.mrb[66].mxu0 }
 0x16c   :  { %7997 = vst [vmem:[#allocation43_spill] sm:$0xff] %v6843_v8  ;;  %v6847_v41 = vpop.f32.mrb[67].mxu1  ;;  %1929 = vmatmul.mubr.f32.gmra.mrb[172].mxu1 %v1444_v34  ;;  %v6849_v56 = vpop.f32.mrb[67].mxu0  ;;  %v1451_v34 = vmax.f32 %v786_v19, 0.0  ;;  %v1450_v19 = vmax.f32 %v784_v43, 0.0 }
 0x16d   :  { %7998 = vst [vmem:[#allocation44_spill] sm:$0xff] %v6847_v41  ;;  %1934 = vmatprep.mubr.f32.mxu1 %v1447_v53  ;;  %v792_v53 = vadd.f32 %v6752_v21, %v6474_v62  ;;  %v790_v21 = vadd.f32 %v6748_v37, %v6504_v22 }
 0x16f   :  { %v6855_v60 = vpop.f32.mrb[68].mxu1  ;;  %v6857_v59 = vpop.f32.mrb[68].mxu0 }
 0x170   :  { %7999 = vst [vmem:[#allocation45_spill] sm:$0xff] %v6855_v60  ;;  %v6859_v8 = vpop.f32.mrb[69].mxu1  ;;  %1935 = vmatmul.mubr.f32.gmra.mrb[174].mxu1 %v1446_v61  ;;  %v6861_v41 = vpop.f32.mrb[69].mxu0  ;;  %v1453_v61 = vmax.f32 %v792_v53, 0.0  ;;  %v1452_v53 = vmax.f32 %v790_v21, 0.0 }
 0x171   :  { %8000 = vst [vmem:[#allocation46_spill] sm:$0xff] %v6859_v8  ;;  %1940 = vmatprep.mubr.f32.mxu1 %v1449_v28  ;;  %v798_v28 = vadd.f32 %v6770_v10, %v6474_v62  ;;  %v796_v10 = vadd.f32 %v6766_v1, %v6504_v22 }
 0x173   :  { %v6867_v35 = vpop.f32.mrb[70].mxu1  ;;  %v6869_v7 = vpop.f32.mrb[70].mxu0 }
 0x174   :  { %8001 = vst [vmem:[#allocation47_spill] sm:$0xff] %v6867_v35  ;;  %v6871_v60 = vpop.f32.mrb[71].mxu1  ;;  %1941 = vmatmul.mubr.f32.gmra.mrb[176].mxu1 %v1448_v12  ;;  %v6873_v8 = vpop.f32.mrb[71].mxu0  ;;  %v1455_v12 = vmax.f32 %v798_v28, 0.0  ;;  %v1454_v28 = vmax.f32 %v796_v10, 0.0 }
 0x175   :  { %8002 = vst [vmem:[#allocation48_spill] sm:$0xff] %v6871_v60  ;;  %1946 = vmatprep.mubr.f32.mxu1 %v1451_v34  ;;  %v804_v34 = vadd.f32 %v6783_v48, %v6474_v62  ;;  %v802_v48 = vadd.f32 %v6779_v32, %v6504_v22 }
 0x177   :  { %v6879_v24 = vpop.f32.mrb[72].mxu1  ;;  %v6881_v18 = vpop.f32.mrb[72].mxu0 }
 0x178   :  { %8003 = vst [vmem:[#allocation49_spill] sm:$0xff] %v6879_v24  ;;  %v6883_v35 = vpop.f32.mrb[73].mxu1  ;;  %1947 = vmatmul.mubr.f32.gmra.mrb[178].mxu1 %v1450_v19  ;;  %v6885_v60 = vpop.f32.mrb[73].mxu0  ;;  %v1457_v19 = vmax.f32 %v804_v34, 0.0  ;;  %v1456_v34 = vmax.f32 %v802_v48, 0.0 }
 0x179   :  { %8004 = vst [vmem:[#allocation50_spill] sm:$0xff] %v6883_v35  ;;  %1952 = vmatprep.mubr.f32.mxu1 %v1453_v61  ;;  %v810_v61 = vadd.f32 %v6795_v3, %v6474_v62  ;;  %v808_v3 = vadd.f32 %v6791_v5, %v6504_v22 }
 0x17b   :  { %v6891_v37 = vpop.f32.mrb[74].mxu1  ;;  %v6893_v43 = vpop.f32.mrb[74].mxu0 }
 0x17c   :  { %8005 = vst [vmem:[#allocation51_spill] sm:$0xff] %v6891_v37  ;;  %v6895_v24 = vpop.f32.mrb[75].mxu1  ;;  %1953 = vmatmul.mubr.f32.gmra.mrb[180].mxu1 %v1452_v53  ;;  %v6897_v35 = vpop.f32.mrb[75].mxu0  ;;  %v1459_v53 = vmax.f32 %v810_v61, 0.0  ;;  %v1458_v61 = vmax.f32 %v808_v3, 0.0 }
 0x17d   :  { %8006 = vst [vmem:[#allocation52_spill] sm:$0xff] %v6895_v24  ;;  %1958 = vmatprep.mubr.f32.mxu1 %v1455_v12  ;;  %v816_v12 = vadd.f32 %v6807_v31, %v6474_v62  ;;  %v814_v31 = vadd.f32 %v6803_v27, %v6504_v22 }
 0x17f   :  { %v6903_v1 = vpop.f32.mrb[76].mxu1  ;;  %v6905_v21 = vpop.f32.mrb[76].mxu0 }
 0x180   :  { %8007 = vst [vmem:[#allocation53_spill] sm:$0xff] %v6903_v1  ;;  %v6907_v37 = vpop.f32.mrb[77].mxu1  ;;  %1959 = vmatmul.mubr.f32.gmra.mrb[182].mxu1 %v1454_v28  ;;  %v6909_v24 = vpop.f32.mrb[77].mxu0  ;;  %v1461_v28 = vmax.f32 %v816_v12, 0.0  ;;  %v1460_v12 = vmax.f32 %v814_v31, 0.0 }
 0x181   :  { %8008 = vst [vmem:[#allocation54_spill] sm:$0xff] %v6907_v37  ;;  %1964 = vmatprep.mubr.f32.mxu1 %v1457_v19  ;;  %v822_v19 = vadd.f32 %v6825_v39, %v6474_v62  ;;  %v820_v39 = vadd.f32 %v6821_v55, %v6504_v22 }
 0x183   :  { %v6915_v32 = vpop.f32.mrb[78].mxu1  ;;  %v6917_v10 = vpop.f32.mrb[78].mxu0 }
 0x184   :  { %8009 = vst [vmem:[#allocation55_spill] sm:$0xff] %v6915_v32  ;;  %v6919_v1 = vpop.f32.mrb[79].mxu1  ;;  %1965 = vmatmul.mubr.f32.gmra.mrb[184].mxu1 %v1456_v34  ;;  %v6921_v37 = vpop.f32.mrb[79].mxu0  ;;  %v1463_v34 = vmax.f32 %v822_v19, 0.0  ;;  %v1462_v19 = vmax.f32 %v820_v39, 0.0 }
 0x185   :  { %8010 = vst [vmem:[#allocation56_spill] sm:$0xff] %v6919_v1  ;;  %1970 = vmatprep.mubr.f32.mxu1 %v1459_v53  ;;  %v828_v53 = vadd.f32 %v6837_v50, %v6474_v62  ;;  %v826_v50 = vadd.f32 %v6833_v14, %v6504_v22 }
 0x187   :  { %v6927_v5 = vpop.f32.mrb[80].mxu1  ;;  %v6929_v48 = vpop.f32.mrb[80].mxu0 }
 0x188   :  { %8011 = vst [vmem:[#allocation57_spill] sm:$0xff] %v6927_v5  ;;  %v6931_v32 = vpop.f32.mrb[81].mxu1  ;;  %1971 = vmatmul.mubr.f32.gmra.mrb[186].mxu1 %v1458_v61  ;;  %v6933_v1 = vpop.f32.mrb[81].mxu0  ;;  %v1465_v61 = vmax.f32 %v828_v53, 0.0  ;;  %v1464_v53 = vmax.f32 %v826_v50, 0.0 }
 0x189   :  { %8012 = vst [vmem:[#allocation58_spill] sm:$0xff] %v6931_v32  ;;  %1976 = vmatprep.mubr.f32.mxu1 %v1461_v28  ;;  %v834_v28 = vadd.f32 %v6849_v56, %v6474_v62  ;;  %v832_v56 = vadd.f32 %v6845_v46, %v6504_v22 }
 0x18b   :  { %v6939_v27 = vpop.f32.mrb[82].mxu1  ;;  %v6941_v3 = vpop.f32.mrb[82].mxu0 }
 0x18c   :  { %8013 = vst [vmem:[#allocation59_spill] sm:$0xff] %v6939_v27  ;;  %v6943_v5 = vpop.f32.mrb[83].mxu1  ;;  %1977 = vmatmul.mubr.f32.gmra.mrb[188].mxu1 %v1460_v12  ;;  %v6945_v32 = vpop.f32.mrb[83].mxu0  ;;  %v1467_v12 = vmax.f32 %v834_v28, 0.0  ;;  %v1466_v28 = vmax.f32 %v832_v56, 0.0 }
 0x18d   :  { %8014 = vst [vmem:[#allocation60_spill] sm:$0xff] %v6943_v5  ;;  %1982 = vmatprep.mubr.f32.mxu1 %v1463_v34  ;;  %v840_v34 = vadd.f32 %v6861_v41, %v6474_v62  ;;  %v838_v41 = vadd.f32 %v6857_v59, %v6504_v22 }
 0x18f   :  { %v6951_v55 = vpop.f32.mrb[84].mxu1  ;;  %v6953_v31 = vpop.f32.mrb[84].mxu0 }
 0x190   :  { %8015 = vst [vmem:[#allocation61_spill] sm:$0xff] %v6951_v55  ;;  %v6955_v27 = vpop.f32.mrb[85].mxu1  ;;  %1983 = vmatmul.mubr.f32.gmra.mrb[190].mxu1 %v1462_v19  ;;  %v6957_v5 = vpop.f32.mrb[85].mxu0  ;;  %v1469_v19 = vmax.f32 %v840_v34, 0.0  ;;  %v1468_v34 = vmax.f32 %v838_v41, 0.0 }
 0x191   :  { %8016 = vst [vmem:[#allocation62_spill] sm:$0xff] %v6955_v27  ;;  %1988 = vmatprep.mubr.f32.mxu1 %v1465_v61  ;;  %v846_v61 = vadd.f32 %v6873_v8, %v6474_v62  ;;  %v844_v8 = vadd.f32 %v6869_v7, %v6504_v22 }
 0x193   :  { %v6963_v14 = vpop.f32.mrb[86].mxu1  ;;  %v6965_v39 = vpop.f32.mrb[86].mxu0 }
 0x194   :  { %8017 = vst [vmem:[#allocation63_spill] sm:$0xff] %v6963_v14  ;;  %v6967_v55 = vpop.f32.mrb[87].mxu1  ;;  %1989 = vmatmul.mubr.f32.gmra.mrb[192].mxu1 %v1464_v53  ;;  %v6969_v27 = vpop.f32.mrb[87].mxu0  ;;  %v1471_v53 = vmax.f32 %v846_v61, 0.0  ;;  %v1470_v61 = vmax.f32 %v844_v8, 0.0 }
 0x195   :  { %8018 = vst [vmem:[#allocation64_spill] sm:$0xff] %v6967_v55  ;;  %1994 = vmatprep.mubr.f32.mxu1 %v1467_v12  ;;  %v852_v12 = vadd.f32 %v6885_v60, %v6474_v62  ;;  %v850_v60 = vadd.f32 %v6881_v18, %v6504_v22 }
 0x197   :  { %v6975_v46 = vpop.f32.mrb[88].mxu1  ;;  %v6977_v50 = vpop.f32.mrb[88].mxu0 }
 0x198   :  { %8019 = vst [vmem:[#allocation65_spill] sm:$0xff] %v6975_v46  ;;  %v6979_v14 = vpop.f32.mrb[89].mxu1  ;;  %1995 = vmatmul.mubr.f32.gmra.mrb[194].mxu1 %v1466_v28  ;;  %v6981_v55 = vpop.f32.mrb[89].mxu0  ;;  %v1473_v28 = vmax.f32 %v852_v12, 0.0  ;;  %v1472_v12 = vmax.f32 %v850_v60, 0.0 }
 0x199   :  { %8020 = vst [vmem:[#allocation66_spill] sm:$0xff] %v6979_v14  ;;  %2000 = vmatprep.mubr.f32.mxu1 %v1469_v19  ;;  %v858_v19 = vadd.f32 %v6897_v35, %v6474_v62  ;;  %v856_v35 = vadd.f32 %v6893_v43, %v6504_v22 }
 0x19b   :  { %v6987_v59 = vpop.f32.mrb[90].mxu1  ;;  %v6989_v56 = vpop.f32.mrb[90].mxu0 }
 0x19c   :  { %8021 = vst [vmem:[#allocation67_spill] sm:$0xff] %v6987_v59  ;;  %v6991_v46 = vpop.f32.mrb[91].mxu1  ;;  %2001 = vmatmul.mubr.f32.gmra.mrb[196].mxu1 %v1468_v34  ;;  %v6993_v14 = vpop.f32.mrb[91].mxu0  ;;  %v1475_v34 = vmax.f32 %v858_v19, 0.0  ;;  %v1474_v19 = vmax.f32 %v856_v35, 0.0 }
 0x19d   :  { %8022 = vst [vmem:[#allocation68_spill] sm:$0xff] %v6991_v46  ;;  %2006 = vmatprep.mubr.f32.mxu1 %v1471_v53  ;;  %v864_v53 = vadd.f32 %v6909_v24, %v6474_v62  ;;  %v862_v24 = vadd.f32 %v6905_v21, %v6504_v22 }
 0x19f   :  { %v6999_v7 = vpop.f32.mrb[92].mxu1  ;;  %v7001_v41 = vpop.f32.mrb[92].mxu0 }
 0x1a0   :  { %8023 = vst [vmem:[#allocation69_spill] sm:$0xff] %v6999_v7  ;;  %v7003_v59 = vpop.f32.mrb[93].mxu1  ;;  %2007 = vmatmul.mubr.f32.gmra.mrb[198].mxu1 %v1470_v61  ;;  %v7005_v46 = vpop.f32.mrb[93].mxu0  ;;  %v1477_v61 = vmax.f32 %v864_v53, 0.0  ;;  %v1476_v53 = vmax.f32 %v862_v24, 0.0 }
 0x1a1   :  { %8024 = vst [vmem:[#allocation70_spill] sm:$0xff] %v7003_v59  ;;  %2012 = vmatprep.mubr.f32.mxu1 %v1473_v28  ;;  %v870_v28 = vadd.f32 %v6921_v37, %v6474_v62  ;;  %v868_v37 = vadd.f32 %v6917_v10, %v6504_v22 }
 0x1a3   :  { %v7011_v18 = vpop.f32.mrb[94].mxu1  ;;  %v7013_v8 = vpop.f32.mrb[94].mxu0 }
 0x1a4   :  { %8025 = vst [vmem:[#allocation71_spill] sm:$0xff] %v7011_v18  ;;  %v7015_v7 = vpop.f32.mrb[95].mxu1  ;;  %2013 = vmatmul.mubr.f32.gmra.mrb[200].mxu1 %v1472_v12  ;;  %v7017_v59 = vpop.f32.mrb[95].mxu0  ;;  %v1479_v12 = vmax.f32 %v870_v28, 0.0  ;;  %v1478_v28 = vmax.f32 %v868_v37, 0.0 }
 0x1a5   :  { %8026 = vst [vmem:[#allocation72_spill] sm:$0xff] %v7015_v7  ;;  %2018 = vmatprep.mubr.f32.mxu1 %v1475_v34  ;;  %v876_v34 = vadd.f32 %v6933_v1, %v6474_v62  ;;  %v874_v1 = vadd.f32 %v6929_v48, %v6504_v22 }
 0x1a7   :  { %v7023_v43 = vpop.f32.mrb[96].mxu1  ;;  %v7025_v60 = vpop.f32.mrb[96].mxu0 }
 0x1a8   :  { %8027 = vst [vmem:[#allocation73_spill] sm:$0xff] %v7023_v43  ;;  %v7027_v18 = vpop.f32.mrb[97].mxu1  ;;  %2019 = vmatmul.mubr.f32.gmra.mrb[202].mxu1 %v1474_v19  ;;  %v7029_v7 = vpop.f32.mrb[97].mxu0  ;;  %v1481_v19 = vmax.f32 %v876_v34, 0.0  ;;  %v1480_v34 = vmax.f32 %v874_v1, 0.0 }
 0x1a9   :  { %8028 = vst [vmem:[#allocation74_spill] sm:$0xff] %v7027_v18  ;;  %2024 = vmatprep.mubr.f32.mxu1 %v1477_v61  ;;  %v882_v61 = vadd.f32 %v6945_v32, %v6474_v62  ;;  %v880_v32 = vadd.f32 %v6941_v3, %v6504_v22 }
 0x1ab   :  { %v7035_v21 = vpop.f32.mrb[98].mxu1  ;;  %v7037_v35 = vpop.f32.mrb[98].mxu0 }
 0x1ac   :  { %8029 = vst [vmem:[#allocation75_spill] sm:$0xff] %v7035_v21  ;;  %v7039_v43 = vpop.f32.mrb[99].mxu1  ;;  %2025 = vmatmul.mubr.f32.gmra.mrb[204].mxu1 %v1476_v53  ;;  %v7041_v18 = vpop.f32.mrb[99].mxu0  ;;  %v1483_v53 = vmax.f32 %v882_v61, 0.0  ;;  %v1482_v61 = vmax.f32 %v880_v32, 0.0 }
 0x1ad   :  { %8030 = vst [vmem:[#allocation76_spill] sm:$0xff] %v7039_v43  ;;  %2030 = vmatprep.mubr.f32.mxu1 %v1479_v12  ;;  %v888_v12 = vadd.f32 %v6957_v5, %v6474_v62  ;;  %v886_v5 = vadd.f32 %v6953_v31, %v6504_v22 }
 0x1af   :  { %v7047_v10 = vpop.f32.mrb[100].mxu1  ;;  %v7049_v24 = vpop.f32.mrb[100].mxu0 }
 0x1b0   :  { %8031 = vst [vmem:[#allocation77_spill] sm:$0xff] %v7047_v10  ;;  %v7051_v21 = vpop.f32.mrb[101].mxu1  ;;  %2031 = vmatmul.mubr.f32.gmra.mrb[206].mxu1 %v1478_v28  ;;  %v7053_v43 = vpop.f32.mrb[101].mxu0  ;;  %v1485_v28 = vmax.f32 %v888_v12, 0.0  ;;  %v1484_v12 = vmax.f32 %v886_v5, 0.0 }
 0x1b1   :  { %8032 = vst [vmem:[#allocation78_spill] sm:$0xff] %v7051_v21  ;;  %2036 = vmatprep.mubr.f32.mxu1 %v1481_v19  ;;  %v894_v19 = vadd.f32 %v6969_v27, %v6474_v62  ;;  %v892_v27 = vadd.f32 %v6965_v39, %v6504_v22 }
 0x1b3   :  { %v7059_v48 = vpop.f32.mrb[102].mxu1  ;;  %v7061_v37 = vpop.f32.mrb[102].mxu0 }
 0x1b4   :  { %8033 = vst [vmem:[#allocation79_spill] sm:$0xff] %v7059_v48  ;;  %v7063_v10 = vpop.f32.mrb[103].mxu1  ;;  %2037 = vmatmul.mubr.f32.gmra.mrb[208].mxu1 %v1480_v34  ;;  %v7065_v21 = vpop.f32.mrb[103].mxu0  ;;  %v1487_v34 = vmax.f32 %v894_v19, 0.0  ;;  %v1486_v19 = vmax.f32 %v892_v27, 0.0 }
 0x1b5   :  { %8034 = vst [vmem:[#allocation80_spill] sm:$0xff] %v7063_v10  ;;  %2042 = vmatprep.mubr.f32.mxu1 %v1483_v53  ;;  %v900_v53 = vadd.f32 %v6981_v55, %v6474_v62  ;;  %v898_v55 = vadd.f32 %v6977_v50, %v6504_v22 }
 0x1b7   :  { %v7071_v3 = vpop.f32.mrb[104].mxu1  ;;  %v7073_v1 = vpop.f32.mrb[104].mxu0 }
 0x1b8   :  { %8035 = vst [vmem:[#allocation81_spill] sm:$0xff] %v7071_v3  ;;  %v7075_v48 = vpop.f32.mrb[105].mxu1  ;;  %2043 = vmatmul.mubr.f32.gmra.mrb[210].mxu1 %v1482_v61  ;;  %v7077_v10 = vpop.f32.mrb[105].mxu0  ;;  %v1489_v61 = vmax.f32 %v900_v53, 0.0  ;;  %v1488_v53 = vmax.f32 %v898_v55, 0.0 }
 0x1b9   :  { %8036 = vst [vmem:[#allocation82_spill] sm:$0xff] %v7075_v48  ;;  %2048 = vmatprep.mubr.f32.mxu1 %v1485_v28  ;;  %v906_v28 = vadd.f32 %v6993_v14, %v6474_v62  ;;  %v904_v14 = vadd.f32 %v6989_v56, %v6504_v22 }
 0x1bb   :  { %v7083_v31 = vpop.f32.mrb[106].mxu1  ;;  %v7085_v32 = vpop.f32.mrb[106].mxu0 }
 0x1bc   :  { %8037 = vst [vmem:[#allocation83_spill] sm:$0xff] %v7083_v31  ;;  %v7087_v3 = vpop.f32.mrb[107].mxu1  ;;  %2049 = vmatmul.mubr.f32.gmra.mrb[212].mxu1 %v1484_v12  ;;  %v7089_v48 = vpop.f32.mrb[107].mxu0  ;;  %v1491_v12 = vmax.f32 %v906_v28, 0.0  ;;  %v1490_v28 = vmax.f32 %v904_v14, 0.0 }
 0x1bd   :  { %8038 = vst [vmem:[#allocation84_spill] sm:$0xff] %v7087_v3  ;;  %2054 = vmatprep.mubr.f32.mxu1 %v1487_v34  ;;  %v912_v34 = vadd.f32 %v7005_v46, %v6474_v62  ;;  %v910_v46 = vadd.f32 %v7001_v41, %v6504_v22 }
 0x1bf   :  { %v7095_v39 = vpop.f32.mrb[108].mxu1  ;;  %v7097_v5 = vpop.f32.mrb[108].mxu0 }
 0x1c0   :  { %8039 = vst [vmem:[#allocation85_spill] sm:$0xff] %v7095_v39  ;;  %v7099_v31 = vpop.f32.mrb[109].mxu1  ;;  %2055 = vmatmul.mubr.f32.gmra.mrb[214].mxu1 %v1486_v19  ;;  %v7101_v3 = vpop.f32.mrb[109].mxu0  ;;  %v1493_v19 = vmax.f32 %v912_v34, 0.0  ;;  %v1492_v34 = vmax.f32 %v910_v46, 0.0 }
 0x1c1   :  { %8040 = vst [vmem:[#allocation86_spill] sm:$0xff] %v7099_v31  ;;  %2060 = vmatprep.mubr.f32.mxu1 %v1489_v61  ;;  %v918_v61 = vadd.f32 %v7017_v59, %v6474_v62  ;;  %v916_v59 = vadd.f32 %v7013_v8, %v6504_v22 }
 0x1c3   :  { %v7107_v50 = vpop.f32.mrb[110].mxu1  ;;  %v7109_v27 = vpop.f32.mrb[110].mxu0 }
 0x1c4   :  { %8041 = vst [vmem:[#allocation87_spill] sm:$0xff] %v7107_v50  ;;  %v7111_v39 = vpop.f32.mrb[111].mxu1  ;;  %2061 = vmatmul.mubr.f32.gmra.mrb[216].mxu1 %v1488_v53  ;;  %v7113_v31 = vpop.f32.mrb[111].mxu0  ;;  %v1495_v53 = vmax.f32 %v918_v61, 0.0  ;;  %v1494_v61 = vmax.f32 %v916_v59, 0.0 }
 0x1c5   :  { %8042 = vst [vmem:[#allocation88_spill] sm:$0xff] %v7111_v39  ;;  %2066 = vmatprep.mubr.f32.mxu1 %v1491_v12  ;;  %v924_v12 = vadd.f32 %v7029_v7, %v6474_v62  ;;  %v922_v7 = vadd.f32 %v7025_v60, %v6504_v22 }
 0x1c7   :  { %v7119_v56 = vpop.f32.mrb[112].mxu1  ;;  %v7121_v55 = vpop.f32.mrb[112].mxu0 }
 0x1c8   :  { %8043 = vst [vmem:[#allocation89_spill] sm:$0xff] %v7119_v56  ;;  %v7123_v50 = vpop.f32.mrb[113].mxu1  ;;  %2067 = vmatmul.mubr.f32.gmra.mrb[218].mxu1 %v1490_v28  ;;  %v7125_v39 = vpop.f32.mrb[113].mxu0  ;;  %v1497_v28 = vmax.f32 %v924_v12, 0.0  ;;  %v1496_v12 = vmax.f32 %v922_v7, 0.0 }
 0x1c9   :  { %8044 = vst [vmem:[#allocation90_spill] sm:$0xff] %v7123_v50  ;;  %2072 = vmatprep.mubr.f32.mxu1 %v1493_v19  ;;  %v930_v19 = vadd.f32 %v7041_v18, %v6474_v62  ;;  %v928_v18 = vadd.f32 %v7037_v35, %v6504_v22 }
 0x1cb   :  { %v7131_v41 = vpop.f32.mrb[114].mxu1  ;;  %v7133_v14 = vpop.f32.mrb[114].mxu0 }
 0x1cc   :  { %8045 = vst [vmem:[#allocation91_spill] sm:$0xff] %v7131_v41  ;;  %v7135_v56 = vpop.f32.mrb[115].mxu1  ;;  %2073 = vmatmul.mubr.f32.gmra.mrb[220].mxu1 %v1492_v34  ;;  %v7137_v50 = vpop.f32.mrb[115].mxu0  ;;  %v1499_v34 = vmax.f32 %v930_v19, 0.0  ;;  %v1498_v19 = vmax.f32 %v928_v18, 0.0 }
 0x1cd   :  { %8046 = vst [vmem:[#allocation92_spill] sm:$0xff] %v7135_v56  ;;  %2078 = vmatprep.mubr.f32.mxu1 %v1495_v53  ;;  %v936_v53 = vadd.f32 %v7053_v43, %v6474_v62  ;;  %v934_v43 = vadd.f32 %v7049_v24, %v6504_v22 }
 0x1cf   :  { %v7143_v8 = vpop.f32.mrb[116].mxu1  ;;  %v7145_v46 = vpop.f32.mrb[116].mxu0 }
 0x1d0   :  { %8047 = vst [vmem:[#allocation93_spill] sm:$0xff] %v7143_v8  ;;  %v7147_v41 = vpop.f32.mrb[117].mxu1  ;;  %2079 = vmatmul.mubr.f32.gmra.mrb[222].mxu1 %v1494_v61  ;;  %v7149_v56 = vpop.f32.mrb[117].mxu0  ;;  %v1501_v61 = vmax.f32 %v936_v53, 0.0  ;;  %v1500_v53 = vmax.f32 %v934_v43, 0.0 }
 0x1d1   :  { %8048 = vst [vmem:[#allocation94_spill] sm:$0xff] %v7147_v41  ;;  %2084 = vmatprep.mubr.f32.mxu1 %v1497_v28  ;;  %v942_v28 = vadd.f32 %v7065_v21, %v6474_v62  ;;  %v940_v21 = vadd.f32 %v7061_v37, %v6504_v22 }
 0x1d3   :  { %v7155_v60 = vpop.f32.mrb[118].mxu1  ;;  %v7157_v59 = vpop.f32.mrb[118].mxu0 }
 0x1d4   :  { %8049 = vst [vmem:[#allocation95_spill] sm:$0xff] %v7155_v60  ;;  %v7159_v8 = vpop.f32.mrb[119].mxu1  ;;  %2085 = vmatmul.mubr.f32.gmra.mrb[224].mxu1 %v1496_v12  ;;  %v7161_v41 = vpop.f32.mrb[119].mxu0  ;;  %v1503_v12 = vmax.f32 %v942_v28, 0.0  ;;  %v1502_v28 = vmax.f32 %v940_v21, 0.0 }
 0x1d5   :  { %8050 = vst [vmem:[#allocation96_spill] sm:$0xff] %v7159_v8  ;;  %2090 = vmatprep.mubr.f32.mxu1 %v1499_v34  ;;  %v948_v34 = vadd.f32 %v7077_v10, %v6474_v62  ;;  %v946_v10 = vadd.f32 %v7073_v1, %v6504_v22  ;;  %v952_v1 = vadd.f32 %v7085_v32, %v6504_v22 }
 0x1d6   :  { %v966_v32 = vadd.f32 %v7113_v31, %v6474_v62  ;;  %v964_v31 = vadd.f32 %v7109_v27, %v6504_v22 }
 0x1d7   :  { %v7167_v35 = vpop.f32.mrb[120].mxu1  ;;  %v7169_v7 = vpop.f32.mrb[120].mxu0  ;;  %v1504_v21 = vmax.f32 %v946_v10, 0.0 }
 0x1d8   :  { %8051 = vst [vmem:[#allocation97_spill] sm:$0xff] %v7167_v35  ;;  %v7171_v60 = vpop.f32.mrb[121].mxu1  ;;  %2091 = vmatmul.mubr.f32.gmra.mrb[226].mxu1 %v1498_v19  ;;  %v7173_v8 = vpop.f32.mrb[121].mxu0  ;;  %v1505_v19 = vmax.f32 %v948_v34, 0.0  ;;  %v1510_v27 = vmax.f32 %v964_v31, 0.0 }
 0x1d9   :  { %8052 = vst [vmem:[#allocation98_spill] sm:$0xff] %v7171_v60  ;;  %2096 = vmatprep.mubr.f32.mxu1 %v1501_v61  ;;  %v954_v61 = vadd.f32 %v7089_v48, %v6474_v62  ;;  %v1720_v48 = vld [vmem:[%s7948_s4] sm:$0x3] }
 0x1db   :  { %v7179_v24 = vpop.f32.mrb[122].mxu1  ;;  %v7181_v18 = vpop.f32.mrb[122].mxu0  ;;  %v1507_v34 = vmax.f32 %v954_v61, 0.0  ;;  %v8060_v61 = vsub.s32 1, %v6424_v44 }
 0x1dc   :  { %8053 = vst [vmem:[#allocation99_spill] sm:$0xff] %v7179_v24  ;;  %v7183_v35 = vpop.f32.mrb[123].mxu1  ;;  %2097 = vmatmul.mubr.f32.gmra.mrb[228].mxu1 %v1500_v53  ;;  %v7185_v60 = vpop.f32.mrb[123].mxu0 }
 0x1dd   :  { %8054 = vst [vmem:[#allocation100_spill] sm:$0xff] %v7183_v35  ;;  %2102 = vmatprep.mubr.f32.mxu1 %v1503_v12  ;;  %v960_v12 = vadd.f32 %v7101_v3, %v6474_v62  ;;  %v7220_v0 = vrot.slane %v1720_v48, %v8060_v61 }
 0x1df   :  { %v7191_v37 = vpop.f32.mrb[124].mxu1  ;;  %v7193_v43 = vpop.f32.mrb[124].mxu0  ;;  %v1509_v10 = vmax.f32 %v960_v12, 0.0 }
 0x1e0   :  { %8055 = vst [vmem:[#allocation101_spill] sm:$0xff] %v7191_v37  ;;  %v7195_v24 = vpop.f32.mrb[125].mxu1  ;;  %2103 = vmatmul.mubr.f32.gmra.mrb[230].mxu1 %v1502_v28  ;;  %v7197_v35 = vpop.f32.mrb[125].mxu0 }
 0x1e1   :  { %8056 = vst [vmem:[#allocation102_spill] sm:$0xff] %v7195_v24  ;;  %2108 = vmatprep.mubr.f32.mxu1 %v1505_v19  ;;  %v8059_v19 = vsub.s32 0, %v6424_v44  ;;  %v972_v44 = vadd.f32 %v7125_v39, %v6474_v62 }
 0x1e3   :  { %v7206_v53 = vpop.f32.mrb[126].mxu1  ;;  %v7208_v37 = vpop.f32.mrb[126].mxu0  ;;  %v7214_v24 = vrot.slane %v1720_v48, %v8059_v19  ;;  %v1511_v48 = vmax.f32 %v966_v32, 0.0  ;;  %v1513_v39 = vmax.f32 %v972_v44, 0.0  ;;  %v970_v32 = vadd.f32 %v7121_v55, %v6504_v22 }
 0x1e4   :  { %8057 = vst [vmem:[#allocation103_spill] sm:$0xff] %v7206_v53  ;;  %v7210_v28 = vpop.f32.mrb[127].mxu1  ;;  %2109 = vmatmul.mubr.f32.gmra.mrb[232].mxu1 %v1504_v21  ;;  %v7216_v3 = vpop.f32.mrb[127].mxu0  ;;  %v958_v53 = vadd.f32 %v7097_v5, %v6504_v22  ;;  %v976_v55 = vadd.f32 %v7133_v14, %v6504_v22  ;;  %v982_v14 = vadd.f32 %v7145_v46, %v6504_v22 }
 0x1e5   :  { %8058 = vst [vmem:[#allocation104_spill] sm:$0xff] %v7210_v28  ;;  %2114 = vmatprep.mubr.f32.mxu1 %v1507_v34  ;;  %v1506_v28 = vmax.f32 %v952_v1, 0.0  ;;  %v988_v46 = vadd.f32 %v7157_v59, %v6504_v22  ;;  %v994_v59 = vadd.f32 %v7169_v7, %v6504_v22  ;;  %v1000_v7 = vadd.f32 %v7181_v18, %v6504_v22 }
 0x1e6   :  { %v1508_v12 = vmax.f32 %v958_v53, 0.0  ;;  %v1006_v18 = vadd.f32 %v7193_v43, %v6504_v22  ;;  %v1020_v43 = vadd.f32 %v6313_v4, %v6474_v62 }
 0x1e7   :  { %v1798_v21 = vpop.f32.mrb[128].mxu1 }
 0x1e8   :  { %v1799_v16 = vadd.f32 %v1798_v21, %v7214_v24  ;;  %v1800_v19 = vpop.f32.mrb[129].mxu1  ;;  %2115 = vmatmul.mubr.f32.gmra.mrb[234].mxu1 %v1506_v28 }
 0x1e9   :  { %v1801_v51 = vadd.f32 %v1800_v19, %v7220_v0  ;;  %2120 = vmatprep.mubr.f32.mxu1 %v1509_v10  ;;  %v978_v10 = vadd.f32 %v7137_v50, %v6474_v62  ;;  %v984_v50 = vadd.f32 %v7149_v56, %v6474_v62  ;;  %v990_v56 = vadd.f32 %v7161_v41, %v6474_v62 }
 0x1ea   :  { %v2565_v5 = vmax.f32 %v1799_v16, 0.0  ;;  %v996_v41 = vadd.f32 %v7173_v8, %v6474_v62  ;;  %v1002_v8 = vadd.f32 %v7185_v60, %v6474_v62  ;;  %v1008_v60 = vadd.f32 %v7197_v35, %v6474_v62 }
 0x1eb   :  { %v2566_v34 = vmax.f32 %v1801_v51, 0.0  ;;  %v1804_v61 = vpop.f32.mrb[130].mxu1  ;;  %v1515_v44 = vmax.f32 %v978_v10, 0.0  ;;  %v1514_v10 = vmax.f32 %v976_v55, 0.0  ;;  %v1014_v35 = vadd.f32 %v7216_v3, %v6474_v62 }
 0x1ec   :  { %v1805_v1 = vadd.f32 %v1804_v61, %v7214_v24  ;;  %v1806_v52 = vpop.f32.mrb[131].mxu1  ;;  %2121 = vmatmul.mubr.f32.gmra.mrb[236].mxu1 %v1508_v12  ;;  %v1012_v3 = vadd.f32 %v7208_v37, %v6504_v22 }
 0x1ed   :  { %v1807_v28 = vadd.f32 %v1806_v52, %v7220_v0  ;;  %2924 = vmatprep.mubr.f32.mxu0 %v2566_v34  ;;  %2126 = vmatprep.mubr.f32.mxu1 %v1511_v48  ;;  %v1512_v48 = vmax.f32 %v970_v32, 0.0 }
 0x1ee   :  { %2925 = vmatmul.mubr.f32.vlgmr.msra.gmra.mrb[128].mxu0 %v2565_v5  ;;  %v2567_v16 = vmax.f32 %v1805_v1, 0.0  ;;  %v1526_v37 = vmax.f32 %v1012_v3, 0.0 }
 0x1ef   :  { %v2568_v51 = vmax.f32 %v1807_v28, 0.0  ;;  %v1810_v53 = vpop.f32.mrb[132].mxu1  ;;  %v1517_v28 = vmax.f32 %v984_v50, 0.0 }
 0x1f0   :  { %v1811_v21 = vadd.f32 %v1810_v53, %v7214_v24  ;;  %v1812_v19 = vpop.f32.mrb[133].mxu1  ;;  %2127 = vmatmul.mubr.f32.gmra.mrb[238].mxu1 %v1510_v27 }
 0x1f1   :  { %v1813_v52 = vadd.f32 %v1812_v19, %v7220_v0  ;;  %2929 = vmatprep.mubr.f32.mxu0 %v2568_v51  ;;  %2132 = vmatprep.mubr.f32.mxu1 %v1513_v39  ;;  %v1516_v19 = vmax.f32 %v982_v14, 0.0 }
 0x1f2   :  { %2930 = vmatmul.mubr.f32.gmra.mrb[130].mxu0 %v2567_v16  ;;  %v2569_v34 = vmax.f32 %v1811_v21, 0.0  ;;  %v1519_v21 = vmax.f32 %v990_v56, 0.0 }
 0x1f3   :  { %v2570_v31 = vmax.f32 %v1813_v52, 0.0  ;;  %v1816_v12 = vpop.f32.mrb[134].mxu1 }
 0x1f4   :  { %v1817_v61 = vadd.f32 %v1816_v12, %v7214_v24  ;;  %v1818_v5 = vpop.f32.mrb[135].mxu1  ;;  %2133 = vmatmul.mubr.f32.gmra.mrb[240].mxu1 %v1512_v48  ;;  %v1521_v12 = vmax.f32 %v996_v41, 0.0 }
 0x1f5   :  { %v1819_v1 = vadd.f32 %v1818_v5, %v7220_v0  ;;  %2934 = vmatprep.mubr.f32.mxu0 %v2570_v31  ;;  %2138 = vmatprep.mubr.f32.mxu1 %v1515_v44 }
 0x1f6   :  { %2935 = vmatmul.mubr.f32.gmra.mrb[132].mxu0 %v2569_v34  ;;  %v2571_v27 = vmax.f32 %v1817_v61, 0.0  ;;  %v1518_v34 = vmax.f32 %v988_v46, 0.0  ;;  %v1522_v46 = vmax.f32 %v1000_v7, 0.0 }
 0x1f7   :  { %v2572_v39 = vmax.f32 %v1819_v1, 0.0  ;;  %v1822_v32 = vpop.f32.mrb[136].mxu1 }
 0x1f8   :  { %v1823_v51 = vadd.f32 %v1822_v32, %v7214_v24  ;;  %v1824_v53 = vpop.f32.mrb[137].mxu1  ;;  %2139 = vmatmul.mubr.f32.gmra.mrb[242].mxu1 %v1514_v10  ;;  %v1523_v10 = vmax.f32 %v1002_v8, 0.0  ;;  %v1524_v8 = vmax.f32 %v1006_v18, 0.0 }
 0x1f9   :  { %v1825_v16 = vadd.f32 %v1824_v53, %v7220_v0  ;;  %2939 = vmatprep.mubr.f32.mxu0 %v2572_v39  ;;  %2144 = vmatprep.mubr.f32.mxu1 %v1517_v28  ;;  %v1520_v39 = vmax.f32 %v994_v59, 0.0 }
 0x1fa   :  { %2940 = vmatmul.mubr.f32.gmra.mrb[134].mxu0 %v2571_v27  ;;  %v2573_v44 = vmax.f32 %v1823_v51, 0.0 }
 0x1fb   :  { %v2574_v52 = vmax.f32 %v1825_v16, 0.0  ;;  %v1828_v50 = vpop.f32.mrb[138].mxu1 }
 0x1fc   :  { %v1829_v55 = vadd.f32 %v1828_v50, %v7214_v24  ;;  %v1830_v48 = vpop.f32.mrb[139].mxu1  ;;  %2145 = vmatmul.mubr.f32.gmra.mrb[244].mxu1 %v1516_v19 }
 0x1fd   :  { %v1831_v31 = vadd.f32 %v1830_v48, %v7220_v0  ;;  %2944 = vmatprep.mubr.f32.mxu0 %v2574_v52  ;;  %2150 = vmatprep.mubr.f32.mxu1 %v1519_v21  ;;  %v1525_v21 = vmax.f32 %v1008_v60, 0.0  ;;  %v1529_v60 = vmax.f32 %v1020_v43, 0.0 }
 0x1fe   :  { %2945 = vmatmul.mubr.f32.gmra.mrb[136].mxu0 %v2573_v44  ;;  %v2575_v1 = vmax.f32 %v1829_v55, 0.0 }
 0x1ff   :  { %v2576_v61 = vmax.f32 %v1831_v31, 0.0  ;;  %v1834_v5 = vpop.f32.mrb[140].mxu1  ;;  %v1527_v31 = vmax.f32 %v1014_v35, 0.0 }
 0x200   :  { %v1835_v56 = vadd.f32 %v1834_v5, %v7214_v24  ;;  %v1836_v28 = vpop.f32.mrb[141].mxu1  ;;  %2151 = vmatmul.mubr.f32.gmra.mrb[246].mxu1 %v1518_v34 }
 0x201   :  { %v1837_v14 = vadd.f32 %v1836_v28, %v7220_v0  ;;  %2949 = vmatprep.mubr.f32.mxu0 %v2576_v61  ;;  %2156 = vmatprep.mubr.f32.mxu1 %v1521_v12  ;;  %v1026_v28 = vadd.f32 %v6331_v11, %v6474_v62  ;;  %v1032_v11 = vadd.f32 %v6349_v17, %v6474_v62 }
 0x202   :  { %2950 = vmatmul.mubr.f32.gmra.mrb[138].mxu0 %v2575_v1  ;;  %v2577_v51 = vmax.f32 %v1835_v56, 0.0  ;;  %v1018_v56 = vadd.f32 %v6308_v2, %v6504_v22  ;;  %v1024_v2 = vadd.f32 %v6327_v9, %v6504_v22  ;;  %v1030_v9 = vadd.f32 %v6345_v15, %v6504_v22 }
 0x203   :  { %v2578_v32 = vmax.f32 %v1837_v14, 0.0  ;;  %v1840_v27 = vpop.f32.mrb[142].mxu1  ;;  %v1038_v17 = vadd.f32 %v6373_v26, %v6474_v62  ;;  %v1036_v15 = vadd.f32 %v6369_v23, %v6504_v22  ;;  %v1044_v26 = vadd.f32 %v6392_v33, %v6474_v62 }
 0x204   :  { %v1841_v53 = vadd.f32 %v1840_v27, %v7214_v24  ;;  %v1842_v16 = vpop.f32.mrb[143].mxu1  ;;  %2157 = vmatmul.mubr.f32.gmra.mrb[248].mxu1 %v1520_v39  ;;  %v1528_v27 = vmax.f32 %v1018_v56, 0.0  ;;  %v1532_v3 = vmax.f32 %v1030_v9, 0.0  ;;  %v1042_v23 = vadd.f32 %v6387_v30, %v6504_v22 }
 0x205   :  { %v1843_v41 = vadd.f32 %v1842_v16, %v7220_v0  ;;  %2954 = vmatprep.mubr.f32.mxu0 %v2578_v32  ;;  %2162 = vmatprep.mubr.f32.mxu1 %v1523_v10  ;;  %v1531_v16 = vmax.f32 %v1026_v28, 0.0  ;;  %v1050_v33 = vadd.f32 %v6410_v40, %v6474_v62  ;;  %v1537_v28 = vmax.f32 %v1044_v26, 0.0 }
 0x206   :  { %2955 = vmatmul.mubr.f32.gmra.mrb[140].mxu0 %v2577_v51  ;;  %v2579_v50 = vmax.f32 %v1841_v53, 0.0  ;;  %v1048_v30 = vadd.f32 %v6406_v38, %v6504_v22  ;;  %v1056_v40 = vadd.f32 %v6430_v47, %v6474_v62  ;;  %v1054_v38 = vadd.f32 %v6426_v45, %v6504_v22 }
 0x207   :  { %v2580_v19 = vmax.f32 %v1843_v41, 0.0  ;;  %v1846_v52 = vpop.f32.mrb[144].mxu1  ;;  %v1062_v47 = vadd.f32 %v6458_v58, %v6474_v62  ;;  %v1060_v45 = vadd.f32 %v6451_v54, %v6504_v22  ;;  %v1068_v58 = vadd.f32 %v6482_v6, %v6474_v62 }
 0x208   :  { %v1847_v44 = vadd.f32 %v1846_v52, %v7214_v24  ;;  %v1848_v55 = vpop.f32.mrb[145].mxu1  ;;  %2163 = vmatmul.mubr.f32.gmra.mrb[250].mxu1 %v1522_v46  ;;  %v1530_v46 = vmax.f32 %v1024_v2, 0.0  ;;  %v1066_v54 = vadd.f32 %v6476_v63, %v6504_v22  ;;  %v1074_v6 = vadd.f32 %v6506_v25, %v6474_v62 }
 0x209   :  { %v1849_v48 = vadd.f32 %v1848_v55, %v7220_v0  ;;  %2959 = vmatprep.mubr.f32.mxu0 %v2580_v19  ;;  %2168 = vmatprep.mubr.f32.mxu1 %v1525_v21  ;;  %v1072_v63 = vadd.f32 %v6498_v20, %v6504_v22  ;;  %v1080_v25 = vadd.f32 %v6528_v49, %v6474_v62 }
 0x20a   :  { %2960 = vmatmul.mubr.f32.gmra.mrb[142].mxu0 %v2579_v50  ;;  %v2581_v34 = vmax.f32 %v1847_v44, 0.0  ;;  %v1533_v50 = vmax.f32 %v1032_v11, 0.0  ;;  %v1078_v20 = vadd.f32 %v6524_v42, %v6504_v22  ;;  %v1086_v49 = vadd.f32 %v6548_v13, %v6474_v62 }
 0x20b   :  { %v2582_v12 = vmax.f32 %v1849_v48, 0.0  ;;  %v1852_v59 = vpop.f32.mrb[146].mxu1  ;;  %v1084_v42 = vadd.f32 %v6544_v57, %v6504_v22  ;;  %v1092_v13 = vadd.f32 %v6561_v36, %v6474_v62  ;;  %v1090_v57 = vadd.f32 %v6557_v29, %v6504_v22 }
 0x20c   :  { %v1853_v61 = vadd.f32 %v1852_v59, %v7214_v24  ;;  %v1854_v5 = vpop.f32.mrb[147].mxu1  ;;  %2169 = vmatmul.mubr.f32.gmra.mrb[252].mxu1 %v1524_v8 }
 0x20d   :  { %v1855_v1 = vadd.f32 %v1854_v5, %v7220_v0  ;;  %2964 = vmatprep.mubr.f32.mxu0 %v2582_v12  ;;  %2174 = vmatprep.mubr.f32.mxu1 %v1527_v31  ;;  %v1535_v12 = vmax.f32 %v1038_v17, 0.0 }
 0x20e   :  { %2965 = vmatmul.mubr.f32.gmra.mrb[144].mxu0 %v2581_v34  ;;  %v2583_v10 = vmax.f32 %v1853_v61, 0.0 }
 0x20f   :  { %v2584_v4 = vmax.f32 %v1855_v1, 0.0  ;;  %v1858_v14 = vpop.f32.mrb[148].mxu1  ;;  %v1534_v1 = vmax.f32 %v1036_v15, 0.0  ;;  %v1542_v15 = vmax.f32 %v1060_v45, 0.0 }
 0x210   :  { %v1859_v7 = vadd.f32 %v1858_v14, %v7214_v24  ;;  %v1860_v39 = vpop.f32.mrb[149].mxu1  ;;  %2175 = vmatmul.mubr.f32.gmra.mrb[254].mxu1 %v1526_v37 }
 0x211   :  { %v1861_v32 = vadd.f32 %v1860_v39, %v7220_v0  ;;  %2180 = vmatprep.mubr.f32.mxu1 %v1529_v60  ;;  %2969 = vmatprep.mubr.f32.mxu0 %v2584_v4 }
 0x212   :  { %2970 = vmatmul.mubr.f32.gmra.mrb[146].mxu0 %v2583_v10  ;;  %v2585_v41 = vmax.f32 %v1859_v7, 0.0  ;;  %v1536_v7 = vmax.f32 %v1042_v23, 0.0 }
 0x213   :  { %v2586_v51 = vmax.f32 %v1861_v32, 0.0  ;;  %v1864_v53 = vpop.f32.mrb[150].mxu1 }
 0x214   :  { %v1865_v35 = vadd.f32 %v1864_v53, %v7214_v24  ;;  %v1866_v21 = vpop.f32.mrb[151].mxu1  ;;  %2181 = vmatmul.mubr.f32.gmra.mrb[0].mxu1 %v1528_v27  ;;  %v1539_v27 = vmax.f32 %v1050_v33, 0.0  ;;  %v1547_v33 = vmax.f32 %v1074_v6, 0.0 }
 0x215   :  { %v1867_v18 = vadd.f32 %v1866_v21, %v7220_v0  ;;  %2186 = vmatprep.mubr.f32.mxu1 %v1531_v16  ;;  %2974 = vmatprep.mubr.f32.mxu0 %v2586_v51  ;;  %v1538_v16 = vmax.f32 %v1048_v30, 0.0  ;;  %v1541_v21 = vmax.f32 %v1056_v40, 0.0 }
 0x216   :  { %2975 = vmatmul.mubr.f32.gmra.mrb[148].mxu0 %v2585_v41  ;;  %v2587_v44 = vmax.f32 %v1865_v35, 0.0 }
 0x217   :  { %v2588_v19 = vmax.f32 %v1867_v18, 0.0  ;;  %v1870_v52 = vpop.f32.mrb[152].mxu1 }
 0x218   :  { %v1871_v55 = vadd.f32 %v1870_v52, %v7214_v24  ;;  %v1872_v48 = vpop.f32.mrb[153].mxu1  ;;  %2187 = vmatmul.mubr.f32.gmra.mrb[2].mxu1 %v1530_v46 }
 0x219   :  { %v1873_v31 = vadd.f32 %v1872_v48, %v7220_v0  ;;  %2192 = vmatprep.mubr.f32.mxu1 %v1533_v50  ;;  %2979 = vmatprep.mubr.f32.mxu0 %v2588_v19  ;;  %v1540_v19 = vmax.f32 %v1054_v38, 0.0 }
 0x21a   :  { %2980 = vmatmul.mubr.f32.gmra.mrb[150].mxu0 %v2587_v44  ;;  %v2589_v59 = vmax.f32 %v1871_v55, 0.0  ;;  %v1543_v44 = vmax.f32 %v1062_v47, 0.0 }
 0x21b   :  { %v2590_v8 = vmax.f32 %v1873_v31, 0.0  ;;  %v1876_v43 = vpop.f32.mrb[154].mxu1 }
 0x21c   :  { %v1877_v34 = vadd.f32 %v1876_v43, %v7214_v24  ;;  %v1878_v61 = vpop.f32.mrb[155].mxu1  ;;  %2193 = vmatmul.mubr.f32.gmra.mrb[4].mxu1 %v1532_v3  ;;  %v1545_v43 = vmax.f32 %v1068_v58, 0.0  ;;  %v1552_v58 = vmax.f32 %v1090_v57, 0.0 }
 0x21d   :  { %v1879_v5 = vadd.f32 %v1878_v61, %v7220_v0  ;;  %2198 = vmatprep.mubr.f32.mxu1 %v1535_v12  ;;  %2984 = vmatprep.mubr.f32.mxu0 %v2590_v8 }
 0x21e   :  { %2985 = vmatmul.mubr.f32.gmra.mrb[152].mxu0 %v2589_v59  ;;  %v2591_v4 = vmax.f32 %v1877_v34, 0.0 }
 0x21f   :  { %v2592_v56 = vmax.f32 %v1879_v5, 0.0  ;;  %v1882_v37 = vpop.f32.mrb[156].mxu1  ;;  %v1544_v5 = vmax.f32 %v1066_v54, 0.0 }
 0x220   :  { %v1883_v14 = vadd.f32 %v1882_v37, %v7214_v24  ;;  %v1884_v60 = vpop.f32.mrb[157].mxu1  ;;  %2199 = vmatmul.mubr.f32.gmra.mrb[6].mxu1 %v1534_v1 }
 0x221   :  { %v1885_v10 = vadd.f32 %v1884_v60, %v7220_v0  ;;  %2204 = vmatprep.mubr.f32.mxu1 %v1537_v28  ;;  %2989 = vmatprep.mubr.f32.mxu0 %v2592_v56 }
 0x222   :  { %2990 = vmatmul.mubr.f32.gmra.mrb[154].mxu0 %v2591_v4  ;;  %v2593_v2 = vmax.f32 %v1883_v14, 0.0  ;;  %v1546_v14 = vmax.f32 %v1072_v63, 0.0 }
 0x223   :  { %v2594_v39 = vmax.f32 %v1885_v10, 0.0  ;;  %v1888_v32 = vpop.f32.mrb[158].mxu1 }
 0x224   :  { %v1889_v11 = vadd.f32 %v1888_v32, %v7214_v24  ;;  %v1890_v51 = vpop.f32.mrb[159].mxu1  ;;  %2205 = vmatmul.mubr.f32.gmra.mrb[8].mxu1 %v1536_v7  ;;  %v1549_v7 = vmax.f32 %v1080_v25, 0.0 }
 0x225   :  { %v1891_v53 = vadd.f32 %v1890_v51, %v7220_v0  ;;  %2210 = vmatprep.mubr.f32.mxu1 %v1539_v27  ;;  %2994 = vmatprep.mubr.f32.mxu0 %v2594_v39  ;;  %v1548_v27 = vmax.f32 %v1078_v20, 0.0  ;;  %v1551_v51 = vmax.f32 %v1086_v49, 0.0 }
 0x226   :  { %2995 = vmatmul.mubr.f32.gmra.mrb[156].mxu0 %v2593_v2  ;;  %v2595_v18 = vmax.f32 %v1889_v11, 0.0 }
 0x227   :  { %v2596_v41 = vmax.f32 %v1891_v53, 0.0  ;;  %v1894_v35 = vpop.f32.mrb[160].mxu1 }
 0x228   :  { %v1895_v46 = vadd.f32 %v1894_v35, %v7214_v24  ;;  %v1896_v9 = vpop.f32.mrb[161].mxu1  ;;  %2211 = vmatmul.mubr.f32.gmra.mrb[10].mxu1 %v1538_v16  ;;  %v8061_v35 = vld [vmem:[#allocation4_spill] sm:$0xff] }
 0x229   :  { %v1897_v17 = vadd.f32 %v1896_v9, %v7220_v0  ;;  %2216 = vmatprep.mubr.f32.mxu1 %v1541_v21  ;;  %2999 = vmatprep.mubr.f32.mxu0 %v2596_v41  ;;  %v1550_v41 = vmax.f32 %v1084_v42, 0.0  ;;  %v1098_v36 = vadd.f32 %v8061_v35, %v6474_v62  ;;  %v8071_v35 = vld [vmem:[#allocation14_spill] sm:$0xff] }
 0x22a   :  { %3000 = vmatmul.mubr.f32.gmra.mrb[158].mxu0 %v2595_v18  ;;  %v2597_v55 = vmax.f32 %v1895_v46, 0.0  ;;  %v1553_v46 = vmax.f32 %v1092_v13, 0.0 }
 0x22b   :  { %v2598_v52 = vmax.f32 %v1897_v17, 0.0  ;;  %v1900_v50 = vpop.f32.mrb[162].mxu1 }
 0x22c   :  { %v1901_v48 = vadd.f32 %v1900_v50, %v7214_v24  ;;  %v1902_v31 = vpop.f32.mrb[163].mxu1  ;;  %2217 = vmatmul.mubr.f32.gmra.mrb[12].mxu1 %v1540_v19  ;;  %v8063_v50 = vld [vmem:[#allocation6_spill] sm:$0xff] }
 0x22d   :  { %v1903_v3 = vadd.f32 %v1902_v31, %v7220_v0  ;;  %2222 = vmatprep.mubr.f32.mxu1 %v1543_v44  ;;  %3004 = vmatprep.mubr.f32.mxu0 %v2598_v52  ;;  %v8062_v52 = vld [vmem:[#allocation3_spill] sm:$0xff]  ;;  %v1104_v44 = vadd.f32 %v8063_v50, %v6474_v62  ;;  %v1555_v31 = vmax.f32 %v1098_v36, 0.0  ;;  %v1128_v36 = vadd.f32 %v8071_v35, %v6474_v62  ;;  %v8073_v50 = vld [vmem:[#allocation16_spill] sm:$0xff] }
 0x22e   :  { %3005 = vmatmul.mubr.f32.gmra.mrb[160].mxu0 %v2597_v55  ;;  %v2599_v12 = vmax.f32 %v1901_v48, 0.0  ;;  %v1096_v29 = vadd.f32 %v8062_v52, %v6504_v22  ;;  %v8072_v52 = vld [vmem:[#allocation13_spill] sm:$0xff]  ;;  %v8081_v35 = vld [vmem:[#allocation24_spill] sm:$0xff] }
 0x22f   :  { %v2600_v26 = vmax.f32 %v1903_v3, 0.0  ;;  %v1906_v8 = vpop.f32.mrb[164].mxu1 }
 0x230   :  { %v1907_v59 = vadd.f32 %v1906_v8, %v7214_v24  ;;  %v1908_v34 = vpop.f32.mrb[165].mxu1  ;;  %2223 = vmatmul.mubr.f32.gmra.mrb[14].mxu1 %v1542_v15  ;;  %v8064_v8 = vld [vmem:[#allocation5_spill] sm:$0xff] }
 0x231   :  { %v1909_v61 = vadd.f32 %v1908_v34, %v7220_v0  ;;  %2228 = vmatprep.mubr.f32.mxu1 %v1545_v43  ;;  %3009 = vmatprep.mubr.f32.mxu0 %v2600_v26  ;;  %v1554_v26 = vmax.f32 %v1096_v29, 0.0  ;;  %v1102_v43 = vadd.f32 %v8064_v8, %v6504_v22  ;;  %v1126_v29 = vadd.f32 %v8072_v52, %v6504_v22  ;;  %v8074_v8 = vld [vmem:[#allocation15_spill] sm:$0xff] }
 0x232   :  { %3010 = vmatmul.mubr.f32.gmra.mrb[162].mxu0 %v2599_v12  ;;  %v2601_v56 = vmax.f32 %v1907_v59, 0.0  ;;  %v8065_v12 = vld [vmem:[#allocation8_spill] sm:$0xff]  ;;  %v8082_v52 = vld [vmem:[#allocation23_spill] sm:$0xff] }
 0x233   :  { %v2602_v1 = vmax.f32 %v1909_v61, 0.0  ;;  %v1912_v23 = vpop.f32.mrb[166].mxu1  ;;  %v1110_v59 = vadd.f32 %v8065_v12, %v6474_v62  ;;  %v8075_v12 = vld [vmem:[#allocation18_spill] sm:$0xff] }
 0x234   :  { %v1913_v37 = vadd.f32 %v1912_v23, %v7214_v24  ;;  %v1914_v28 = vpop.f32.mrb[167].mxu1  ;;  %2229 = vmatmul.mubr.f32.gmra.mrb[16].mxu1 %v1544_v5  ;;  %v1557_v5 = vmax.f32 %v1104_v44, 0.0  ;;  %v1134_v44 = vadd.f32 %v8073_v50, %v6474_v62  ;;  %v8083_v50 = vld [vmem:[#allocation26_spill] sm:$0xff] }
 0x235   :  { %v1915_v4 = vadd.f32 %v1914_v28, %v7220_v0  ;;  %2234 = vmatprep.mubr.f32.mxu1 %v1547_v33  ;;  %3014 = vmatprep.mubr.f32.mxu0 %v2602_v1  ;;  %v1556_v33 = vmax.f32 %v1102_v43, 0.0  ;;  %v8067_v28 = vld [vmem:[#allocation10_spill] sm:$0xff]  ;;  %v1559_v49 = vmax.f32 %v1110_v59, 0.0  ;;  %v1132_v43 = vadd.f32 %v8074_v8, %v6504_v22  ;;  %v8084_v8 = vld [vmem:[#allocation25_spill] sm:$0xff] }
 0x236   :  { %3015 = vmatmul.mubr.f32.gmra.mrb[164].mxu0 %v2601_v56  ;;  %v2603_v30 = vmax.f32 %v1913_v37, 0.0  ;;  %v8066_v56 = vld [vmem:[#allocation7_spill] sm:$0xff]  ;;  %v1140_v59 = vadd.f32 %v8075_v12, %v6474_v62  ;;  %v8085_v12 = vld [vmem:[#allocation28_spill] sm:$0xff] }
 0x237   :  { %v2604_v60 = vmax.f32 %v1915_v4, 0.0  ;;  %v1918_v10 = vpop.f32.mrb[168].mxu1  ;;  %v1108_v37 = vadd.f32 %v8066_v56, %v6504_v22  ;;  %v1116_v4 = vadd.f32 %v8067_v28, %v6474_v62  ;;  %v8076_v56 = vld [vmem:[#allocation17_spill] sm:$0xff]  ;;  %v8077_v28 = vld [vmem:[#allocation20_spill] sm:$0xff] }
 0x238   :  { %v1919_v40 = vadd.f32 %v1918_v10, %v7214_v24  ;;  %v1920_v39 = vpop.f32.mrb[169].mxu1  ;;  %2235 = vmatmul.mubr.f32.gmra.mrb[18].mxu1 %v1546_v14 }
 0x239   :  { %v1921_v32 = vadd.f32 %v1920_v39, %v7220_v0  ;;  %2240 = vmatprep.mubr.f32.mxu1 %v1549_v7  ;;  %3019 = vmatprep.mubr.f32.mxu0 %v2604_v60  ;;  %v8068_v39 = vld [vmem:[#allocation9_spill] sm:$0xff] }
 0x23a   :  { %3020 = vmatmul.mubr.f32.gmra.mrb[166].mxu0 %v2603_v30  ;;  %v2605_v53 = vmax.f32 %v1919_v40, 0.0  ;;  %v1558_v40 = vmax.f32 %v1108_v37, 0.0  ;;  %v1138_v37 = vadd.f32 %v8076_v56, %v6504_v22  ;;  %v8086_v56 = vld [vmem:[#allocation27_spill] sm:$0xff] }
 0x23b   :  { %v2606_v2 = vmax.f32 %v1921_v32, 0.0  ;;  %v1924_v11 = vpop.f32.mrb[170].mxu1  ;;  %v1114_v32 = vadd.f32 %v8068_v39, %v6504_v22  ;;  %v8078_v39 = vld [vmem:[#allocation19_spill] sm:$0xff] }
 0x23c   :  { %v1925_v16 = vadd.f32 %v1924_v11, %v7214_v24  ;;  %v1926_v38 = vpop.f32.mrb[171].mxu1  ;;  %2241 = vmatmul.mubr.f32.gmra.mrb[20].mxu1 %v1548_v27  ;;  %v8069_v27 = vld [vmem:[#allocation12_spill] sm:$0xff]  ;;  %v1561_v11 = vmax.f32 %v1116_v4, 0.0  ;;  %v1146_v4 = vadd.f32 %v8077_v28, %v6474_v62  ;;  %v8087_v28 = vld [vmem:[#allocation30_spill] sm:$0xff] }
 0x23d   :  { %v1927_v47 = vadd.f32 %v1926_v38, %v7220_v0  ;;  %2246 = vmatprep.mubr.f32.mxu1 %v1551_v51  ;;  %3024 = vmatprep.mubr.f32.mxu0 %v2606_v2  ;;  %v1122_v42 = vadd.f32 %v8069_v27, %v6474_v62  ;;  %v8079_v27 = vld [vmem:[#allocation22_spill] sm:$0xff] }
 0x23e   :  { %3025 = vmatmul.mubr.f32.gmra.mrb[168].mxu0 %v2605_v53  ;;  %v2607_v9 = vmax.f32 %v1925_v16, 0.0 }
 0x23f   :  { %v2608_v21 = vmax.f32 %v1927_v47, 0.0  ;;  %v1930_v18 = vpop.f32.mrb[172].mxu1  ;;  %v1560_v47 = vmax.f32 %v1114_v32, 0.0  ;;  %v1144_v32 = vadd.f32 %v8078_v39, %v6504_v22  ;;  %v8088_v39 = vld [vmem:[#allocation29_spill] sm:$0xff] }
 0x240   :  { %v1931_v17 = vadd.f32 %v1930_v18, %v7214_v24  ;;  %v1932_v19 = vpop.f32.mrb[173].mxu1  ;;  %2247 = vmatmul.mubr.f32.gmra.mrb[22].mxu1 %v1550_v41  ;;  %v8070_v41 = vld [vmem:[#allocation11_spill] sm:$0xff] }
 0x241   :  { %v1933_v45 = vadd.f32 %v1932_v19, %v7220_v0  ;;  %2252 = vmatprep.mubr.f32.mxu1 %v1553_v46  ;;  %3029 = vmatprep.mubr.f32.mxu0 %v2608_v21  ;;  %v1120_v57 = vadd.f32 %v8070_v41, %v6504_v22  ;;  %v1563_v46 = vmax.f32 %v1122_v42, 0.0  ;;  %v1152_v42 = vadd.f32 %v8079_v27, %v6474_v62  ;;  %v8080_v41 = vld [vmem:[#allocation21_spill] sm:$0xff]  ;;  %v8089_v27 = vld [vmem:[#allocation32_spill] sm:$0xff] }
 0x242   :  { %3030 = vmatmul.mubr.f32.gmra.mrb[170].mxu0 %v2607_v9  ;;  %v2609_v3 = vmax.f32 %v1931_v17, 0.0 }
 0x243   :  { %v2610_v55 = vmax.f32 %v1933_v45, 0.0  ;;  %v1936_v48 = vpop.f32.mrb[174].mxu1 }
 0x244   :  { %v1937_v15 = vadd.f32 %v1936_v48, %v7214_v24  ;;  %v1938_v54 = vpop.f32.mrb[175].mxu1  ;;  %2253 = vmatmul.mubr.f32.gmra.mrb[24].mxu1 %v1552_v58  ;;  %v1562_v58 = vmax.f32 %v1120_v57, 0.0  ;;  %v1150_v57 = vadd.f32 %v8080_v41, %v6504_v22  ;;  %v8090_v41 = vld [vmem:[#allocation31_spill] sm:$0xff] }
 0x245   :  { %v1939_v6 = vadd.f32 %v1938_v54, %v7220_v0  ;;  %2258 = vmatprep.mubr.f32.mxu1 %v1555_v31  ;;  %3034 = vmatprep.mubr.f32.mxu0 %v2610_v55  ;;  %v1565_v31 = vmax.f32 %v1128_v36, 0.0  ;;  %v1158_v36 = vadd.f32 %v8081_v35, %v6474_v62  ;;  %v8091_v35 = vld [vmem:[#allocation34_spill] sm:$0xff] }
 0x246   :  { %3035 = vmatmul.mubr.f32.gmra.mrb[172].mxu0 %v2609_v3  ;;  %v2611_v63 = vmax.f32 %v1937_v15, 0.0 }
 0x247   :  { %v2612_v34 = vmax.f32 %v1939_v6, 0.0  ;;  %v1942_v61 = vpop.f32.mrb[176].mxu1 }
 0x248   :  { %v1943_v25 = vadd.f32 %v1942_v61, %v7214_v24  ;;  %v1944_v1 = vpop.f32.mrb[177].mxu1  ;;  %2259 = vmatmul.mubr.f32.gmra.mrb[26].mxu1 %v1554_v26  ;;  %v1564_v26 = vmax.f32 %v1126_v29, 0.0  ;;  %v1156_v29 = vadd.f32 %v8082_v52, %v6504_v22  ;;  %v8092_v52 = vld [vmem:[#allocation33_spill] sm:$0xff] }
 0x249   :  { %v1945_v23 = vadd.f32 %v1944_v1, %v7220_v0  ;;  %2264 = vmatprep.mubr.f32.mxu1 %v1557_v5  ;;  %3039 = vmatprep.mubr.f32.mxu0 %v2612_v34  ;;  %v1567_v5 = vmax.f32 %v1134_v44, 0.0  ;;  %v1164_v44 = vadd.f32 %v8083_v50, %v6474_v62  ;;  %v8093_v50 = vld [vmem:[#allocation36_spill] sm:$0xff] }
 0x24a   :  { %3040 = vmatmul.mubr.f32.gmra.mrb[174].mxu0 %v2611_v63  ;;  %v2613_v60 = vmax.f32 %v1943_v25, 0.0 }
 0x24b   :  { %v2614_v14 = vmax.f32 %v1945_v23, 0.0  ;;  %v1948_v20 = vpop.f32.mrb[178].mxu1 }
 0x24c   :  { %v1949_v10 = vadd.f32 %v1948_v20, %v7214_v24  ;;  %v1950_v7 = vpop.f32.mrb[179].mxu1  ;;  %2265 = vmatmul.mubr.f32.gmra.mrb[28].mxu1 %v1556_v33  ;;  %v1566_v33 = vmax.f32 %v1132_v43, 0.0  ;;  %v1162_v43 = vadd.f32 %v8084_v8, %v6504_v22  ;;  %v8094_v8 = vld [vmem:[#allocation35_spill] sm:$0xff] }
 0x24d   :  { %v1951_v30 = vadd.f32 %v1950_v7, %v7220_v0  ;;  %2270 = vmatprep.mubr.f32.mxu1 %v1559_v49  ;;  %3044 = vmatprep.mubr.f32.mxu0 %v2614_v14  ;;  %v1569_v49 = vmax.f32 %v1140_v59, 0.0  ;;  %v1170_v59 = vadd.f32 %v8085_v12, %v6474_v62  ;;  %v8095_v12 = vld [vmem:[#allocation38_spill] sm:$0xff] }
 0x24e   :  { %3045 = vmatmul.mubr.f32.gmra.mrb[176].mxu0 %v2613_v60  ;;  %v2615_v51 = vmax.f32 %v1949_v10, 0.0 }
 0x24f   :  { %v2616_v13 = vmax.f32 %v1951_v30, 0.0  ;;  %v1954_v2 = vpop.f32.mrb[180].mxu1 }
 0x250   :  { %v1955_v53 = vadd.f32 %v1954_v2, %v7214_v24  ;;  %v1956_v16 = vpop.f32.mrb[181].mxu1  ;;  %2271 = vmatmul.mubr.f32.gmra.mrb[30].mxu1 %v1558_v40  ;;  %v1568_v40 = vmax.f32 %v1138_v37, 0.0  ;;  %v1168_v37 = vadd.f32 %v8086_v56, %v6504_v22  ;;  %v8096_v56 = vld [vmem:[#allocation37_spill] sm:$0xff] }
 0x251   :  { %v1957_v38 = vadd.f32 %v1956_v16, %v7220_v0  ;;  %2276 = vmatprep.mubr.f32.mxu1 %v1561_v11  ;;  %3049 = vmatprep.mubr.f32.mxu0 %v2616_v13  ;;  %v1571_v11 = vmax.f32 %v1146_v4, 0.0  ;;  %v1176_v4 = vadd.f32 %v8087_v28, %v6474_v62  ;;  %v8097_v28 = vld [vmem:[#allocation40_spill] sm:$0xff] }
 0x252   :  { %3050 = vmatmul.mubr.f32.gmra.mrb[178].mxu0 %v2615_v51  ;;  %v2617_v9 = vmax.f32 %v1955_v53, 0.0 }
 0x253   :  { %v2618_v21 = vmax.f32 %v1957_v38, 0.0  ;;  %v1960_v18 = vpop.f32.mrb[182].mxu1 }
 0x254   :  { %v1961_v17 = vadd.f32 %v1960_v18, %v7214_v24  ;;  %v1962_v19 = vpop.f32.mrb[183].mxu1  ;;  %2277 = vmatmul.mubr.f32.gmra.mrb[32].mxu1 %v1560_v47  ;;  %v1570_v47 = vmax.f32 %v1144_v32, 0.0  ;;  %v1174_v32 = vadd.f32 %v8088_v39, %v6504_v22  ;;  %v8098_v39 = vld [vmem:[#allocation39_spill] sm:$0xff] }
 0x255   :  { %v1963_v45 = vadd.f32 %v1962_v19, %v7220_v0  ;;  %2282 = vmatprep.mubr.f32.mxu1 %v1563_v46  ;;  %3054 = vmatprep.mubr.f32.mxu0 %v2618_v21  ;;  %v1573_v46 = vmax.f32 %v1152_v42, 0.0  ;;  %v1182_v42 = vadd.f32 %v8089_v27, %v6474_v62  ;;  %v8099_v27 = vld [vmem:[#allocation42_spill] sm:$0xff] }
 0x256   :  { %3055 = vmatmul.mubr.f32.gmra.mrb[180].mxu0 %v2617_v9  ;;  %v2619_v3 = vmax.f32 %v1961_v17, 0.0 }
 0x257   :  { %v2620_v55 = vmax.f32 %v1963_v45, 0.0  ;;  %v1966_v48 = vpop.f32.mrb[184].mxu1 }
 0x258   :  { %v1967_v15 = vadd.f32 %v1966_v48, %v7214_v24  ;;  %v1968_v54 = vpop.f32.mrb[185].mxu1  ;;  %2283 = vmatmul.mubr.f32.gmra.mrb[34].mxu1 %v1562_v58  ;;  %v1572_v58 = vmax.f32 %v1150_v57, 0.0  ;;  %v1180_v57 = vadd.f32 %v8090_v41, %v6504_v22  ;;  %v8100_v41 = vld [vmem:[#allocation41_spill] sm:$0xff] }
 0x259   :  { %v1969_v6 = vadd.f32 %v1968_v54, %v7220_v0  ;;  %2288 = vmatprep.mubr.f32.mxu1 %v1565_v31  ;;  %3059 = vmatprep.mubr.f32.mxu0 %v2620_v55  ;;  %v1575_v31 = vmax.f32 %v1158_v36, 0.0  ;;  %v1188_v36 = vadd.f32 %v8091_v35, %v6474_v62  ;;  %v8101_v35 = vld [vmem:[#allocation44_spill] sm:$0xff] }
 0x25a   :  { %3060 = vmatmul.mubr.f32.gmra.mrb[182].mxu0 %v2619_v3  ;;  %v2621_v63 = vmax.f32 %v1967_v15, 0.0 }
 0x25b   :  { %v2622_v34 = vmax.f32 %v1969_v6, 0.0  ;;  %v1972_v61 = vpop.f32.mrb[186].mxu1 }
 0x25c   :  { %v1973_v25 = vadd.f32 %v1972_v61, %v7214_v24  ;;  %v1974_v1 = vpop.f32.mrb[187].mxu1  ;;  %2289 = vmatmul.mubr.f32.gmra.mrb[36].mxu1 %v1564_v26  ;;  %v1574_v26 = vmax.f32 %v1156_v29, 0.0  ;;  %v1186_v29 = vadd.f32 %v8092_v52, %v6504_v22  ;;  %v8102_v52 = vld [vmem:[#allocation43_spill] sm:$0xff] }
 0x25d   :  { %v1975_v23 = vadd.f32 %v1974_v1, %v7220_v0  ;;  %2294 = vmatprep.mubr.f32.mxu1 %v1567_v5  ;;  %3064 = vmatprep.mubr.f32.mxu0 %v2622_v34  ;;  %v1577_v5 = vmax.f32 %v1164_v44, 0.0  ;;  %v1194_v44 = vadd.f32 %v8093_v50, %v6474_v62  ;;  %v8103_v50 = vld [vmem:[#allocation46_spill] sm:$0xff] }
 0x25e   :  { %3065 = vmatmul.mubr.f32.gmra.mrb[184].mxu0 %v2621_v63  ;;  %v2623_v60 = vmax.f32 %v1973_v25, 0.0 }
 0x25f   :  { %v2624_v14 = vmax.f32 %v1975_v23, 0.0  ;;  %v1978_v20 = vpop.f32.mrb[188].mxu1 }
 0x260   :  { %v1979_v10 = vadd.f32 %v1978_v20, %v7214_v24  ;;  %v1980_v7 = vpop.f32.mrb[189].mxu1  ;;  %2295 = vmatmul.mubr.f32.gmra.mrb[38].mxu1 %v1566_v33  ;;  %v1576_v33 = vmax.f32 %v1162_v43, 0.0  ;;  %v1192_v43 = vadd.f32 %v8094_v8, %v6504_v22  ;;  %v8104_v8 = vld [vmem:[#allocation45_spill] sm:$0xff] }
 0x261   :  { %v1981_v30 = vadd.f32 %v1980_v7, %v7220_v0  ;;  %2300 = vmatprep.mubr.f32.mxu1 %v1569_v49  ;;  %3069 = vmatprep.mubr.f32.mxu0 %v2624_v14  ;;  %v1579_v49 = vmax.f32 %v1170_v59, 0.0  ;;  %v1200_v59 = vadd.f32 %v8095_v12, %v6474_v62  ;;  %v8105_v12 = vld [vmem:[#allocation48_spill] sm:$0xff] }
 0x262   :  { %3070 = vmatmul.mubr.f32.gmra.mrb[186].mxu0 %v2623_v60  ;;  %v2625_v51 = vmax.f32 %v1979_v10, 0.0 }
 0x263   :  { %v2626_v13 = vmax.f32 %v1981_v30, 0.0  ;;  %v1984_v2 = vpop.f32.mrb[190].mxu1 }
 0x264   :  { %v1985_v53 = vadd.f32 %v1984_v2, %v7214_v24  ;;  %v1986_v16 = vpop.f32.mrb[191].mxu1  ;;  %2301 = vmatmul.mubr.f32.gmra.mrb[40].mxu1 %v1568_v40  ;;  %v1578_v40 = vmax.f32 %v1168_v37, 0.0  ;;  %v1198_v37 = vadd.f32 %v8096_v56, %v6504_v22  ;;  %v8106_v56 = vld [vmem:[#allocation47_spill] sm:$0xff] }
 0x265   :  { %v1987_v38 = vadd.f32 %v1986_v16, %v7220_v0  ;;  %2306 = vmatprep.mubr.f32.mxu1 %v1571_v11  ;;  %3074 = vmatprep.mubr.f32.mxu0 %v2626_v13  ;;  %v1581_v11 = vmax.f32 %v1176_v4, 0.0  ;;  %v1206_v4 = vadd.f32 %v8097_v28, %v6474_v62  ;;  %v8107_v28 = vld [vmem:[#allocation50_spill] sm:$0xff] }
 0x266   :  { %3075 = vmatmul.mubr.f32.gmra.mrb[188].mxu0 %v2625_v51  ;;  %v2627_v9 = vmax.f32 %v1985_v53, 0.0 }
 0x267   :  { %v2628_v21 = vmax.f32 %v1987_v38, 0.0  ;;  %v1990_v18 = vpop.f32.mrb[192].mxu1 }
 0x268   :  { %v1991_v17 = vadd.f32 %v1990_v18, %v7214_v24  ;;  %v1992_v19 = vpop.f32.mrb[193].mxu1  ;;  %2307 = vmatmul.mubr.f32.gmra.mrb[42].mxu1 %v1570_v47  ;;  %v1580_v47 = vmax.f32 %v1174_v32, 0.0  ;;  %v1204_v32 = vadd.f32 %v8098_v39, %v6504_v22  ;;  %v8108_v39 = vld [vmem:[#allocation49_spill] sm:$0xff] }
 0x269   :  { %v1993_v45 = vadd.f32 %v1992_v19, %v7220_v0  ;;  %2312 = vmatprep.mubr.f32.mxu1 %v1573_v46  ;;  %3079 = vmatprep.mubr.f32.mxu0 %v2628_v21  ;;  %v1583_v46 = vmax.f32 %v1182_v42, 0.0  ;;  %v1212_v42 = vadd.f32 %v8099_v27, %v6474_v62  ;;  %v8109_v27 = vld [vmem:[#allocation52_spill] sm:$0xff] }
 0x26a   :  { %3080 = vmatmul.mubr.f32.gmra.mrb[190].mxu0 %v2627_v9  ;;  %v2629_v3 = vmax.f32 %v1991_v17, 0.0 }
 0x26b   :  { %v2630_v55 = vmax.f32 %v1993_v45, 0.0  ;;  %v1996_v48 = vpop.f32.mrb[194].mxu1 }
 0x26c   :  { %v1997_v15 = vadd.f32 %v1996_v48, %v7214_v24  ;;  %v1998_v54 = vpop.f32.mrb[195].mxu1  ;;  %2313 = vmatmul.mubr.f32.gmra.mrb[44].mxu1 %v1572_v58  ;;  %v1582_v58 = vmax.f32 %v1180_v57, 0.0  ;;  %v1210_v57 = vadd.f32 %v8100_v41, %v6504_v22  ;;  %v8110_v41 = vld [vmem:[#allocation51_spill] sm:$0xff] }
 0x26d   :  { %v1999_v6 = vadd.f32 %v1998_v54, %v7220_v0  ;;  %2318 = vmatprep.mubr.f32.mxu1 %v1575_v31  ;;  %3084 = vmatprep.mubr.f32.mxu0 %v2630_v55  ;;  %v1585_v31 = vmax.f32 %v1188_v36, 0.0  ;;  %v1218_v36 = vadd.f32 %v8101_v35, %v6474_v62  ;;  %v8111_v35 = vld [vmem:[#allocation54_spill] sm:$0xff] }
 0x26e   :  { %3085 = vmatmul.mubr.f32.gmra.mrb[192].mxu0 %v2629_v3  ;;  %v2631_v63 = vmax.f32 %v1997_v15, 0.0 }
 0x26f   :  { %v2632_v34 = vmax.f32 %v1999_v6, 0.0  ;;  %v2002_v61 = vpop.f32.mrb[196].mxu1 }
 0x270   :  { %v2003_v25 = vadd.f32 %v2002_v61, %v7214_v24  ;;  %v2004_v1 = vpop.f32.mrb[197].mxu1  ;;  %2319 = vmatmul.mubr.f32.gmra.mrb[46].mxu1 %v1574_v26  ;;  %v1584_v26 = vmax.f32 %v1186_v29, 0.0  ;;  %v1216_v29 = vadd.f32 %v8102_v52, %v6504_v22  ;;  %v8112_v52 = vld [vmem:[#allocation53_spill] sm:$0xff] }
 0x271   :  { %v2005_v23 = vadd.f32 %v2004_v1, %v7220_v0  ;;  %2324 = vmatprep.mubr.f32.mxu1 %v1577_v5  ;;  %3089 = vmatprep.mubr.f32.mxu0 %v2632_v34  ;;  %v1587_v5 = vmax.f32 %v1194_v44, 0.0  ;;  %v1224_v44 = vadd.f32 %v8103_v50, %v6474_v62  ;;  %v8113_v50 = vld [vmem:[#allocation56_spill] sm:$0xff] }
 0x272   :  { %3090 = vmatmul.mubr.f32.gmra.mrb[194].mxu0 %v2631_v63  ;;  %v2633_v60 = vmax.f32 %v2003_v25, 0.0 }
 0x273   :  { %v2634_v14 = vmax.f32 %v2005_v23, 0.0  ;;  %v2008_v20 = vpop.f32.mrb[198].mxu1 }
 0x274   :  { %v2009_v10 = vadd.f32 %v2008_v20, %v7214_v24  ;;  %v2010_v7 = vpop.f32.mrb[199].mxu1  ;;  %2325 = vmatmul.mubr.f32.gmra.mrb[48].mxu1 %v1576_v33  ;;  %v1586_v33 = vmax.f32 %v1192_v43, 0.0  ;;  %v1222_v43 = vadd.f32 %v8104_v8, %v6504_v22  ;;  %v8114_v8 = vld [vmem:[#allocation55_spill] sm:$0xff] }
 0x275   :  { %v2011_v30 = vadd.f32 %v2010_v7, %v7220_v0  ;;  %2330 = vmatprep.mubr.f32.mxu1 %v1579_v49  ;;  %3094 = vmatprep.mubr.f32.mxu0 %v2634_v14  ;;  %v1589_v49 = vmax.f32 %v1200_v59, 0.0  ;;  %v1230_v59 = vadd.f32 %v8105_v12, %v6474_v62  ;;  %v8115_v12 = vld [vmem:[#allocation58_spill] sm:$0xff] }
 0x276   :  { %3095 = vmatmul.mubr.f32.gmra.mrb[196].mxu0 %v2633_v60  ;;  %v2635_v51 = vmax.f32 %v2009_v10, 0.0 }
 0x277   :  { %v2636_v13 = vmax.f32 %v2011_v30, 0.0  ;;  %v2014_v2 = vpop.f32.mrb[200].mxu1 }
 0x278   :  { %v2015_v53 = vadd.f32 %v2014_v2, %v7214_v24  ;;  %v2016_v16 = vpop.f32.mrb[201].mxu1  ;;  %2331 = vmatmul.mubr.f32.gmra.mrb[50].mxu1 %v1578_v40  ;;  %v1588_v40 = vmax.f32 %v1198_v37, 0.0  ;;  %v1228_v37 = vadd.f32 %v8106_v56, %v6504_v22  ;;  %v8116_v56 = vld [vmem:[#allocation57_spill] sm:$0xff] }
 0x279   :  { %v2017_v38 = vadd.f32 %v2016_v16, %v7220_v0  ;;  %2336 = vmatprep.mubr.f32.mxu1 %v1581_v11  ;;  %3099 = vmatprep.mubr.f32.mxu0 %v2636_v13  ;;  %v1591_v11 = vmax.f32 %v1206_v4, 0.0  ;;  %v1236_v4 = vadd.f32 %v8107_v28, %v6474_v62  ;;  %v8117_v28 = vld [vmem:[#allocation60_spill] sm:$0xff] }
 0x27a   :  { %3100 = vmatmul.mubr.f32.gmra.mrb[198].mxu0 %v2635_v51  ;;  %v2637_v9 = vmax.f32 %v2015_v53, 0.0 }
 0x27b   :  { %v2638_v21 = vmax.f32 %v2017_v38, 0.0  ;;  %v2020_v18 = vpop.f32.mrb[202].mxu1 }
 0x27c   :  { %v2021_v17 = vadd.f32 %v2020_v18, %v7214_v24  ;;  %v2022_v19 = vpop.f32.mrb[203].mxu1  ;;  %2337 = vmatmul.mubr.f32.gmra.mrb[52].mxu1 %v1580_v47  ;;  %v1590_v47 = vmax.f32 %v1204_v32, 0.0  ;;  %v1234_v32 = vadd.f32 %v8108_v39, %v6504_v22  ;;  %v8118_v39 = vld [vmem:[#allocation59_spill] sm:$0xff] }
 0x27d   :  { %v2023_v45 = vadd.f32 %v2022_v19, %v7220_v0  ;;  %2342 = vmatprep.mubr.f32.mxu1 %v1583_v46  ;;  %3104 = vmatprep.mubr.f32.mxu0 %v2638_v21  ;;  %v1593_v46 = vmax.f32 %v1212_v42, 0.0  ;;  %v1242_v42 = vadd.f32 %v8109_v27, %v6474_v62  ;;  %v8119_v27 = vld [vmem:[#allocation62_spill] sm:$0xff] }
 0x27e   :  { %3105 = vmatmul.mubr.f32.gmra.mrb[200].mxu0 %v2637_v9  ;;  %v2639_v3 = vmax.f32 %v2021_v17, 0.0 }
 0x27f   :  { %v2640_v55 = vmax.f32 %v2023_v45, 0.0  ;;  %v2026_v48 = vpop.f32.mrb[204].mxu1 }
 0x280   :  { %v2027_v15 = vadd.f32 %v2026_v48, %v7214_v24  ;;  %v2028_v54 = vpop.f32.mrb[205].mxu1  ;;  %2343 = vmatmul.mubr.f32.gmra.mrb[54].mxu1 %v1582_v58  ;;  %v1592_v58 = vmax.f32 %v1210_v57, 0.0  ;;  %v1240_v57 = vadd.f32 %v8110_v41, %v6504_v22  ;;  %v8120_v41 = vld [vmem:[#allocation61_spill] sm:$0xff] }
 0x281   :  { %v2029_v6 = vadd.f32 %v2028_v54, %v7220_v0  ;;  %2348 = vmatprep.mubr.f32.mxu1 %v1585_v31  ;;  %3109 = vmatprep.mubr.f32.mxu0 %v2640_v55  ;;  %v1595_v31 = vmax.f32 %v1218_v36, 0.0  ;;  %v1248_v36 = vadd.f32 %v8111_v35, %v6474_v62  ;;  %v8121_v35 = vld [vmem:[#allocation64_spill] sm:$0xff] }
 0x282   :  { %3110 = vmatmul.mubr.f32.gmra.mrb[202].mxu0 %v2639_v3  ;;  %v2641_v63 = vmax.f32 %v2027_v15, 0.0 }
 0x283   :  { %v2642_v34 = vmax.f32 %v2029_v6, 0.0  ;;  %v2032_v61 = vpop.f32.mrb[206].mxu1 }
 0x284   :  { %v2033_v25 = vadd.f32 %v2032_v61, %v7214_v24  ;;  %v2034_v1 = vpop.f32.mrb[207].mxu1  ;;  %2349 = vmatmul.mubr.f32.gmra.mrb[56].mxu1 %v1584_v26  ;;  %v1594_v26 = vmax.f32 %v1216_v29, 0.0  ;;  %v1246_v29 = vadd.f32 %v8112_v52, %v6504_v22  ;;  %v8122_v52 = vld [vmem:[#allocation63_spill] sm:$0xff] }
 0x285   :  { %v2035_v23 = vadd.f32 %v2034_v1, %v7220_v0  ;;  %2354 = vmatprep.mubr.f32.mxu1 %v1587_v5  ;;  %3114 = vmatprep.mubr.f32.mxu0 %v2642_v34  ;;  %v1597_v5 = vmax.f32 %v1224_v44, 0.0  ;;  %v1254_v44 = vadd.f32 %v8113_v50, %v6474_v62  ;;  %v8123_v50 = vld [vmem:[#allocation66_spill] sm:$0xff] }
 0x286   :  { %3115 = vmatmul.mubr.f32.gmra.mrb[204].mxu0 %v2641_v63  ;;  %v2643_v60 = vmax.f32 %v2033_v25, 0.0 }
 0x287   :  { %v2644_v14 = vmax.f32 %v2035_v23, 0.0  ;;  %v2038_v20 = vpop.f32.mrb[208].mxu1 }
 0x288   :  { %v2039_v10 = vadd.f32 %v2038_v20, %v7214_v24  ;;  %v2040_v7 = vpop.f32.mrb[209].mxu1  ;;  %2355 = vmatmul.mubr.f32.gmra.mrb[58].mxu1 %v1586_v33  ;;  %v1596_v33 = vmax.f32 %v1222_v43, 0.0  ;;  %v1252_v43 = vadd.f32 %v8114_v8, %v6504_v22  ;;  %v8124_v8 = vld [vmem:[#allocation65_spill] sm:$0xff] }
 0x289   :  { %v2041_v30 = vadd.f32 %v2040_v7, %v7220_v0  ;;  %2360 = vmatprep.mubr.f32.mxu1 %v1589_v49  ;;  %3119 = vmatprep.mubr.f32.mxu0 %v2644_v14  ;;  %v1599_v49 = vmax.f32 %v1230_v59, 0.0  ;;  %v1260_v59 = vadd.f32 %v8115_v12, %v6474_v62  ;;  %v8125_v12 = vld [vmem:[#allocation68_spill] sm:$0xff] }
 0x28a   :  { %3120 = vmatmul.mubr.f32.gmra.mrb[206].mxu0 %v2643_v60  ;;  %v2645_v51 = vmax.f32 %v2039_v10, 0.0 }
 0x28b   :  { %v2646_v13 = vmax.f32 %v2041_v30, 0.0  ;;  %v2044_v2 = vpop.f32.mrb[210].mxu1 }
 0x28c   :  { %v2045_v53 = vadd.f32 %v2044_v2, %v7214_v24  ;;  %v2046_v16 = vpop.f32.mrb[211].mxu1  ;;  %2361 = vmatmul.mubr.f32.gmra.mrb[60].mxu1 %v1588_v40  ;;  %v1598_v40 = vmax.f32 %v1228_v37, 0.0  ;;  %v1258_v37 = vadd.f32 %v8116_v56, %v6504_v22 }
 0x28d   :  { %v2047_v38 = vadd.f32 %v2046_v16, %v7220_v0  ;;  %2366 = vmatprep.mubr.f32.mxu1 %v1591_v11  ;;  %3124 = vmatprep.mubr.f32.mxu0 %v2646_v13  ;;  %v1601_v11 = vmax.f32 %v1236_v4, 0.0  ;;  %v1266_v4 = vadd.f32 %v8117_v28, %v6474_v62  ;;  %v8126_v28 = vld [vmem:[#allocation67_spill] sm:$0xff] }
 0x28e   :  { %3125 = vmatmul.mubr.f32.gmra.mrb[208].mxu0 %v2645_v51  ;;  %v2647_v9 = vmax.f32 %v2045_v53, 0.0 }
 0x28f   :  { %v2648_v21 = vmax.f32 %v2047_v38, 0.0  ;;  %v2050_v18 = vpop.f32.mrb[212].mxu1 }
 0x290   :  { %v2051_v17 = vadd.f32 %v2050_v18, %v7214_v24  ;;  %v2052_v19 = vpop.f32.mrb[213].mxu1  ;;  %2367 = vmatmul.mubr.f32.gmra.mrb[62].mxu1 %v1590_v47  ;;  %v1600_v47 = vmax.f32 %v1234_v32, 0.0  ;;  %v1264_v32 = vadd.f32 %v8118_v39, %v6504_v22 }
 0x291   :  { %v2053_v45 = vadd.f32 %v2052_v19, %v7220_v0  ;;  %2372 = vmatprep.mubr.f32.mxu1 %v1593_v46  ;;  %3129 = vmatprep.mubr.f32.mxu0 %v2648_v21  ;;  %v1603_v46 = vmax.f32 %v1242_v42, 0.0  ;;  %v1272_v42 = vadd.f32 %v8119_v27, %v6474_v62 }
 0x292   :  { %3130 = vmatmul.mubr.f32.gmra.mrb[210].mxu0 %v2647_v9  ;;  %v2649_v3 = vmax.f32 %v2051_v17, 0.0 }
 0x293   :  { %v2650_v55 = vmax.f32 %v2053_v45, 0.0  ;;  %v2056_v48 = vpop.f32.mrb[214].mxu1 }
 0x294   :  { %v2057_v15 = vadd.f32 %v2056_v48, %v7214_v24  ;;  %v2058_v54 = vpop.f32.mrb[215].mxu1  ;;  %2373 = vmatmul.mubr.f32.gmra.mrb[64].mxu1 %v1592_v58  ;;  %v1602_v58 = vmax.f32 %v1240_v57, 0.0  ;;  %v1270_v57 = vadd.f32 %v8120_v41, %v6504_v22 }
 0x295   :  { %v2059_v6 = vadd.f32 %v2058_v54, %v7220_v0  ;;  %2378 = vmatprep.mubr.f32.mxu1 %v1595_v31  ;;  %3134 = vmatprep.mubr.f32.mxu0 %v2650_v55  ;;  %v1605_v31 = vmax.f32 %v1248_v36, 0.0  ;;  %v1278_v36 = vadd.f32 %v8121_v35, %v6474_v62 }
 0x296   :  { %3135 = vmatmul.mubr.f32.gmra.mrb[212].mxu0 %v2649_v3  ;;  %v2651_v63 = vmax.f32 %v2057_v15, 0.0 }
 0x297   :  { %v2652_v34 = vmax.f32 %v2059_v6, 0.0  ;;  %v2062_v61 = vpop.f32.mrb[216].mxu1 }
 0x298   :  { %v2063_v25 = vadd.f32 %v2062_v61, %v7214_v24  ;;  %v2064_v1 = vpop.f32.mrb[217].mxu1  ;;  %2379 = vmatmul.mubr.f32.gmra.mrb[66].mxu1 %v1594_v26  ;;  %v1604_v26 = vmax.f32 %v1246_v29, 0.0  ;;  %v1276_v29 = vadd.f32 %v8122_v52, %v6504_v22 }
 0x299   :  { %v2065_v23 = vadd.f32 %v2064_v1, %v7220_v0  ;;  %2384 = vmatprep.mubr.f32.mxu1 %v1597_v5  ;;  %3139 = vmatprep.mubr.f32.mxu0 %v2652_v34  ;;  %v1607_v5 = vmax.f32 %v1254_v44, 0.0  ;;  %v1284_v44 = vadd.f32 %v8123_v50, %v6474_v62  ;;  %v8131_v50 = vld [vmem:[#allocation74_spill] sm:$0xff] }
 0x29a   :  { %3140 = vmatmul.mubr.f32.gmra.mrb[214].mxu0 %v2651_v63  ;;  %v2653_v60 = vmax.f32 %v2063_v25, 0.0 }
 0x29b   :  { %v2654_v14 = vmax.f32 %v2065_v23, 0.0  ;;  %v2068_v20 = vpop.f32.mrb[218].mxu1 }
 0x29c   :  { %v2069_v10 = vadd.f32 %v2068_v20, %v7214_v24  ;;  %v2070_v7 = vpop.f32.mrb[219].mxu1  ;;  %2385 = vmatmul.mubr.f32.gmra.mrb[68].mxu1 %v1596_v33  ;;  %v1606_v33 = vmax.f32 %v1252_v43, 0.0  ;;  %v1282_v43 = vadd.f32 %v8124_v8, %v6504_v22 }
 0x29d   :  { %v2071_v30 = vadd.f32 %v2070_v7, %v7220_v0  ;;  %2390 = vmatprep.mubr.f32.mxu1 %v1599_v49  ;;  %3144 = vmatprep.mubr.f32.mxu0 %v2654_v14  ;;  %v1609_v49 = vmax.f32 %v1260_v59, 0.0  ;;  %v1290_v59 = vadd.f32 %v8125_v12, %v6474_v62  ;;  %v8132_v12 = vld [vmem:[#allocation73_spill] sm:$0xff] }
 0x29e   :  { %3145 = vmatmul.mubr.f32.gmra.mrb[216].mxu0 %v2653_v60  ;;  %v2655_v51 = vmax.f32 %v2069_v10, 0.0 }
 0x29f   :  { %v2656_v13 = vmax.f32 %v2071_v30, 0.0  ;;  %v2074_v2 = vpop.f32.mrb[220].mxu1 }
 0x2a0   :  { %v2075_v53 = vadd.f32 %v2074_v2, %v7214_v24  ;;  %v2076_v16 = vpop.f32.mrb[221].mxu1  ;;  %2391 = vmatmul.mubr.f32.gmra.mrb[70].mxu1 %v1598_v40  ;;  %v1608_v40 = vmax.f32 %v1258_v37, 0.0  ;;  %v1616_v37 = vmax.f32 %v1282_v43, 0.0 }
 0x2a1   :  { %v2077_v38 = vadd.f32 %v2076_v16, %v7220_v0  ;;  %2396 = vmatprep.mubr.f32.mxu1 %v1601_v11  ;;  %3149 = vmatprep.mubr.f32.mxu0 %v2656_v13  ;;  %v1611_v11 = vmax.f32 %v1266_v4, 0.0  ;;  %v1288_v4 = vadd.f32 %v8126_v28, %v6504_v22 }
 0x2a2   :  { %3150 = vmatmul.mubr.f32.gmra.mrb[218].mxu0 %v2655_v51  ;;  %v2657_v9 = vmax.f32 %v2075_v53, 0.0 }
 0x2a3   :  { %v2658_v21 = vmax.f32 %v2077_v38, 0.0  ;;  %v2080_v18 = vpop.f32.mrb[222].mxu1 }
 0x2a4   :  { %v2081_v17 = vadd.f32 %v2080_v18, %v7214_v24  ;;  %v2082_v19 = vpop.f32.mrb[223].mxu1  ;;  %2397 = vmatmul.mubr.f32.gmra.mrb[72].mxu1 %v1600_v47  ;;  %v1610_v47 = vmax.f32 %v1264_v32, 0.0 }
 0x2a5   :  { %v2083_v45 = vadd.f32 %v2082_v19, %v7220_v0  ;;  %2402 = vmatprep.mubr.f32.mxu1 %v1603_v46  ;;  %3154 = vmatprep.mubr.f32.mxu0 %v2658_v21  ;;  %v1613_v46 = vmax.f32 %v1272_v42, 0.0 }
 0x2a6   :  { %3155 = vmatmul.mubr.f32.gmra.mrb[220].mxu0 %v2657_v9  ;;  %v2659_v3 = vmax.f32 %v2081_v17, 0.0 }
 0x2a7   :  { %v2660_v55 = vmax.f32 %v2083_v45, 0.0  ;;  %v2086_v48 = vpop.f32.mrb[224].mxu1 }
 0x2a8   :  { %v2087_v15 = vadd.f32 %v2086_v48, %v7214_v24  ;;  %v2088_v54 = vpop.f32.mrb[225].mxu1  ;;  %2403 = vmatmul.mubr.f32.gmra.mrb[74].mxu1 %v1602_v58  ;;  %v1612_v58 = vmax.f32 %v1270_v57, 0.0 }
 0x2a9   :  { %v2089_v6 = vadd.f32 %v2088_v54, %v7220_v0  ;;  %2408 = vmatprep.mubr.f32.mxu1 %v1605_v31  ;;  %3159 = vmatprep.mubr.f32.mxu0 %v2660_v55  ;;  %v1615_v31 = vmax.f32 %v1278_v36, 0.0 }
 0x2aa   :  { %3160 = vmatmul.mubr.f32.gmra.mrb[222].mxu0 %v2659_v3  ;;  %v2661_v63 = vmax.f32 %v2087_v15, 0.0 }
 0x2ab   :  { %v2662_v34 = vmax.f32 %v2089_v6, 0.0  ;;  %v2092_v61 = vpop.f32.mrb[226].mxu1 }
 0x2ac   :  { %v2093_v25 = vadd.f32 %v2092_v61, %v7214_v24  ;;  %v2094_v1 = vpop.f32.mrb[227].mxu1  ;;  %2409 = vmatmul.mubr.f32.gmra.mrb[76].mxu1 %v1604_v26  ;;  %v1614_v26 = vmax.f32 %v1276_v29, 0.0 }
 0x2ad   :  { %v2095_v23 = vadd.f32 %v2094_v1, %v7220_v0  ;;  %2414 = vmatprep.mubr.f32.mxu1 %v1607_v5  ;;  %3164 = vmatprep.mubr.f32.mxu0 %v2662_v34  ;;  %v1617_v5 = vmax.f32 %v1284_v44, 0.0  ;;  %v1308_v44 = vadd.f32 %v8131_v50, %v6474_v62 }
 0x2ae   :  { %3165 = vmatmul.mubr.f32.gmra.mrb[224].mxu0 %v2661_v63  ;;  %v2663_v60 = vmax.f32 %v2093_v25, 0.0  ;;  %v7553_v63 = vld [vmem:[%s7950_s6] ss:$0 sm:$0xff] }
 0x2af   :  { %v2664_v14 = vmax.f32 %v2095_v23, 0.0  ;;  %v2098_v20 = vpop.f32.mrb[228].mxu1 }
 0x2b0   :  { %v2099_v10 = vadd.f32 %v2098_v20, %v7214_v24  ;;  %v2100_v7 = vpop.f32.mrb[229].mxu1  ;;  %2415 = vmatmul.mubr.f32.gmra.mrb[78].mxu1 %v1606_v33 }
 0x2b1   :  { %v2101_v30 = vadd.f32 %v2100_v7, %v7220_v0  ;;  %2420 = vmatprep.mubr.f32.mxu1 %v1609_v49  ;;  %3169 = vmatprep.mubr.f32.mxu0 %v2664_v14  ;;  %v8127_v49 = vld [vmem:[#allocation70_spill] sm:$0xff] }
 0x2b2   :  { %3170 = vmatmul.mubr.f32.gmra.mrb[226].mxu0 %v2663_v60  ;;  %v2665_v51 = vmax.f32 %v2099_v10, 0.0  ;;  %v1296_v60 = vadd.f32 %v8127_v49, %v6474_v62 }
 0x2b3   :  { %v2666_v13 = vmax.f32 %v2101_v30, 0.0  ;;  %v2104_v2 = vpop.f32.mrb[230].mxu1  ;;  %v1619_v30 = vmax.f32 %v1290_v59, 0.0  ;;  %v1306_v59 = vadd.f32 %v8132_v12, %v6504_v22  ;;  %v8139_v12 = vld [vmem:[#allocation82_spill] sm:$0xff] }
 0x2b4   :  { %v2105_v53 = vadd.f32 %v2104_v2, %v7214_v24  ;;  %v2106_v16 = vpop.f32.mrb[231].mxu1  ;;  %2421 = vmatmul.mubr.f32.gmra.mrb[80].mxu1 %v1608_v40  ;;  %v1618_v2 = vmax.f32 %v1288_v4, 0.0  ;;  %v1621_v35 = vmax.f32 %v1296_v60, 0.0 }
 0x2b5   :  { %v2107_v38 = vadd.f32 %v2106_v16, %v7220_v0  ;;  %2426 = vmatprep.mubr.f32.mxu1 %v1611_v11  ;;  %3174 = vmatprep.mubr.f32.mxu0 %v2666_v13  ;;  %v8128_v11 = vld [vmem:[#allocation69_spill] sm:$0xff] }
 0x2b6   :  { %3175 = vmatmul.mubr.f32.gmra.mrb[228].mxu0 %v2665_v51  ;;  %v2667_v9 = vmax.f32 %v2105_v53, 0.0  ;;  %v1294_v51 = vadd.f32 %v8128_v11, %v6504_v22 }
 0x2b7   :  { %v2668_v21 = vmax.f32 %v2107_v38, 0.0  ;;  %v2110_v18 = vpop.f32.mrb[232].mxu1  ;;  %v8129_v38 = vld [vmem:[#allocation72_spill] sm:$0xff] }
 0x2b8   :  { %v2111_v17 = vadd.f32 %v2110_v18, %v7214_v24  ;;  %v2112_v19 = vpop.f32.mrb[233].mxu1  ;;  %2427 = vmatmul.mubr.f32.gmra.mrb[82].mxu1 %v1610_v47  ;;  %v1302_v47 = vadd.f32 %v8129_v38, %v6474_v62 }
 0x2b9   :  { %v2113_v45 = vadd.f32 %v2112_v19, %v7220_v0  ;;  %2432 = vmatprep.mubr.f32.mxu1 %v1613_v46  ;;  %3179 = vmatprep.mubr.f32.mxu0 %v2668_v21  ;;  %v1620_v19 = vmax.f32 %v1294_v51, 0.0 }
 0x2ba   :  { %3180 = vmatmul.mubr.f32.gmra.mrb[230].mxu0 %v2667_v9  ;;  %v2669_v3 = vmax.f32 %v2111_v17, 0.0 }
 0x2bb   :  { %v2670_v55 = vmax.f32 %v2113_v45, 0.0  ;;  %v2116_v48 = vpop.f32.mrb[234].mxu1  ;;  %v8130_v45 = vld [vmem:[#allocation71_spill] sm:$0xff] }
 0x2bc   :  { %v2117_v15 = vadd.f32 %v2116_v48, %v7214_v24  ;;  %v2118_v54 = vpop.f32.mrb[235].mxu1  ;;  %2433 = vmatmul.mubr.f32.gmra.mrb[84].mxu1 %v1612_v58  ;;  %v1300_v58 = vadd.f32 %v8130_v45, %v6504_v22 }
 0x2bd   :  { %v2119_v6 = vadd.f32 %v2118_v54, %v7220_v0  ;;  %2438 = vmatprep.mubr.f32.mxu1 %v1615_v31  ;;  %3184 = vmatprep.mubr.f32.mxu0 %v2670_v55  ;;  %v1623_v31 = vmax.f32 %v1302_v47, 0.0  ;;  %v8136_v47 = vld [vmem:[#allocation77_spill] sm:$0xff] }
 0x2be   :  { %3185 = vmatmul.mubr.f32.gmra.mrb[232].mxu0 %v2669_v3  ;;  %v2671_v25 = vmax.f32 %v2117_v15, 0.0  ;;  %v1622_v43 = vmax.f32 %v1300_v58, 0.0 }
 0x2bf   :  { %v2672_v34 = vmax.f32 %v2119_v6, 0.0  ;;  %v2122_v61 = vpop.f32.mrb[236].mxu1 }
 0x2c0   :  { %v2123_v1 = vadd.f32 %v2122_v61, %v7214_v24  ;;  %v2124_v23 = vpop.f32.mrb[237].mxu1  ;;  %2439 = vmatmul.mubr.f32.gmra.mrb[86].mxu1 %v1614_v26 }
 0x2c1   :  { %v2125_v33 = vadd.f32 %v2124_v23, %v7220_v0  ;;  %2444 = vmatprep.mubr.f32.mxu1 %v1617_v5  ;;  %v2926_v56 = vpop.f32.mrb[128].mxu0  ;;  %3189 = vmatprep.mubr.f32.mxu0 %v2672_v34  ;;  %v8133_v5 = vld [vmem:[#allocation76_spill] sm:$0xff] }
 0x2c2   :  { %v2927_v14 = vadd.f32 %v7553_v63, %v2926_v56  ;;  %v2928_v20 = vpop.f32.mrb[129].mxu0  ;;  %3190 = vmatmul.mubr.f32.gmra.mrb[234].mxu0 %v2671_v25  ;;  %v2673_v40 = vmax.f32 %v2123_v1, 0.0  ;;  %v1314_v25 = vadd.f32 %v8133_v5, %v6474_v62 }
 0x2c3   :  { %v2674_v10 = vmax.f32 %v2125_v33, 0.0  ;;  %v2128_v7 = vpop.f32.mrb[238].mxu1  ;;  %v1625_v33 = vmax.f32 %v1308_v44, 0.0 }
 0x2c4   :  { %v4651_v39 = vmul.f32 -1.442695, %v2927_v14  ;;  %v2129_v32 = vadd.f32 %v2128_v7, %v7214_v24  ;;  %v2130_v27 = vpop.f32.mrb[239].mxu1  ;;  %2445 = vmatmul.mubr.f32.gmra.mrb[88].mxu1 %v1616_v37  ;;  %v8134_v7 = vld [vmem:[#allocation75_spill] sm:$0xff] }
 0x2c5   :  { %v2131_v42 = vadd.f32 %v2130_v27, %v7220_v0  ;;  %2450 = vmatprep.mubr.f32.mxu1 %v1619_v30  ;;  %v2931_v13 = vpop.f32.mrb[130].mxu0  ;;  %3194 = vmatprep.mubr.f32.mxu0 %v2674_v10  ;;  %v1624_v10 = vmax.f32 %v1306_v59, 0.0  ;;  %v1312_v30 = vadd.f32 %v8134_v7, %v6504_v22  ;;  %v1332_v59 = vadd.f32 %v8139_v12, %v6474_v62  ;;  %v8141_v7 = vld [vmem:[#allocation84_spill] sm:$0xff] }
 0x2c6   :  { %4917 = vpow2.f32 %v4651_v39  ;;  %v2932_v53 = vadd.f32 %v7553_v63, %v2931_v13  ;;  %v2933_v16 = vpop.f32.mrb[131].mxu0  ;;  %3195 = vmatmul.mubr.f32.gmra.mrb[236].mxu0 %v2673_v40  ;;  %v2675_v36 = vmax.f32 %v2129_v32, 0.0  ;;  %v8135_v32 = vld [vmem:[#allocation78_spill] sm:$0xff] }
 0x2c7   :  { %v2676_v41 = vmax.f32 %v2131_v42, 0.0  ;;  %v2134_v57 = vpop.f32.mrb[240].mxu1  ;;  %v1320_v27 = vadd.f32 %v8135_v32, %v6474_v62  ;;  %v1633_v32 = vmax.f32 %v1332_v59, 0.0 }
 0x2c8   :  { %v4652_v21 = vmul.f32 -1.442695, %v2932_v53  ;;  %v2135_v18 = vadd.f32 %v2134_v57, %v7214_v24  ;;  %v2136_v46 = vpop.f32.mrb[241].mxu1  ;;  %2451 = vmatmul.mubr.f32.gmra.mrb[90].mxu1 %v1618_v2  ;;  %v1627_v2 = vmax.f32 %v1314_v25, 0.0 }
 0x2c9   :  { %v2137_v9 = vadd.f32 %v2136_v46, %v7220_v0  ;;  %2456 = vmatprep.mubr.f32.mxu1 %v1621_v35  ;;  %v2936_v17 = vpop.f32.mrb[132].mxu0  ;;  %3199 = vmatprep.mubr.f32.mxu0 %v2676_v41  ;;  %v1318_v41 = vadd.f32 %v8136_v47, %v6504_v22  ;;  %v1629_v58 = vmax.f32 %v1320_v27, 0.0 }
 0x2ca   :  { %4919 = vpow2.f32 %v4652_v21  ;;  %v2937_v52 = vadd.f32 %v7553_v63, %v2936_v17  ;;  %v2938_v29 = vpop.f32.mrb[133].mxu0  ;;  %3200 = vmatmul.mubr.f32.gmra.mrb[238].mxu0 %v2675_v36  ;;  %v2677_v3 = vmax.f32 %v2135_v18, 0.0  ;;  %v1626_v21 = vmax.f32 %v1312_v30, 0.0  ;;  %v8137_v18 = vld [vmem:[#allocation80_spill] sm:$0xff] }
 0x2cb   :  { %v2678_v55 = vmax.f32 %v2137_v9, 0.0  ;;  %v2140_v48 = vpop.f32.mrb[242].mxu1  ;;  %v1326_v46 = vadd.f32 %v8137_v18, %v6474_v62  ;;  %v1338_v30 = vadd.f32 %v8141_v7, %v6474_v62  ;;  %v8147_v7 = vld [vmem:[#allocation90_spill] sm:$0xff] }
 0x2cc   :  { %v4653_v15 = vmul.f32 -1.442695, %v2937_v52  ;;  %v2141_v54 = vadd.f32 %v2140_v48, %v7214_v24  ;;  %v2142_v6 = vpop.f32.mrb[243].mxu1  ;;  %2457 = vmatmul.mubr.f32.gmra.mrb[92].mxu1 %v1620_v19  ;;  %v1628_v48 = vmax.f32 %v1318_v41, 0.0  ;;  %v8142_v41 = vld [vmem:[#allocation83_spill] sm:$0xff] }
 0x2cd   :  { %v2143_v26 = vadd.f32 %v2142_v6, %v7220_v0  ;;  %2462 = vmatprep.mubr.f32.mxu1 %v1623_v31  ;;  %v2941_v8 = vpop.f32.mrb[134].mxu0  ;;  %3204 = vmatprep.mubr.f32.mxu0 %v2678_v55 }
 0x2ce   :  { %4921 = vpow2.f32 %v4653_v15  ;;  %v2942_v34 = vadd.f32 %v7553_v63, %v2941_v8  ;;  %v2943_v61 = vpop.f32.mrb[135].mxu0  ;;  %3205 = vmatmul.mubr.f32.gmra.mrb[240].mxu0 %v2677_v3  ;;  %v2679_v37 = vmax.f32 %v2141_v54, 0.0  ;;  %v8138_v54 = vld [vmem:[#allocation79_spill] sm:$0xff] }
 0x2cf   :  { %v2680_v1 = vmax.f32 %v2143_v26, 0.0  ;;  %v2146_v23 = vpop.f32.mrb[244].mxu1  ;;  %v1324_v6 = vadd.f32 %v8138_v54, %v6504_v22 }
 0x2d0   :  { %v4918_v56 = vpop.eup %4917  ;;  %v4654_v28 = vmul.f32 -1.442695, %v2942_v34  ;;  %v2147_v4 = vadd.f32 %v2146_v23, %v7214_v24  ;;  %v2148_v14 = vpop.f32.mrb[245].mxu1  ;;  %2463 = vmatmul.mubr.f32.gmra.mrb[94].mxu1 %v1622_v43  ;;  %v1631_v43 = vmax.f32 %v1326_v46, 0.0 }
 0x2d1   :  { %v3949_v20 = vadd.f32 1.0, %v4918_v56  ;;  %v2149_v49 = vadd.f32 %v2148_v14, %v7220_v0  ;;  %2468 = vmatprep.mubr.f32.mxu1 %v1625_v33  ;;  %v2946_v60 = vpop.f32.mrb[136].mxu0  ;;  %3209 = vmatprep.mubr.f32.mxu0 %v2680_v1  ;;  %v1630_v14 = vmax.f32 %v1324_v6, 0.0 }
 0x2d2   :  { %4923 = vpow2.f32 %v4654_v28  ;;  %v2947_v40 = vadd.f32 %v7553_v63, %v2946_v60  ;;  %v2948_v39 = vpop.f32.mrb[137].mxu0  ;;  %3210 = vmatmul.mubr.f32.gmra.mrb[242].mxu0 %v2679_v37  ;;  %v2681_v51 = vmax.f32 %v2147_v4, 0.0 }
 0x2d3   :  { %4925 = vrcp.f32 %v3949_v20  ;;  %v2682_v42 = vmax.f32 %v2149_v49, 0.0  ;;  %v2152_v13 = vpop.f32.mrb[246].mxu1  ;;  %v8140_v20 = vld [vmem:[#allocation81_spill] sm:$0xff] }
 0x2d4   :  { %v4920_v11 = vpop.eup %4919  ;;  %v4655_v53 = vmul.f32 -1.442695, %v2947_v40  ;;  %v2153_v16 = vadd.f32 %v2152_v13, %v7214_v24  ;;  %v2154_v38 = vpop.f32.mrb[247].mxu1  ;;  %2469 = vmatmul.mubr.f32.gmra.mrb[96].mxu1 %v1624_v10  ;;  %v1330_v49 = vadd.f32 %v8140_v20, %v6504_v22  ;;  %v8146_v20 = vld [vmem:[#allocation87_spill] sm:$0xff] }
 0x2d5   :  { %v3950_v57 = vadd.f32 1.0, %v4920_v11  ;;  %v2155_v35 = vadd.f32 %v2154_v38, %v7220_v0  ;;  %2474 = vmatprep.mubr.f32.mxu1 %v1627_v2  ;;  %v2951_v36 = vpop.f32.mrb[138].mxu0  ;;  %3214 = vmatprep.mubr.f32.mxu0 %v2682_v42 }
 0x2d6   :  { %4927 = vpow2.f32 %v4655_v53  ;;  %v2952_v9 = vadd.f32 %v7553_v63, %v2951_v36  ;;  %v2953_v17 = vpop.f32.mrb[139].mxu0  ;;  %3215 = vmatmul.mubr.f32.gmra.mrb[244].mxu0 %v2681_v51  ;;  %v2683_v29 = vmax.f32 %v2153_v16, 0.0  ;;  %v1632_v47 = vmax.f32 %v1330_v49, 0.0 }
 0x2d7   :  { %4929 = vrcp.f32 %v3950_v57  ;;  %v2684_v19 = vmax.f32 %v2155_v35, 0.0  ;;  %v2158_v45 = vpop.f32.mrb[248].mxu1  ;;  %v1336_v57 = vadd.f32 %v8142_v41, %v6504_v22  ;;  %v1635_v17 = vmax.f32 %v1338_v30, 0.0 }
 0x2d8   :  { %v4922_v52 = vpop.eup %4921  ;;  %v4656_v50 = vmul.f32 -1.442695, %v2952_v9  ;;  %v2159_v44 = vadd.f32 %v2158_v45, %v7214_v24  ;;  %v2160_v55 = vpop.f32.mrb[249].mxu1  ;;  %2475 = vmatmul.mubr.f32.gmra.mrb[98].mxu1 %v1626_v21  ;;  %v8143_v21 = vld [vmem:[#allocation86_spill] sm:$0xff]  ;;  %v1348_v49 = vadd.f32 %v8146_v20, %v6504_v22  ;;  %v1356_v30 = vadd.f32 %v8147_v7, %v6474_v62 }
 0x2d9   :  { %v3951_v31 = vadd.f32 1.0, %v4922_v52  ;;  %v2161_v3 = vadd.f32 %v2160_v55, %v7220_v0  ;;  %2480 = vmatprep.mubr.f32.mxu1 %v1629_v58  ;;  %v2956_v15 = vpop.f32.mrb[140].mxu0  ;;  %3219 = vmatprep.mubr.f32.mxu0 %v2684_v19  ;;  %v1344_v18 = vadd.f32 %v8143_v21, %v6474_v62 }
 0x2da   :  { %4931 = vpow2.f32 %v4656_v50  ;;  %v2957_v26 = vadd.f32 %v7553_v63, %v2956_v15  ;;  %v2958_v8 = vpop.f32.mrb[141].mxu0  ;;  %3220 = vmatmul.mubr.f32.gmra.mrb[246].mxu0 %v2683_v29  ;;  %v2685_v25 = vmax.f32 %v2159_v44, 0.0  ;;  %v8144_v15 = vld [vmem:[#allocation85_spill] sm:$0xff]  ;;  %v1638_v41 = vmax.f32 %v1348_v49, 0.0 }
 0x2db   :  { %4933 = vrcp.f32 %v3951_v31  ;;  %v2686_v34 = vmax.f32 %v2161_v3, 0.0  ;;  %v2164_v61 = vpop.f32.mrb[250].mxu1  ;;  %v1634_v3 = vmax.f32 %v1336_v57, 0.0  ;;  %v1342_v54 = vadd.f32 %v8144_v15, %v6504_v22  ;;  %v8145_v8 = vld [vmem:[#allocation88_spill] sm:$0xff]  ;;  %v8148_v57 = vld [vmem:[#allocation89_spill] sm:$0xff] }
 0x2dc   :  { %v4924_v5 = vpop.eup %4923  ;;  %v4657_v1 = vmul.f32 -1.442695, %v2957_v26  ;;  %v2165_v23 = vadd.f32 %v2164_v61, %v7214_v24  ;;  %v2166_v33 = vpop.f32.mrb[251].mxu1  ;;  %2481 = vmatmul.mubr.f32.gmra.mrb[100].mxu1 %v1628_v48  ;;  %v8152_v49 = vld [vmem:[#allocation93_spill] sm:$0xff] }
 0x2dd   :  { %v4926_v56 = vpop.eup %4925  ;;  %v3952_v37 = vadd.f32 1.0, %v4924_v5  ;;  %v2167_v28 = vadd.f32 %v2166_v33, %v7220_v0  ;;  %2486 = vmatprep.mubr.f32.mxu1 %v1631_v43  ;;  %v2961_v4 = vpop.f32.mrb[142].mxu0  ;;  %3224 = vmatprep.mubr.f32.mxu0 %v2686_v34  ;;  %v1350_v43 = vadd.f32 %v8145_v8, %v6474_v62  ;;  %v1637_v34 = vmax.f32 %v1344_v18, 0.0  ;;  %v8149_v18 = vld [vmem:[#allocation92_spill] sm:$0xff] }
 0x2de   :  { %4334 = vst.msk [vmem:[#allocation2] sm:$0xff] %vm4333_vm1, %v4926_v56  ;;  %4935 = vpow2.f32 %v4657_v1  ;;  %v2962_v60 = vadd.f32 %v7553_v63, %v2961_v4  ;;  %v2963_v10 = vpop.f32.mrb[143].mxu0  ;;  %3225 = vmatmul.mubr.f32.gmra.mrb[248].mxu0 %v2685_v25  ;;  %v2687_v42 = vmax.f32 %v2165_v23, 0.0 }
 0x2df   :  { %4937 = vrcp.f32 %v3952_v37  ;;  %v2688_v40 = vmax.f32 %v2167_v28, 0.0  ;;  %v2170_v39 = vpop.f32.mrb[252].mxu1 }
 0x2e0   :  { %v4928_v27 = vpop.eup %4927  ;;  %v4658_v13 = vmul.f32 -1.442695, %v2962_v60  ;;  %v2171_v2 = vadd.f32 %v2170_v39, %v7214_v24  ;;  %v2172_v11 = vpop.f32.mrb[253].mxu1  ;;  %2487 = vmatmul.mubr.f32.gmra.mrb[102].mxu1 %v1630_v14  ;;  %v1636_v14 = vmax.f32 %v1342_v54, 0.0  ;;  %v8150_v54 = vld [vmem:[#allocation91_spill] sm:$0xff] }
 0x2e1   :  { %v4930_v51 = vpop.eup %4929  ;;  %v3953_v53 = vadd.f32 1.0, %v4928_v27  ;;  %v2173_v16 = vadd.f32 %v2172_v11, %v7220_v0  ;;  %2492 = vmatprep.mubr.f32.mxu1 %v1633_v32  ;;  %v2966_v38 = vpop.f32.mrb[144].mxu0  ;;  %3229 = vmatprep.mubr.f32.mxu0 %v2688_v40  ;;  %v1639_v32 = vmax.f32 %v1350_v43, 0.0  ;;  %v8151_v43 = vld [vmem:[#allocation94_spill] sm:$0xff] }
 0x2e2   :  { %4335 = vst.msk [vmem:[#allocation2 + $0x8] sm:$0xff] %vm4333_vm1, %v4930_v51  ;;  %4939 = vpow2.f32 %v4658_v13  ;;  %v2967_v35 = vadd.f32 %v7553_v63, %v2966_v38  ;;  %v2968_v36 = vpop.f32.mrb[145].mxu0  ;;  %3230 = vmatmul.mubr.f32.gmra.mrb[250].mxu0 %v2687_v42  ;;  %v2689_v45 = vmax.f32 %v2171_v2, 0.0 }
 0x2e3   :  { %4941 = vrcp.f32 %v3953_v53  ;;  %v2690_v46 = vmax.f32 %v2173_v16, 0.0  ;;  %v2176_v9 = vpop.f32.mrb[254].mxu1 }
 0x2e4   :  { %v4932_v19 = vpop.eup %4931  ;;  %v4659_v58 = vmul.f32 -1.442695, %v2967_v35  ;;  %v2177_v52 = vadd.f32 %v2176_v9, %v7214_v24  ;;  %v2178_v29 = vpop.f32.mrb[255].mxu1  ;;  %2493 = vmatmul.mubr.f32.gmra.mrb[104].mxu1 %v1632_v47  ;;  %v1354_v35 = vadd.f32 %v8148_v57, %v6504_v22 }
 0x2e5   :  { %v4934_v50 = vpop.eup %4933  ;;  %v4501_v44 = vld [vmem:[#allocation2] sm:$0xff]  ;;  %v3954_v55 = vadd.f32 1.0, %v4932_v19  ;;  %v2179_v48 = vadd.f32 %v2178_v29, %v7220_v0  ;;  %2498 = vmatprep.mubr.f32.mxu1 %v1635_v17  ;;  %v2971_v31 = vpop.f32.mrb[146].mxu0  ;;  %3234 = vmatprep.mubr.f32.mxu0 %v2690_v46  ;;  %v1362_v46 = vadd.f32 %v8149_v18, %v6474_v62  ;;  %v1641_v19 = vmax.f32 %v1356_v30, 0.0  ;;  %v8153_v30 = vld [vmem:[#allocation96_spill] sm:$0xff] }
 0x2e6   :  { %4502 = vst [vmem:[%s7951_s7] sm:$0xff] %v4501_v44  ;;  %4336 = vst.msk [vmem:[#allocation2 + $0x10] sm:$0xff] %vm4333_vm1, %v4934_v50  ;;  %4943 = vpow2.f32 %v4659_v58  ;;  %v2972_v6 = vadd.f32 %v7553_v63, %v2971_v31  ;;  %v2973_v26 = vpop.f32.mrb[147].mxu0  ;;  %3235 = vmatmul.mubr.f32.gmra.mrb[252].mxu0 %v2689_v45  ;;  %v2691_v5 = vmax.f32 %v2177_v52, 0.0  ;;  %v1640_v15 = vmax.f32 %v1354_v35, 0.0  ;;  %v8154_v35 = vld [vmem:[#allocation95_spill] sm:$0xff] }
 0x2e7   :  { %4945 = vrcp.f32 %v3954_v55  ;;  %v2692_v12 = vmax.f32 %v2179_v48, 0.0  ;;  %v2182_v59 = vpop.f32.mrb[0].mxu1 }
 0x2e8   :  { %v4936_v61 = vpop.eup %4935  ;;  %v4660_v25 = vmul.f32 -1.442695, %v2972_v6  ;;  %v2183_v1 = vadd.f32 %v2182_v59, %v7214_v24  ;;  %v2184_v23 = vpop.f32.mrb[1].mxu1  ;;  %2499 = vmatmul.mubr.f32.gmra.mrb[106].mxu1 %v1634_v3  ;;  %v1360_v6 = vadd.f32 %v8150_v54, %v6504_v22  ;;  %v8156_v54 = vld [vmem:[#allocation97_spill] sm:$0xff] }
 0x2e9   :  { %v4938_v33 = vpop.eup %4937  ;;  %v4503_v56 = vld [vmem:[#allocation2 + $0x8] sm:$0xff]  ;;  %v3955_v37 = vadd.f32 1.0, %v4936_v61  ;;  %v2185_v28 = vadd.f32 %v2184_v23, %v7220_v0  ;;  %2504 = vmatprep.mubr.f32.mxu1 %v1637_v34  ;;  %v2976_v4 = vpop.f32.mrb[148].mxu0  ;;  %3239 = vmatprep.mubr.f32.mxu0 %v2692_v12  ;;  %v1368_v12 = vadd.f32 %v8151_v43, %v6474_v62  ;;  %v1643_v61 = vmax.f32 %v1362_v46, 0.0  ;;  %v8155_v46 = vld [vmem:[#allocation98_spill] sm:$0xff] }
 0x2ea   :  { %4504 = vst [vmem:[%s7951_s7 + $0x8] sm:$0xff] %v4503_v56  ;;  %4337 = vst.msk [vmem:[#allocation2 + $0x18] sm:$0xff] %vm4333_vm1, %v4938_v33  ;;  %4947 = vpow2.f32 %v4660_v25  ;;  %v2977_v60 = vadd.f32 %v7553_v63, %v2976_v4  ;;  %v2978_v10 = vpop.f32.mrb[149].mxu0  ;;  %3240 = vmatmul.mubr.f32.gmra.mrb[254].mxu0 %v2691_v5  ;;  %v2693_v42 = vmax.f32 %v2183_v1, 0.0  ;;  %v1642_v20 = vmax.f32 %v1360_v6, 0.0  ;;  %v8157_v43 = vld [vmem:[#allocation100_spill] sm:$0xff] }
 0x2eb   :  { %4949 = vrcp.f32 %v3955_v37  ;;  %v2694_v40 = vmax.f32 %v2185_v28, 0.0  ;;  %v2188_v39 = vpop.f32.mrb[2].mxu1  ;;  %v1378_v6 = vadd.f32 %v8156_v54, %v6504_v22 }
 0x2ec   :  { %v4940_v27 = vpop.eup %4939  ;;  %v4661_v13 = vmul.f32 -1.442695, %v2977_v60  ;;  %v2189_v2 = vadd.f32 %v2188_v39, %v7214_v24  ;;  %v2190_v11 = vpop.f32.mrb[3].mxu1  ;;  %2505 = vmatmul.mubr.f32.gmra.mrb[108].mxu1 %v1636_v14  ;;  %v1366_v60 = vadd.f32 %v8152_v49, %v6504_v22 }
 0x2ed   :  { %v4942_v51 = vpop.eup %4941  ;;  %v4505_v53 = vld [vmem:[#allocation2 + $0x10] sm:$0xff]  ;;  %v3956_v16 = vadd.f32 1.0, %v4940_v27  ;;  %v2191_v38 = vadd.f32 %v2190_v11, %v7220_v0  ;;  %2510 = vmatprep.mubr.f32.mxu1 %v1639_v32  ;;  %v2981_v47 = vpop.f32.mrb[150].mxu0  ;;  %3244 = vmatprep.mubr.f32.mxu0 %v2694_v40  ;;  %v1374_v40 = vadd.f32 %v8153_v30, %v6474_v62  ;;  %v1645_v27 = vmax.f32 %v1368_v12, 0.0 }
 0x2ee   :  { %4506 = vst [vmem:[%s7951_s7 + $0x10] sm:$0xff] %v4505_v53  ;;  %4338 = vst.msk [vmem:[#allocation2 + $0x20] sm:$0xff] %vm4333_vm1, %v4942_v51  ;;  %4951 = vpow2.f32 %v4661_v13  ;;  %v2982_v36 = vadd.f32 %v7553_v63, %v2981_v47  ;;  %v2983_v21 = vpop.f32.mrb[151].mxu0  ;;  %3245 = vmatmul.mubr.f32.gmra.mrb[0].mxu0 %v2693_v42  ;;  %v2695_v58 = vmax.f32 %v2189_v2, 0.0  ;;  %v1644_v57 = vmax.f32 %v1366_v60, 0.0 }
 0x2ef   :  { %4953 = vrcp.f32 %v3956_v16  ;;  %v2696_v9 = vmax.f32 %v2191_v38, 0.0  ;;  %v2194_v17 = vpop.f32.mrb[4].mxu1  ;;  %v1386_v12 = vadd.f32 %v8157_v43, %v6474_v62 }
 0x2f0   :  { %v4944_v45 = vpop.eup %4943  ;;  %v4662_v52 = vmul.f32 -1.442695, %v2982_v36  ;;  %v2195_v29 = vadd.f32 %v2194_v17, %v7214_v24  ;;  %v2196_v50 = vpop.f32.mrb[5].mxu1  ;;  %2511 = vmatmul.mubr.f32.gmra.mrb[110].mxu1 %v1638_v41  ;;  %v1372_v36 = vadd.f32 %v8154_v35, %v6504_v22 }
 0x2f1   :  { %v4946_v44 = vpop.eup %4945  ;;  %v4507_v55 = vld [vmem:[#allocation2 + $0x18] sm:$0xff]  ;;  %v3957_v48 = vadd.f32 1.0, %v4944_v45  ;;  %v2197_v31 = vadd.f32 %v2196_v50, %v7220_v0  ;;  %2516 = vmatprep.mubr.f32.mxu1 %v1641_v19  ;;  %v2986_v3 = vpop.f32.mrb[152].mxu0  ;;  %3249 = vmatprep.mubr.f32.mxu0 %v2696_v9  ;;  %v1380_v9 = vadd.f32 %v8155_v46, %v6474_v62  ;;  %v1647_v45 = vmax.f32 %v1374_v40, 0.0 }
 0x2f2   :  { %4508 = vst [vmem:[%s7951_s7 + $0x18] sm:$0xff] %v4507_v55  ;;  %4339 = vst.msk [vmem:[#allocation2 + $0x28] sm:$0xff] %vm4333_vm1, %v4946_v44  ;;  %4955 = vpow2.f32 %v4662_v52  ;;  %v2987_v26 = vadd.f32 %v7553_v63, %v2986_v3  ;;  %v2988_v8 = vpop.f32.mrb[153].mxu0  ;;  %3250 = vmatmul.mubr.f32.gmra.mrb[2].mxu0 %v2695_v58  ;;  %v2697_v25 = vmax.f32 %v2195_v29, 0.0 }
 0x2f3   :  { %4957 = vrcp.f32 %v3957_v48  ;;  %v2698_v59 = vmax.f32 %v2197_v31, 0.0  ;;  %v2200_v34 = vpop.f32.mrb[6].mxu1 }
 0x2f4   :  { %v4948_v5 = vpop.eup %4947  ;;  %v4663_v1 = vmul.f32 -1.442695, %v2987_v26  ;;  %v2201_v23 = vadd.f32 %v2200_v34, %v7214_v24  ;;  %v2202_v33 = vpop.f32.mrb[7].mxu1  ;;  %2517 = vmatmul.mubr.f32.gmra.mrb[112].mxu1 %v1640_v15  ;;  %v1646_v15 = vmax.f32 %v1372_v36, 0.0 }
 0x2f5   :  { %v4950_v56 = vpop.eup %4949  ;;  %v4509_v37 = vld [vmem:[#allocation2 + $0x20] sm:$0xff]  ;;  %v3958_v28 = vadd.f32 1.0, %v4948_v5  ;;  %v2203_v4 = vadd.f32 %v2202_v33, %v7220_v0  ;;  %2522 = vmatprep.mubr.f32.mxu1 %v1643_v61  ;;  %v2991_v14 = vpop.f32.mrb[154].mxu0  ;;  %3254 = vmatprep.mubr.f32.mxu0 %v2698_v59  ;;  %v1649_v61 = vmax.f32 %v1380_v9, 0.0 }
 0x2f6   :  { %4510 = vst [vmem:[%s7951_s7 + $0x20] sm:$0xff] %v4509_v37  ;;  %4959 = vpow2.f32 %v4663_v1  ;;  %v2992_v10 = vadd.f32 %v7553_v63, %v2991_v14  ;;  %v2993_v7 = vpop.f32.mrb[155].mxu0  ;;  %3255 = vmatmul.mubr.f32.gmra.mrb[4].mxu0 %v2697_v25  ;;  %v2699_v13 = vmax.f32 %v2201_v23, 0.0  ;;  %v1648_v14 = vmax.f32 %v1378_v6, 0.0 }
 0x2f7   :  { %4961 = vrcp.f32 %v3958_v28  ;;  %v2700_v39 = vmax.f32 %v2203_v4, 0.0  ;;  %v2206_v32 = vpop.f32.mrb[8].mxu1  ;;  %v8159_v7 = vld [vmem:[#allocation102_spill] sm:$0xff] }
 0x2f8   :  { %v4952_v42 = vpop.eup %4951  ;;  %v4664_v2 = vmul.f32 -1.442695, %v2992_v10  ;;  %v2207_v11 = vadd.f32 %v2206_v32, %v7214_v24  ;;  %v2208_v51 = vpop.f32.mrb[9].mxu1  ;;  %2523 = vmatmul.mubr.f32.gmra.mrb[114].mxu1 %v1642_v20  ;;  %v8158_v20 = vld [vmem:[#allocation99_spill] sm:$0xff]  ;;  %v1392_v30 = vadd.f32 %v8159_v7, %v6474_v62  ;;  %v1651_v32 = vmax.f32 %v1386_v12, 0.0 }
 0x2f9   :  { %v4954_v53 = vpop.eup %4953  ;;  %v4511_v16 = vld [vmem:[#allocation2 + $0x28] sm:$0xff]  ;;  %v3959_v38 = vadd.f32 1.0, %v4952_v42  ;;  %v2209_v47 = vadd.f32 %v2208_v51, %v7220_v0  ;;  %2528 = vmatprep.mubr.f32.mxu1 %v1645_v27  ;;  %v2996_v41 = vpop.f32.mrb[156].mxu0  ;;  %3259 = vmatprep.mubr.f32.mxu0 %v2700_v39  ;;  %v1384_v49 = vadd.f32 %v8158_v20, %v6504_v22 }
 0x2fa   :  { %4512 = vst [vmem:[%s7951_s7 + $0x28] sm:$0xff] %v4511_v16  ;;  %4963 = vpow2.f32 %v4664_v2  ;;  %v2997_v21 = vadd.f32 %v7553_v63, %v2996_v41  ;;  %v2998_v18 = vpop.f32.mrb[157].mxu0  ;;  %3260 = vmatmul.mubr.f32.gmra.mrb[6].mxu0 %v2699_v13  ;;  %v2701_v52 = vmax.f32 %v2207_v11, 0.0  ;;  %v8160_v41 = vld [vmem:[#allocation101_spill] sm:$0xff] }
 0x2fb   :  { %4965 = vrcp.f32 %v3959_v38  ;;  %v2702_v17 = vmax.f32 %v2209_v47, 0.0  ;;  %v2212_v19 = vpop.f32.mrb[10].mxu1  ;;  %v1650_v47 = vmax.f32 %v1384_v49, 0.0 }
 0x2fc   :  { %v4956_v58 = vpop.eup %4955  ;;  %v4665_v29 = vmul.f32 -1.442695, %v2997_v21  ;;  %v2213_v50 = vadd.f32 %v2212_v19, %v7214_v24  ;;  %v2214_v44 = vpop.f32.mrb[11].mxu1  ;;  %2529 = vmatmul.mubr.f32.gmra.mrb[116].mxu1 %v1644_v57  ;;  %v1390_v57 = vadd.f32 %v8160_v41, %v6504_v22  ;;  %v8161_v21 = vld [vmem:[#allocation104_spill] sm:$0xff] }
 0x2fd   :  { %v4958_v55 = vpop.eup %4957  ;;  %v3960_v48 = vadd.f32 1.0, %v4956_v58  ;;  %v2215_v31 = vadd.f32 %v2214_v44, %v7220_v0  ;;  %2534 = vmatprep.mubr.f32.mxu1 %v1647_v45  ;;  %v3001_v3 = vpop.f32.mrb[158].mxu0  ;;  %3264 = vmatprep.mubr.f32.mxu0 %v2702_v17  ;;  %v1398_v18 = vadd.f32 %v8161_v21, %v6474_v62  ;;  %v1653_v17 = vmax.f32 %v1392_v30, 0.0  ;;  %v8162_v62 = vld [vmem:[#allocation103_spill] sm:$0xff] }
 0x2fe   :  { %4967 = vpow2.f32 %v4665_v29  ;;  %v3002_v26 = vadd.f32 %v7553_v63, %v3001_v3  ;;  %v3003_v8 = vpop.f32.mrb[159].mxu0  ;;  %3265 = vmatmul.mubr.f32.gmra.mrb[8].mxu0 %v2701_v52  ;;  %v2703_v25 = vmax.f32 %v2213_v50, 0.0  ;;  %v1396_v3 = vadd.f32 %v8162_v62, %v6504_v22 }
 0x2ff   :  { %4969 = vrcp.f32 %v3960_v48  ;;  %v2704_v59 = vmax.f32 %v2215_v31, 0.0  ;;  %v2218_v34 = vpop.f32.mrb[12].mxu1  ;;  %v1652_v31 = vmax.f32 %v1390_v57, 0.0  ;;  %v1655_v8 = vmax.f32 %v1398_v18, 0.0 }
 0x300   :  { %v4960_v5 = vpop.eup %4959  ;;  %v4666_v1 = vmul.f32 -1.442695, %v3002_v26  ;;  %v2219_v23 = vadd.f32 %v2218_v34, %v7214_v24  ;;  %v2220_v33 = vpop.f32.mrb[13].mxu1  ;;  %2535 = vmatmul.mubr.f32.gmra.mrb[118].mxu1 %v1646_v15 }
 0x301   :  { %v4962_v56 = vpop.eup %4961  ;;  %v3961_v37 = vadd.f32 1.0, %v4960_v5  ;;  %v2221_v28 = vadd.f32 %v2220_v33, %v7220_v0  ;;  %2540 = vmatprep.mubr.f32.mxu1 %v1649_v61  ;;  %v3006_v4 = vpop.f32.mrb[160].mxu0  ;;  %3269 = vmatprep.mubr.f32.mxu0 %v2704_v59 }
 0x302   :  { %4971 = vpow2.f32 %v4666_v1  ;;  %v3007_v60 = vadd.f32 %v7553_v63, %v3006_v4  ;;  %v3008_v10 = vpop.f32.mrb[161].mxu0  ;;  %3270 = vmatmul.mubr.f32.gmra.mrb[10].mxu0 %v2703_v25  ;;  %v2705_v42 = vmax.f32 %v2219_v23, 0.0  ;;  %v1654_v23 = vmax.f32 %v1396_v3, 0.0 }
 0x303   :  { %4973 = vrcp.f32 %v3961_v37  ;;  %v2706_v40 = vmax.f32 %v2221_v28, 0.0  ;;  %v2224_v39 = vpop.f32.mrb[14].mxu1 }
 0x304   :  { %v4964_v27 = vpop.eup %4963  ;;  %v4667_v13 = vmul.f32 -1.442695, %v3007_v60  ;;  %v2225_v2 = vadd.f32 %v2224_v39, %v7214_v24  ;;  %v2226_v11 = vpop.f32.mrb[15].mxu1  ;;  %2541 = vmatmul.mubr.f32.gmra.mrb[120].mxu1 %v1648_v14 }
 0x305   :  { %v4966_v51 = vpop.eup %4965  ;;  %v3962_v53 = vadd.f32 1.0, %v4964_v27  ;;  %v2227_v16 = vadd.f32 %v2226_v11, %v7220_v0  ;;  %2546 = vmatprep.mubr.f32.mxu1 %v1651_v32  ;;  %v3011_v38 = vpop.f32.mrb[162].mxu0  ;;  %3274 = vmatprep.mubr.f32.mxu0 %v2706_v40 }
 0x306   :  { %4975 = vpow2.f32 %v4667_v13  ;;  %v3012_v35 = vadd.f32 %v7553_v63, %v3011_v38  ;;  %v3013_v36 = vpop.f32.mrb[163].mxu0  ;;  %3275 = vmatmul.mubr.f32.gmra.mrb[12].mxu0 %v2705_v42  ;;  %v2707_v45 = vmax.f32 %v2225_v2, 0.0 }
 0x307   :  { %4977 = vrcp.f32 %v3962_v53  ;;  %v2708_v46 = vmax.f32 %v2227_v16, 0.0  ;;  %v2230_v9 = vpop.f32.mrb[16].mxu1 }
 0x308   :  { %v4968_v19 = vpop.eup %4967  ;;  %v4668_v58 = vmul.f32 -1.442695, %v3012_v35  ;;  %v2231_v52 = vadd.f32 %v2230_v9, %v7214_v24  ;;  %v2232_v29 = vpop.f32.mrb[17].mxu1  ;;  %2547 = vmatmul.mubr.f32.gmra.mrb[122].mxu1 %v1650_v47 }
 0x309   :  { %v4970_v50 = vpop.eup %4969  ;;  %v3963_v44 = vadd.f32 1.0, %v4968_v19  ;;  %v2233_v55 = vadd.f32 %v2232_v29, %v7220_v0  ;;  %2552 = vmatprep.mubr.f32.mxu1 %v1653_v17  ;;  %v3016_v48 = vpop.f32.mrb[164].mxu0  ;;  %3279 = vmatprep.mubr.f32.mxu0 %v2708_v46 }
 0x30a   :  { %4979 = vpow2.f32 %v4668_v58  ;;  %v3017_v15 = vadd.f32 %v7553_v63, %v3016_v48  ;;  %v3018_v54 = vpop.f32.mrb[165].mxu0  ;;  %3280 = vmatmul.mubr.f32.gmra.mrb[14].mxu0 %v2707_v45  ;;  %v2709_v12 = vmax.f32 %v2231_v52, 0.0 }
 0x30b   :  { %4981 = vrcp.f32 %v3963_v44  ;;  %v2710_v6 = vmax.f32 %v2233_v55, 0.0  ;;  %v2236_v26 = vpop.f32.mrb[18].mxu1 }
 0x30c   :  { %v4972_v43 = vpop.eup %4971  ;;  %v4669_v59 = vmul.f32 -1.442695, %v3017_v15  ;;  %v2237_v34 = vadd.f32 %v2236_v26, %v7214_v24  ;;  %v2238_v61 = vpop.f32.mrb[19].mxu1  ;;  %2553 = vmatmul.mubr.f32.gmra.mrb[124].mxu1 %v1652_v31 }
 0x30d   :  { %v4974_v5 = vpop.eup %4973  ;;  %v3964_v25 = vadd.f32 1.0, %v4972_v43  ;;  %v2239_v22 = vadd.f32 %v2238_v61, %v7220_v0  ;;  %2558 = vmatprep.mubr.f32.mxu1 %v1655_v8  ;;  %v3021_v1 = vpop.f32.mrb[166].mxu0  ;;  %3284 = vmatprep.mubr.f32.mxu0 %v2710_v6 }
 0x30e   :  { %4983 = vpow2.f32 %v4669_v59  ;;  %v3022_v33 = vadd.f32 %v7553_v63, %v3021_v1  ;;  %v3023_v56 = vpop.f32.mrb[167].mxu0  ;;  %3285 = vmatmul.mubr.f32.gmra.mrb[16].mxu0 %v2709_v12  ;;  %v2711_v14 = vmax.f32 %v2237_v34, 0.0 }
 0x30f   :  { %4985 = vrcp.f32 %v3964_v25  ;;  %v2712_v37 = vmax.f32 %v2239_v22, 0.0  ;;  %v2242_v28 = vpop.f32.mrb[20].mxu1 }
 0x310   :  { %v4976_v4 = vpop.eup %4975  ;;  %v4670_v20 = vmul.f32 -1.442695, %v3022_v33  ;;  %v2243_v49 = vadd.f32 %v2242_v28, %v7214_v24  ;;  %v2244_v60 = vpop.f32.mrb[21].mxu1  ;;  %2559 = vmatmul.mubr.f32.gmra.mrb[126].mxu1 %v1654_v23 }
 0x311   :  { %v4978_v10 = vpop.eup %4977  ;;  %v3965_v7 = vadd.f32 1.0, %v4976_v4  ;;  %v2245_v30 = vadd.f32 %v2244_v60, %v7220_v0  ;;  %v3026_v40 = vpop.f32.mrb[168].mxu0  ;;  %3289 = vmatprep.mubr.f32.mxu0 %v2712_v37 }
 0x312   :  { %4987 = vpow2.f32 %v4670_v20  ;;  %v3027_v39 = vadd.f32 %v7553_v63, %v3026_v40  ;;  %v3028_v32 = vpop.f32.mrb[169].mxu0  ;;  %3290 = vmatmul.mubr.f32.gmra.mrb[18].mxu0 %v2711_v14  ;;  %v2713_v2 = vmax.f32 %v2243_v49, 0.0 }
 0x313   :  { %4989 = vrcp.f32 %v3965_v7  ;;  %v2714_v27 = vmax.f32 %v2245_v30, 0.0  ;;  %v2248_v42 = vpop.f32.mrb[22].mxu1 }
 0x314   :  { %v4980_v13 = vpop.eup %4979  ;;  %v4671_v11 = vmul.f32 -1.442695, %v3027_v39  ;;  %v2249_v51 = vadd.f32 %v2248_v42, %v7214_v24  ;;  %v2250_v53 = vpop.f32.mrb[23].mxu1 }
 0x315   :  { %v4982_v16 = vpop.eup %4981  ;;  %v3966_v38 = vadd.f32 1.0, %v4980_v13  ;;  %v2251_v47 = vadd.f32 %v2250_v53, %v7220_v0  ;;  %v3031_v41 = vpop.f32.mrb[170].mxu0  ;;  %3294 = vmatprep.mubr.f32.mxu0 %v2714_v27 }
 0x316   :  { %4991 = vpow2.f32 %v4671_v11  ;;  %v3032_v57 = vadd.f32 %v7553_v63, %v3031_v41  ;;  %v3033_v35 = vpop.f32.mrb[171].mxu0  ;;  %3295 = vmatmul.mubr.f32.gmra.mrb[20].mxu0 %v2713_v2  ;;  %v2715_v46 = vmax.f32 %v2249_v51, 0.0 }
 0x317   :  { %4993 = vrcp.f32 %v3966_v38  ;;  %v2716_v36 = vmax.f32 %v2251_v47, 0.0  ;;  %v2254_v21 = vpop.f32.mrb[24].mxu1 }
 0x318   :  { %v4984_v18 = vpop.eup %4983  ;;  %v4672_v9 = vmul.f32 -1.442695, %v3032_v57  ;;  %v2255_v17 = vadd.f32 %v2254_v21, %v7214_v24  ;;  %v2256_v19 = vpop.f32.mrb[25].mxu1 }
 0x319   :  { %v4986_v45 = vpop.eup %4985  ;;  %v3967_v58 = vadd.f32 1.0, %v4984_v18  ;;  %v2257_v52 = vadd.f32 %v2256_v19, %v7220_v0  ;;  %v3036_v29 = vpop.f32.mrb[172].mxu0  ;;  %3299 = vmatprep.mubr.f32.mxu0 %v2716_v36 }
 0x31a   :  { %4995 = vpow2.f32 %v4672_v9  ;;  %v3037_v50 = vadd.f32 %v7553_v63, %v3036_v29  ;;  %v3038_v44 = vpop.f32.mrb[173].mxu0  ;;  %3300 = vmatmul.mubr.f32.gmra.mrb[22].mxu0 %v2715_v46  ;;  %v2717_v62 = vmax.f32 %v2255_v17, 0.0  ;;  %v7727_v63 = vld [vmem:[%s7950_s6] ss:$0 sm:$0xff] }
 0x31b   :  { %4997 = vrcp.f32 %v3967_v58  ;;  %v2718_v55 = vmax.f32 %v2257_v52, 0.0  ;;  %v2260_v48 = vpop.f32.mrb[26].mxu1 }
 0x31c   :  { %v4988_v31 = vpop.eup %4987  ;;  %v4673_v3 = vmul.f32 -1.442695, %v3037_v50  ;;  %v2261_v15 = vadd.f32 %v2260_v48, %v7214_v24  ;;  %v2262_v54 = vpop.f32.mrb[27].mxu1 }
 0x31d   :  { %v4990_v6 = vpop.eup %4989  ;;  %v3968_v26 = vadd.f32 1.0, %v4988_v31  ;;  %v2263_v8 = vadd.f32 %v2262_v54, %v7220_v0  ;;  %v3041_v43 = vpop.f32.mrb[174].mxu0  ;;  %3304 = vmatprep.mubr.f32.mxu0 %v2718_v55 }
 0x31e   :  { %4999 = vpow2.f32 %v4673_v3  ;;  %v3042_v12 = vadd.f32 %v7727_v63, %v3041_v43  ;;  %v3043_v59 = vpop.f32.mrb[175].mxu0  ;;  %3305 = vmatmul.mubr.f32.gmra.mrb[24].mxu0 %v2717_v62  ;;  %v2719_v25 = vmax.f32 %v2261_v15, 0.0 }
 0x31f   :  { %5001 = vrcp.f32 %v3968_v26  ;;  %v2720_v34 = vmax.f32 %v2263_v8, 0.0  ;;  %v2266_v61 = vpop.f32.mrb[28].mxu1 }
 0x320   :  { %v4992_v5 = vpop.eup %4991  ;;  %v4674_v22 = vmul.f32 -1.442695, %v3042_v12  ;;  %v2267_v1 = vadd.f32 %v2266_v61, %v7214_v24  ;;  %v2268_v23 = vpop.f32.mrb[29].mxu1 }
 0x321   :  { %v4994_v33 = vpop.eup %4993  ;;  %v3969_v56 = vadd.f32 1.0, %v4992_v5  ;;  %v2269_v37 = vadd.f32 %v2268_v23, %v7220_v0  ;;  %v3046_v28 = vpop.f32.mrb[176].mxu0  ;;  %3309 = vmatprep.mubr.f32.mxu0 %v2720_v34 }
 0x322   :  { %5003 = vpow2.f32 %v4674_v22  ;;  %v3047_v4 = vadd.f32 %v7727_v63, %v3046_v28  ;;  %v3048_v14 = vpop.f32.mrb[177].mxu0  ;;  %3310 = vmatmul.mubr.f32.gmra.mrb[26].mxu0 %v2719_v25  ;;  %v2721_v10 = vmax.f32 %v2267_v1, 0.0 }
 0x323   :  { %5005 = vrcp.f32 %v3969_v56  ;;  %v2722_v20 = vmax.f32 %v2269_v37, 0.0  ;;  %v2272_v49 = vpop.f32.mrb[30].mxu1 }
 0x324   :  { %v4996_v60 = vpop.eup %4995  ;;  %v4675_v7 = vmul.f32 -1.442695, %v3047_v4  ;;  %v2273_v30 = vadd.f32 %v2272_v49, %v7214_v24  ;;  %v2274_v40 = vpop.f32.mrb[31].mxu1 }
 0x325   :  { %v4998_v39 = vpop.eup %4997  ;;  %v3970_v32 = vadd.f32 1.0, %v4996_v60  ;;  %v2275_v27 = vadd.f32 %v2274_v40, %v7220_v0  ;;  %v3051_v42 = vpop.f32.mrb[178].mxu0  ;;  %3314 = vmatprep.mubr.f32.mxu0 %v2722_v20 }
 0x326   :  { %5007 = vpow2.f32 %v4675_v7  ;;  %v3052_v13 = vadd.f32 %v7727_v63, %v3051_v42  ;;  %v3053_v2 = vpop.f32.mrb[179].mxu0  ;;  %3315 = vmatmul.mubr.f32.gmra.mrb[28].mxu0 %v2721_v10  ;;  %v2723_v16 = vmax.f32 %v2273_v30, 0.0 }
 0x327   :  { %5009 = vrcp.f32 %v3970_v32  ;;  %v2724_v11 = vmax.f32 %v2275_v27, 0.0  ;;  %v2278_v51 = vpop.f32.mrb[32].mxu1 }
 0x328   :  { %v5000_v53 = vpop.eup %4999  ;;  %v4676_v38 = vmul.f32 -1.442695, %v3052_v13  ;;  %v2279_v47 = vadd.f32 %v2278_v51, %v7214_v24  ;;  %v2280_v41 = vpop.f32.mrb[33].mxu1 }
 0x329   :  { %v5002_v57 = vpop.eup %5001  ;;  %v3971_v35 = vadd.f32 1.0, %v5000_v53  ;;  %v2281_v36 = vadd.f32 %v2280_v41, %v7220_v0  ;;  %v3056_v21 = vpop.f32.mrb[180].mxu0  ;;  %3319 = vmatprep.mubr.f32.mxu0 %v2724_v11 }
 0x32a   :  { %5011 = vpow2.f32 %v4676_v38  ;;  %v3057_v18 = vadd.f32 %v7727_v63, %v3056_v21  ;;  %v3058_v46 = vpop.f32.mrb[181].mxu0  ;;  %3320 = vmatmul.mubr.f32.gmra.mrb[30].mxu0 %v2723_v16  ;;  %v2725_v45 = vmax.f32 %v2279_v47, 0.0 }
 0x32b   :  { %5013 = vrcp.f32 %v3971_v35  ;;  %v2726_v9 = vmax.f32 %v2281_v36, 0.0  ;;  %v2284_v17 = vpop.f32.mrb[34].mxu1 }
 0x32c   :  { %v5004_v19 = vpop.eup %5003  ;;  %v4677_v58 = vmul.f32 -1.442695, %v3057_v18  ;;  %v2285_v52 = vadd.f32 %v2284_v17, %v7214_v24  ;;  %v2286_v29 = vpop.f32.mrb[35].mxu1 }
 0x32d   :  { %v5006_v50 = vpop.eup %5005  ;;  %v3972_v44 = vadd.f32 1.0, %v5004_v19  ;;  %v2287_v55 = vadd.f32 %v2286_v29, %v7220_v0  ;;  %v3061_v48 = vpop.f32.mrb[182].mxu0  ;;  %3324 = vmatprep.mubr.f32.mxu0 %v2726_v9 }
 0x32e   :  { %5015 = vpow2.f32 %v4677_v58  ;;  %v3062_v31 = vadd.f32 %v7727_v63, %v3061_v48  ;;  %v3063_v62 = vpop.f32.mrb[183].mxu0  ;;  %3325 = vmatmul.mubr.f32.gmra.mrb[32].mxu0 %v2725_v45  ;;  %v2727_v6 = vmax.f32 %v2285_v52, 0.0 }
 0x32f   :  { %5017 = vrcp.f32 %v3972_v44  ;;  %v2728_v3 = vmax.f32 %v2287_v55, 0.0  ;;  %v2290_v15 = vpop.f32.mrb[36].mxu1 }
 0x330   :  { %v5008_v54 = vpop.eup %5007  ;;  %v4678_v26 = vmul.f32 -1.442695, %v3062_v31  ;;  %v2291_v8 = vadd.f32 %v2290_v15, %v7214_v24  ;;  %v2292_v43 = vpop.f32.mrb[37].mxu1 }
 0x331   :  { %v5010_v12 = vpop.eup %5009  ;;  %v3973_v59 = vadd.f32 1.0, %v5008_v54  ;;  %v2293_v34 = vadd.f32 %v2292_v43, %v7220_v0  ;;  %v3066_v61 = vpop.f32.mrb[184].mxu0  ;;  %3329 = vmatprep.mubr.f32.mxu0 %v2728_v3 }
 0x332   :  { %5019 = vpow2.f32 %v4678_v26  ;;  %v3067_v5 = vadd.f32 %v7727_v63, %v3066_v61  ;;  %v3068_v25 = vpop.f32.mrb[185].mxu0  ;;  %3330 = vmatmul.mubr.f32.gmra.mrb[34].mxu0 %v2727_v6  ;;  %v2729_v33 = vmax.f32 %v2291_v8, 0.0 }
 0x333   :  { %5021 = vrcp.f32 %v3973_v59  ;;  %v2730_v22 = vmax.f32 %v2293_v34, 0.0  ;;  %v2296_v1 = vpop.f32.mrb[38].mxu1 }
 0x334   :  { %v5012_v23 = vpop.eup %5011  ;;  %v4679_v56 = vmul.f32 -1.442695, %v3067_v5  ;;  %v2297_v37 = vadd.f32 %v2296_v1, %v7214_v24  ;;  %v2298_v28 = vpop.f32.mrb[39].mxu1 }
 0x335   :  { %v5014_v4 = vpop.eup %5013  ;;  %v3974_v14 = vadd.f32 1.0, %v5012_v23  ;;  %v2299_v20 = vadd.f32 %v2298_v28, %v7220_v0  ;;  %v3071_v49 = vpop.f32.mrb[186].mxu0  ;;  %3334 = vmatprep.mubr.f32.mxu0 %v2730_v22 }
 0x336   :  { %5023 = vpow2.f32 %v4679_v56  ;;  %v3072_v60 = vadd.f32 %v7727_v63, %v3071_v49  ;;  %v3073_v10 = vpop.f32.mrb[187].mxu0  ;;  %3335 = vmatmul.mubr.f32.gmra.mrb[36].mxu0 %v2729_v33  ;;  %v2731_v39 = vmax.f32 %v2297_v37, 0.0 }
 0x337   :  { %5025 = vrcp.f32 %v3974_v14  ;;  %v2732_v7 = vmax.f32 %v2299_v20, 0.0  ;;  %v2302_v30 = vpop.f32.mrb[40].mxu1 }
 0x338   :  { %v5016_v40 = vpop.eup %5015  ;;  %v4680_v32 = vmul.f32 -1.442695, %v3072_v60  ;;  %v2303_v27 = vadd.f32 %v2302_v30, %v7214_v24  ;;  %v2304_v42 = vpop.f32.mrb[41].mxu1 }
 0x339   :  { %v5018_v13 = vpop.eup %5017  ;;  %v3975_v2 = vadd.f32 1.0, %v5016_v40  ;;  %v2305_v11 = vadd.f32 %v2304_v42, %v7220_v0  ;;  %v3076_v51 = vpop.f32.mrb[188].mxu0  ;;  %3339 = vmatprep.mubr.f32.mxu0 %v2732_v7 }
 0x33a   :  { %5027 = vpow2.f32 %v4680_v32  ;;  %v3077_v53 = vadd.f32 %v7727_v63, %v3076_v51  ;;  %v3078_v16 = vpop.f32.mrb[189].mxu0  ;;  %3340 = vmatmul.mubr.f32.gmra.mrb[38].mxu0 %v2731_v39  ;;  %v2733_v57 = vmax.f32 %v2303_v27, 0.0 }
 0x33b   :  { %5029 = vrcp.f32 %v3975_v2  ;;  %v2734_v38 = vmax.f32 %v2305_v11, 0.0  ;;  %v2308_v47 = vpop.f32.mrb[42].mxu1 }
 0x33c   :  { %v5020_v41 = vpop.eup %5019  ;;  %v4681_v35 = vmul.f32 -1.442695, %v3077_v53  ;;  %v2309_v36 = vadd.f32 %v2308_v47, %v7214_v24  ;;  %v2310_v21 = vpop.f32.mrb[43].mxu1 }
 0x33d   :  { %v5022_v18 = vpop.eup %5021  ;;  %v3976_v46 = vadd.f32 1.0, %v5020_v41  ;;  %v2311_v9 = vadd.f32 %v2310_v21, %v7220_v0  ;;  %v3081_v17 = vpop.f32.mrb[190].mxu0  ;;  %3344 = vmatprep.mubr.f32.mxu0 %v2734_v38 }
 0x33e   :  { %5031 = vpow2.f32 %v4681_v35  ;;  %v3082_v19 = vadd.f32 %v7727_v63, %v3081_v17  ;;  %v3083_v45 = vpop.f32.mrb[191].mxu0  ;;  %3345 = vmatmul.mubr.f32.gmra.mrb[40].mxu0 %v2733_v57  ;;  %v2735_v50 = vmax.f32 %v2309_v36, 0.0 }
 0x33f   :  { %5033 = vrcp.f32 %v3976_v46  ;;  %v2736_v58 = vmax.f32 %v2311_v9, 0.0  ;;  %v2314_v52 = vpop.f32.mrb[44].mxu1 }
 0x340   :  { %v5024_v29 = vpop.eup %5023  ;;  %v4682_v44 = vmul.f32 -1.442695, %v3082_v19  ;;  %v2315_v55 = vadd.f32 %v2314_v52, %v7214_v24  ;;  %v2316_v48 = vpop.f32.mrb[45].mxu1 }
 0x341   :  { %v5026_v31 = vpop.eup %5025  ;;  %v3977_v62 = vadd.f32 1.0, %v5024_v29  ;;  %v2317_v3 = vadd.f32 %v2316_v48, %v7220_v0  ;;  %v3086_v15 = vpop.f32.mrb[192].mxu0  ;;  %3349 = vmatprep.mubr.f32.mxu0 %v2736_v58 }
 0x342   :  { %5035 = vpow2.f32 %v4682_v44  ;;  %v3087_v54 = vadd.f32 %v7727_v63, %v3086_v15  ;;  %v3088_v6 = vpop.f32.mrb[193].mxu0  ;;  %3350 = vmatmul.mubr.f32.gmra.mrb[42].mxu0 %v2735_v50  ;;  %v2737_v12 = vmax.f32 %v2315_v55, 0.0 }
 0x343   :  { %5037 = vrcp.f32 %v3977_v62  ;;  %v2738_v26 = vmax.f32 %v2317_v3, 0.0  ;;  %v2320_v8 = vpop.f32.mrb[46].mxu1 }
 0x344   :  { %v5028_v43 = vpop.eup %5027  ;;  %v4683_v59 = vmul.f32 -1.442695, %v3087_v54  ;;  %v2321_v34 = vadd.f32 %v2320_v8, %v7214_v24  ;;  %v2322_v61 = vpop.f32.mrb[47].mxu1 }
 0x345   :  { %v5030_v5 = vpop.eup %5029  ;;  %v3978_v25 = vadd.f32 1.0, %v5028_v43  ;;  %v2323_v22 = vadd.f32 %v2322_v61, %v7220_v0  ;;  %v3091_v1 = vpop.f32.mrb[194].mxu0  ;;  %3354 = vmatprep.mubr.f32.mxu0 %v2738_v26 }
 0x346   :  { %5039 = vpow2.f32 %v4683_v59  ;;  %v3092_v23 = vadd.f32 %v7727_v63, %v3091_v1  ;;  %v3093_v33 = vpop.f32.mrb[195].mxu0  ;;  %3355 = vmatmul.mubr.f32.gmra.mrb[44].mxu0 %v2737_v12  ;;  %v2739_v4 = vmax.f32 %v2321_v34, 0.0 }
 0x347   :  { %5041 = vrcp.f32 %v3978_v25  ;;  %v2740_v56 = vmax.f32 %v2323_v22, 0.0  ;;  %v2326_v37 = vpop.f32.mrb[48].mxu1 }
 0x348   :  { %v5032_v28 = vpop.eup %5031  ;;  %v4684_v14 = vmul.f32 -1.442695, %v3092_v23  ;;  %v2327_v20 = vadd.f32 %v2326_v37, %v7214_v24  ;;  %v2328_v49 = vpop.f32.mrb[49].mxu1 }
 0x349   :  { %v5034_v60 = vpop.eup %5033  ;;  %v3979_v10 = vadd.f32 1.0, %v5032_v28  ;;  %v2329_v7 = vadd.f32 %v2328_v49, %v7220_v0  ;;  %v3096_v30 = vpop.f32.mrb[196].mxu0  ;;  %3359 = vmatprep.mubr.f32.mxu0 %v2740_v56 }
 0x34a   :  { %5043 = vpow2.f32 %v4684_v14  ;;  %v3097_v40 = vadd.f32 %v7727_v63, %v3096_v30  ;;  %v3098_v39 = vpop.f32.mrb[197].mxu0  ;;  %3360 = vmatmul.mubr.f32.gmra.mrb[46].mxu0 %v2739_v4  ;;  %v2741_v13 = vmax.f32 %v2327_v20, 0.0 }
 0x34b   :  { %5045 = vrcp.f32 %v3979_v10  ;;  %v2742_v32 = vmax.f32 %v2329_v7, 0.0  ;;  %v2332_v27 = vpop.f32.mrb[50].mxu1 }
 0x34c   :  { %v5036_v42 = vpop.eup %5035  ;;  %v4685_v2 = vmul.f32 -1.442695, %v3097_v40  ;;  %v2333_v11 = vadd.f32 %v2332_v27, %v7214_v24  ;;  %v2334_v51 = vpop.f32.mrb[51].mxu1 }
 0x34d   :  { %v5038_v53 = vpop.eup %5037  ;;  %v3980_v16 = vadd.f32 1.0, %v5036_v42  ;;  %v2335_v38 = vadd.f32 %v2334_v51, %v7220_v0  ;;  %v3101_v47 = vpop.f32.mrb[198].mxu0  ;;  %3364 = vmatprep.mubr.f32.mxu0 %v2742_v32 }
 0x34e   :  { %5047 = vpow2.f32 %v4685_v2  ;;  %v3102_v41 = vadd.f32 %v7727_v63, %v3101_v47  ;;  %v3103_v57 = vpop.f32.mrb[199].mxu0  ;;  %3365 = vmatmul.mubr.f32.gmra.mrb[48].mxu0 %v2741_v13  ;;  %v2743_v18 = vmax.f32 %v2333_v11, 0.0 }
 0x34f   :  { %5049 = vrcp.f32 %v3980_v16  ;;  %v2744_v35 = vmax.f32 %v2335_v38, 0.0  ;;  %v2338_v36 = vpop.f32.mrb[52].mxu1 }
 0x350   :  { %v5040_v21 = vpop.eup %5039  ;;  %v4686_v46 = vmul.f32 -1.442695, %v3102_v41  ;;  %v2339_v9 = vadd.f32 %v2338_v36, %v7214_v24  ;;  %v2340_v17 = vpop.f32.mrb[53].mxu1 }
 0x351   :  { %v5042_v19 = vpop.eup %5041  ;;  %v3981_v45 = vadd.f32 1.0, %v5040_v21  ;;  %v2341_v58 = vadd.f32 %v2340_v17, %v7220_v0  ;;  %v3106_v52 = vpop.f32.mrb[200].mxu0  ;;  %3369 = vmatprep.mubr.f32.mxu0 %v2744_v35 }
 0x352   :  { %5051 = vpow2.f32 %v4686_v46  ;;  %v3107_v29 = vadd.f32 %v7727_v63, %v3106_v52  ;;  %v3108_v50 = vpop.f32.mrb[201].mxu0  ;;  %3370 = vmatmul.mubr.f32.gmra.mrb[50].mxu0 %v2743_v18  ;;  %v2745_v31 = vmax.f32 %v2339_v9, 0.0 }
 0x353   :  { %5053 = vrcp.f32 %v3981_v45  ;;  %v2746_v44 = vmax.f32 %v2341_v58, 0.0  ;;  %v2344_v55 = vpop.f32.mrb[54].mxu1 }
 0x354   :  { %v5044_v48 = vpop.eup %5043  ;;  %v4687_v62 = vmul.f32 -1.442695, %v3107_v29  ;;  %v2345_v3 = vadd.f32 %v2344_v55, %v7214_v24  ;;  %v2346_v15 = vpop.f32.mrb[55].mxu1 }
 0x355   :  { %v5046_v54 = vpop.eup %5045  ;;  %v3982_v6 = vadd.f32 1.0, %v5044_v48  ;;  %v2347_v26 = vadd.f32 %v2346_v15, %v7220_v0  ;;  %v3111_v8 = vpop.f32.mrb[202].mxu0  ;;  %3374 = vmatprep.mubr.f32.mxu0 %v2746_v44 }
 0x356   :  { %5055 = vpow2.f32 %v4687_v62  ;;  %v3112_v43 = vadd.f32 %v7727_v63, %v3111_v8  ;;  %v3113_v12 = vpop.f32.mrb[203].mxu0  ;;  %3375 = vmatmul.mubr.f32.gmra.mrb[52].mxu0 %v2745_v31  ;;  %v2747_v5 = vmax.f32 %v2345_v3, 0.0 }
 0x357   :  { %5057 = vrcp.f32 %v3982_v6  ;;  %v2748_v59 = vmax.f32 %v2347_v26, 0.0  ;;  %v2350_v34 = vpop.f32.mrb[56].mxu1 }
 0x358   :  { %v5048_v61 = vpop.eup %5047  ;;  %v4688_v25 = vmul.f32 -1.442695, %v3112_v43  ;;  %v2351_v22 = vadd.f32 %v2350_v34, %v7214_v24  ;;  %v2352_v1 = vpop.f32.mrb[57].mxu1 }
 0x359   :  { %v5050_v23 = vpop.eup %5049  ;;  %v3983_v33 = vadd.f32 1.0, %v5048_v61  ;;  %v2353_v56 = vadd.f32 %v2352_v1, %v7220_v0  ;;  %v3116_v37 = vpop.f32.mrb[204].mxu0  ;;  %3379 = vmatprep.mubr.f32.mxu0 %v2748_v59 }
 0x35a   :  { %5059 = vpow2.f32 %v4688_v25  ;;  %v3117_v28 = vadd.f32 %v7727_v63, %v3116_v37  ;;  %v3118_v4 = vpop.f32.mrb[205].mxu0  ;;  %3380 = vmatmul.mubr.f32.gmra.mrb[54].mxu0 %v2747_v5  ;;  %v2749_v60 = vmax.f32 %v2351_v22, 0.0 }
 0x35b   :  { %5061 = vrcp.f32 %v3983_v33  ;;  %v2750_v14 = vmax.f32 %v2353_v56, 0.0  ;;  %v2356_v20 = vpop.f32.mrb[58].mxu1 }
 0x35c   :  { %v5052_v49 = vpop.eup %5051  ;;  %v4689_v10 = vmul.f32 -1.442695, %v3117_v28  ;;  %v2357_v7 = vadd.f32 %v2356_v20, %v7214_v24  ;;  %v2358_v30 = vpop.f32.mrb[59].mxu1 }
 0x35d   :  { %v5054_v40 = vpop.eup %5053  ;;  %v3984_v39 = vadd.f32 1.0, %v5052_v49  ;;  %v2359_v32 = vadd.f32 %v2358_v30, %v7220_v0  ;;  %v3121_v27 = vpop.f32.mrb[206].mxu0  ;;  %3384 = vmatprep.mubr.f32.mxu0 %v2750_v14 }
 0x35e   :  { %5063 = vpow2.f32 %v4689_v10  ;;  %v3122_v42 = vadd.f32 %v7727_v63, %v3121_v27  ;;  %v3123_v13 = vpop.f32.mrb[207].mxu0  ;;  %3385 = vmatmul.mubr.f32.gmra.mrb[56].mxu0 %v2749_v60  ;;  %v2751_v53 = vmax.f32 %v2357_v7, 0.0 }
 0x35f   :  { %5065 = vrcp.f32 %v3984_v39  ;;  %v2752_v2 = vmax.f32 %v2359_v32, 0.0  ;;  %v2362_v11 = vpop.f32.mrb[60].mxu1 }
 0x360   :  { %v5056_v51 = vpop.eup %5055  ;;  %v4690_v16 = vmul.f32 -1.442695, %v3122_v42  ;;  %v2363_v38 = vadd.f32 %v2362_v11, %v7214_v24  ;;  %v2364_v47 = vpop.f32.mrb[61].mxu1 }
 0x361   :  { %v5058_v41 = vpop.eup %5057  ;;  %v3985_v57 = vadd.f32 1.0, %v5056_v51  ;;  %v2365_v35 = vadd.f32 %v2364_v47, %v7220_v0  ;;  %v3126_v36 = vpop.f32.mrb[208].mxu0  ;;  %3389 = vmatprep.mubr.f32.mxu0 %v2752_v2 }
 0x362   :  { %5067 = vpow2.f32 %v4690_v16  ;;  %v3127_v21 = vadd.f32 %v7727_v63, %v3126_v36  ;;  %v3128_v18 = vpop.f32.mrb[209].mxu0  ;;  %3390 = vmatmul.mubr.f32.gmra.mrb[58].mxu0 %v2751_v53  ;;  %v2753_v19 = vmax.f32 %v2363_v38, 0.0 }
 0x363   :  { %5069 = vrcp.f32 %v3985_v57  ;;  %v2754_v46 = vmax.f32 %v2365_v35, 0.0  ;;  %v2368_v9 = vpop.f32.mrb[62].mxu1 }
 0x364   :  { %v5060_v17 = vpop.eup %5059  ;;  %v4691_v45 = vmul.f32 -1.442695, %v3127_v21  ;;  %v2369_v58 = vadd.f32 %v2368_v9, %v7214_v24  ;;  %v2370_v52 = vpop.f32.mrb[63].mxu1 }
 0x365   :  { %v5062_v29 = vpop.eup %5061  ;;  %v3986_v50 = vadd.f32 1.0, %v5060_v17  ;;  %v2371_v44 = vadd.f32 %v2370_v52, %v7220_v0  ;;  %v3131_v55 = vpop.f32.mrb[210].mxu0  ;;  %3394 = vmatprep.mubr.f32.mxu0 %v2754_v46 }
 0x366   :  { %5071 = vpow2.f32 %v4691_v45  ;;  %v3132_v48 = vadd.f32 %v7727_v63, %v3131_v55  ;;  %v3133_v31 = vpop.f32.mrb[211].mxu0  ;;  %3395 = vmatmul.mubr.f32.gmra.mrb[60].mxu0 %v2753_v19  ;;  %v2755_v54 = vmax.f32 %v2369_v58, 0.0 }
 0x367   :  { %5073 = vrcp.f32 %v3986_v50  ;;  %v2756_v62 = vmax.f32 %v2371_v44, 0.0  ;;  %v2374_v3 = vpop.f32.mrb[64].mxu1 }
 0x368   :  { %v5064_v15 = vpop.eup %5063  ;;  %v4692_v6 = vmul.f32 -1.442695, %v3132_v48  ;;  %v2375_v26 = vadd.f32 %v2374_v3, %v7214_v24  ;;  %v2376_v8 = vpop.f32.mrb[65].mxu1 }
 0x369   :  { %v5066_v43 = vpop.eup %5065  ;;  %v3987_v12 = vadd.f32 1.0, %v5064_v15  ;;  %v2377_v59 = vadd.f32 %v2376_v8, %v7220_v0  ;;  %v3136_v34 = vpop.f32.mrb[212].mxu0  ;;  %3399 = vmatprep.mubr.f32.mxu0 %v2756_v62 }
 0x36a   :  { %5075 = vpow2.f32 %v4692_v6  ;;  %v3137_v61 = vadd.f32 %v7727_v63, %v3136_v34  ;;  %v3138_v5 = vpop.f32.mrb[213].mxu0  ;;  %3400 = vmatmul.mubr.f32.gmra.mrb[62].mxu0 %v2755_v54  ;;  %v2757_v23 = vmax.f32 %v2375_v26, 0.0 }
 0x36b   :  { %5077 = vrcp.f32 %v3987_v12  ;;  %v2758_v25 = vmax.f32 %v2377_v59, 0.0  ;;  %v2380_v22 = vpop.f32.mrb[66].mxu1 }
 0x36c   :  { %v5068_v1 = vpop.eup %5067  ;;  %v4693_v33 = vmul.f32 -1.442695, %v3137_v61  ;;  %v2381_v56 = vadd.f32 %v2380_v22, %v7214_v24  ;;  %v2382_v37 = vpop.f32.mrb[67].mxu1 }
 0x36d   :  { %v5070_v28 = vpop.eup %5069  ;;  %v3988_v4 = vadd.f32 1.0, %v5068_v1  ;;  %v2383_v14 = vadd.f32 %v2382_v37, %v7220_v0  ;;  %v3141_v20 = vpop.f32.mrb[214].mxu0  ;;  %3404 = vmatprep.mubr.f32.mxu0 %v2758_v25 }
 0x36e   :  { %5079 = vpow2.f32 %v4693_v33  ;;  %v3142_v49 = vadd.f32 %v7727_v63, %v3141_v20  ;;  %v3143_v60 = vpop.f32.mrb[215].mxu0  ;;  %3405 = vmatmul.mubr.f32.gmra.mrb[64].mxu0 %v2757_v23  ;;  %v2759_v40 = vmax.f32 %v2381_v56, 0.0 }
 0x36f   :  { %5081 = vrcp.f32 %v3988_v4  ;;  %v2760_v10 = vmax.f32 %v2383_v14, 0.0  ;;  %v2386_v7 = vpop.f32.mrb[68].mxu1 }
 0x370   :  { %v5072_v30 = vpop.eup %5071  ;;  %v4694_v39 = vmul.f32 -1.442695, %v3142_v49  ;;  %v2387_v32 = vadd.f32 %v2386_v7, %v7214_v24  ;;  %v2388_v27 = vpop.f32.mrb[69].mxu1 }
 0x371   :  { %v5074_v42 = vpop.eup %5073  ;;  %v3989_v13 = vadd.f32 1.0, %v5072_v30  ;;  %v2389_v2 = vadd.f32 %v2388_v27, %v7220_v0  ;;  %v3146_v11 = vpop.f32.mrb[216].mxu0  ;;  %3409 = vmatprep.mubr.f32.mxu0 %v2760_v10 }
 0x372   :  { %5083 = vpow2.f32 %v4694_v39  ;;  %v3147_v51 = vadd.f32 %v7727_v63, %v3146_v11  ;;  %v3148_v53 = vpop.f32.mrb[217].mxu0  ;;  %3410 = vmatmul.mubr.f32.gmra.mrb[66].mxu0 %v2759_v40  ;;  %v2761_v41 = vmax.f32 %v2387_v32, 0.0 }
 0x373   :  { %5085 = vrcp.f32 %v3989_v13  ;;  %v2762_v16 = vmax.f32 %v2389_v2, 0.0  ;;  %v2392_v38 = vpop.f32.mrb[70].mxu1 }
 0x374   :  { %v5076_v47 = vpop.eup %5075  ;;  %v4695_v57 = vmul.f32 -1.442695, %v3147_v51  ;;  %v2393_v35 = vadd.f32 %v2392_v38, %v7214_v24  ;;  %v2394_v36 = vpop.f32.mrb[71].mxu1 }
 0x375   :  { %v5078_v21 = vpop.eup %5077  ;;  %v3990_v18 = vadd.f32 1.0, %v5076_v47  ;;  %v2395_v46 = vadd.f32 %v2394_v36, %v7220_v0  ;;  %v3151_v9 = vpop.f32.mrb[218].mxu0  ;;  %3414 = vmatprep.mubr.f32.mxu0 %v2762_v16 }
 0x376   :  { %5087 = vpow2.f32 %v4695_v57  ;;  %v3152_v17 = vadd.f32 %v7727_v63, %v3151_v9  ;;  %v3153_v19 = vpop.f32.mrb[219].mxu0  ;;  %3415 = vmatmul.mubr.f32.gmra.mrb[68].mxu0 %v2761_v41  ;;  %v2763_v29 = vmax.f32 %v2393_v35, 0.0 }
 0x377   :  { %5089 = vrcp.f32 %v3990_v18  ;;  %v2764_v45 = vmax.f32 %v2395_v46, 0.0  ;;  %v2398_v58 = vpop.f32.mrb[72].mxu1 }
 0x378   :  { %v5080_v52 = vpop.eup %5079  ;;  %v4696_v50 = vmul.f32 -1.442695, %v3152_v17  ;;  %v2399_v44 = vadd.f32 %v2398_v58, %v7214_v24  ;;  %v2400_v55 = vpop.f32.mrb[73].mxu1 }
 0x379   :  { %v5082_v48 = vpop.eup %5081  ;;  %v3991_v31 = vadd.f32 1.0, %v5080_v52  ;;  %v2401_v62 = vadd.f32 %v2400_v55, %v7220_v0  ;;  %v3156_v3 = vpop.f32.mrb[220].mxu0  ;;  %3419 = vmatprep.mubr.f32.mxu0 %v2764_v45 }
 0x37a   :  { %5091 = vpow2.f32 %v4696_v50  ;;  %v3157_v15 = vadd.f32 %v7727_v63, %v3156_v3  ;;  %v3158_v54 = vpop.f32.mrb[221].mxu0  ;;  %3420 = vmatmul.mubr.f32.gmra.mrb[70].mxu0 %v2763_v29  ;;  %v2765_v43 = vmax.f32 %v2399_v44, 0.0 }
 0x37b   :  { %5093 = vrcp.f32 %v3991_v31  ;;  %v2766_v6 = vmax.f32 %v2401_v62, 0.0  ;;  %v2404_v26 = vpop.f32.mrb[74].mxu1 }
 0x37c   :  { %v5084_v8 = vpop.eup %5083  ;;  %v4697_v12 = vmul.f32 -1.442695, %v3157_v15  ;;  %v2405_v59 = vadd.f32 %v2404_v26, %v7214_v24  ;;  %v2406_v34 = vpop.f32.mrb[75].mxu1 }
 0x37d   :  { %v5086_v61 = vpop.eup %5085  ;;  %v3992_v5 = vadd.f32 1.0, %v5084_v8  ;;  %v2407_v25 = vadd.f32 %v2406_v34, %v7220_v0  ;;  %v3161_v22 = vpop.f32.mrb[222].mxu0  ;;  %3424 = vmatprep.mubr.f32.mxu0 %v2766_v6 }
 0x37e   :  { %5095 = vpow2.f32 %v4697_v12  ;;  %v3162_v1 = vadd.f32 %v7727_v63, %v3161_v22  ;;  %v3163_v23 = vpop.f32.mrb[223].mxu0  ;;  %3425 = vmatmul.mubr.f32.gmra.mrb[72].mxu0 %v2765_v43  ;;  %v2767_v28 = vmax.f32 %v2405_v59, 0.0 }
 0x37f   :  { %5097 = vrcp.f32 %v3992_v5  ;;  %v2768_v33 = vmax.f32 %v2407_v25, 0.0  ;;  %v2410_v56 = vpop.f32.mrb[76].mxu1 }
 0x380   :  { %v5088_v37 = vpop.eup %5087  ;;  %v4698_v4 = vmul.f32 -1.442695, %v3162_v1  ;;  %v2411_v14 = vadd.f32 %v2410_v56, %v7214_v24  ;;  %v2412_v20 = vpop.f32.mrb[77].mxu1 }
 0x381   :  { %v5090_v49 = vpop.eup %5089  ;;  %v3993_v60 = vadd.f32 1.0, %v5088_v37  ;;  %v2413_v10 = vadd.f32 %v2412_v20, %v7220_v0  ;;  %v3166_v7 = vpop.f32.mrb[224].mxu0  ;;  %3429 = vmatprep.mubr.f32.mxu0 %v2768_v33 }
 0x382   :  { %5099 = vpow2.f32 %v4698_v4  ;;  %v3167_v30 = vadd.f32 %v7727_v63, %v3166_v7  ;;  %v3168_v40 = vpop.f32.mrb[225].mxu0  ;;  %3430 = vmatmul.mubr.f32.gmra.mrb[74].mxu0 %v2767_v28  ;;  %v2769_v42 = vmax.f32 %v2411_v14, 0.0 }
 0x383   :  { %5101 = vrcp.f32 %v3993_v60  ;;  %v2770_v39 = vmax.f32 %v2413_v10, 0.0  ;;  %v2416_v32 = vpop.f32.mrb[78].mxu1 }
 0x384   :  { %v5092_v27 = vpop.eup %5091  ;;  %v4699_v13 = vmul.f32 -1.442695, %v3167_v30  ;;  %v2417_v2 = vadd.f32 %v2416_v32, %v7214_v24  ;;  %v2418_v11 = vpop.f32.mrb[79].mxu1 }
 0x385   :  { %v5094_v51 = vpop.eup %5093  ;;  %v3994_v53 = vadd.f32 1.0, %v5092_v27  ;;  %v2419_v16 = vadd.f32 %v2418_v11, %v7220_v0  ;;  %v3171_v38 = vpop.f32.mrb[226].mxu0  ;;  %3434 = vmatprep.mubr.f32.mxu0 %v2770_v39 }
 0x386   :  { %5103 = vpow2.f32 %v4699_v13  ;;  %v3172_v47 = vadd.f32 %v7727_v63, %v3171_v38  ;;  %v3173_v41 = vpop.f32.mrb[227].mxu0  ;;  %3435 = vmatmul.mubr.f32.gmra.mrb[76].mxu0 %v2769_v42  ;;  %v2771_v21 = vmax.f32 %v2417_v2, 0.0 }
 0x387   :  { %5105 = vrcp.f32 %v3994_v53  ;;  %v2772_v57 = vmax.f32 %v2419_v16, 0.0  ;;  %v2422_v35 = vpop.f32.mrb[80].mxu1 }
 0x388   :  { %v5096_v36 = vpop.eup %5095  ;;  %v4700_v18 = vmul.f32 -1.442695, %v3172_v47  ;;  %v2423_v46 = vadd.f32 %v2422_v35, %v7214_v24  ;;  %v2424_v9 = vpop.f32.mrb[81].mxu1 }
 0x389   :  { %v5098_v17 = vpop.eup %5097  ;;  %v3995_v19 = vadd.f32 1.0, %v5096_v36  ;;  %v2425_v45 = vadd.f32 %v2424_v9, %v7220_v0  ;;  %v3176_v58 = vpop.f32.mrb[228].mxu0  ;;  %3439 = vmatprep.mubr.f32.mxu0 %v2772_v57 }
 0x38a   :  { %5107 = vpow2.f32 %v4700_v18  ;;  %v3177_v52 = vadd.f32 %v7727_v63, %v3176_v58  ;;  %v3178_v29 = vpop.f32.mrb[229].mxu0  ;;  %3440 = vmatmul.mubr.f32.gmra.mrb[78].mxu0 %v2771_v21  ;;  %v2773_v48 = vmax.f32 %v2423_v46, 0.0 }
 0x38b   :  { %5109 = vrcp.f32 %v3995_v19  ;;  %v2774_v50 = vmax.f32 %v2425_v45, 0.0  ;;  %v2428_v44 = vpop.f32.mrb[82].mxu1 }
 0x38c   :  { %v5100_v55 = vpop.eup %5099  ;;  %v4701_v31 = vmul.f32 -1.442695, %v3177_v52  ;;  %v2429_v62 = vadd.f32 %v2428_v44, %v7214_v24  ;;  %v2430_v3 = vpop.f32.mrb[83].mxu1 }
 0x38d   :  { %v5102_v15 = vpop.eup %5101  ;;  %v3996_v54 = vadd.f32 1.0, %v5100_v55  ;;  %v2431_v6 = vadd.f32 %v2430_v3, %v7220_v0  ;;  %v3181_v26 = vpop.f32.mrb[230].mxu0  ;;  %3444 = vmatprep.mubr.f32.mxu0 %v2774_v50 }
 0x38e   :  { %5111 = vpow2.f32 %v4701_v31  ;;  %v3182_v8 = vadd.f32 %v7727_v63, %v3181_v26  ;;  %v3183_v43 = vpop.f32.mrb[231].mxu0  ;;  %3445 = vmatmul.mubr.f32.gmra.mrb[80].mxu0 %v2773_v48  ;;  %v2775_v61 = vmax.f32 %v2429_v62, 0.0  ;;  %v7819_v63 = vld [vmem:[%s7950_s6] ss:$0 sm:$0xff] }
 0x38f   :  { %5113 = vrcp.f32 %v3996_v54  ;;  %v2776_v12 = vmax.f32 %v2431_v6, 0.0  ;;  %v2434_v59 = vpop.f32.mrb[84].mxu1 }
 0x390   :  { %v5104_v34 = vpop.eup %5103  ;;  %v4702_v5 = vmul.f32 -1.442695, %v3182_v8  ;;  %v2435_v25 = vadd.f32 %v2434_v59, %v7214_v24  ;;  %v2436_v22 = vpop.f32.mrb[85].mxu1 }
 0x391   :  { %v5106_v1 = vpop.eup %5105  ;;  %v3997_v23 = vadd.f32 1.0, %v5104_v34  ;;  %v2437_v33 = vadd.f32 %v2436_v22, %v7220_v0  ;;  %v3186_v56 = vpop.f32.mrb[232].mxu0  ;;  %3449 = vmatprep.mubr.f32.mxu0 %v2776_v12 }
 0x392   :  { %5115 = vpow2.f32 %v4702_v5  ;;  %v3187_v37 = vadd.f32 %v7819_v63, %v3186_v56  ;;  %v3188_v28 = vpop.f32.mrb[233].mxu0  ;;  %3450 = vmatmul.mubr.f32.gmra.mrb[82].mxu0 %v2775_v61  ;;  %v2777_v49 = vmax.f32 %v2435_v25, 0.0 }
 0x393   :  { %5117 = vrcp.f32 %v3997_v23  ;;  %v2778_v4 = vmax.f32 %v2437_v33, 0.0  ;;  %v2440_v14 = vpop.f32.mrb[86].mxu1 }
 0x394   :  { %v5108_v20 = vpop.eup %5107  ;;  %v4703_v60 = vmul.f32 -1.442695, %v3187_v37  ;;  %v2441_v10 = vadd.f32 %v2440_v14, %v7214_v24  ;;  %v2442_v7 = vpop.f32.mrb[87].mxu1 }
 0x395   :  { %v5110_v30 = vpop.eup %5109  ;;  %v3998_v40 = vadd.f32 1.0, %v5108_v20  ;;  %v2443_v39 = vadd.f32 %v2442_v7, %v7220_v0  ;;  %v3191_v32 = vpop.f32.mrb[234].mxu0  ;;  %3454 = vmatprep.mubr.f32.mxu0 %v2778_v4 }
 0x396   :  { %5119 = vpow2.f32 %v4703_v60  ;;  %v3192_v27 = vadd.f32 %v7819_v63, %v3191_v32  ;;  %v3193_v42 = vpop.f32.mrb[235].mxu0  ;;  %3455 = vmatmul.mubr.f32.gmra.mrb[84].mxu0 %v2777_v49  ;;  %v2779_v51 = vmax.f32 %v2441_v10, 0.0 }
 0x397   :  { %5121 = vrcp.f32 %v3998_v40  ;;  %v2780_v13 = vmax.f32 %v2443_v39, 0.0  ;;  %v2446_v2 = vpop.f32.mrb[88].mxu1 }
 0x398   :  { %v5112_v11 = vpop.eup %5111  ;;  %v4704_v53 = vmul.f32 -1.442695, %v3192_v27  ;;  %v2447_v16 = vadd.f32 %v2446_v2, %v7214_v24  ;;  %v2448_v38 = vpop.f32.mrb[89].mxu1 }
 0x399   :  { %v5114_v47 = vpop.eup %5113  ;;  %v3999_v41 = vadd.f32 1.0, %v5112_v11  ;;  %v2449_v57 = vadd.f32 %v2448_v38, %v7220_v0  ;;  %v3196_v35 = vpop.f32.mrb[236].mxu0  ;;  %3459 = vmatprep.mubr.f32.mxu0 %v2780_v13 }
 0x39a   :  { %5123 = vpow2.f32 %v4704_v53  ;;  %v3197_v36 = vadd.f32 %v7819_v63, %v3196_v35  ;;  %v3198_v21 = vpop.f32.mrb[237].mxu0  ;;  %3460 = vmatmul.mubr.f32.gmra.mrb[86].mxu0 %v2779_v51  ;;  %v2781_v17 = vmax.f32 %v2447_v16, 0.0 }
 0x39b   :  { %5125 = vrcp.f32 %v3999_v41  ;;  %v2782_v18 = vmax.f32 %v2449_v57, 0.0  ;;  %v2452_v46 = vpop.f32.mrb[90].mxu1 }
 0x39c   :  { %v5116_v9 = vpop.eup %5115  ;;  %v4705_v19 = vmul.f32 -1.442695, %v3197_v36  ;;  %v2453_v45 = vadd.f32 %v2452_v46, %v7214_v24  ;;  %v2454_v58 = vpop.f32.mrb[91].mxu1 }
 0x39d   :  { %v5118_v52 = vpop.eup %5117  ;;  %v4000_v29 = vadd.f32 1.0, %v5116_v9  ;;  %v2455_v50 = vadd.f32 %v2454_v58, %v7220_v0  ;;  %v3201_v44 = vpop.f32.mrb[238].mxu0  ;;  %3464 = vmatprep.mubr.f32.mxu0 %v2782_v18 }
 0x39e   :  { %5127 = vpow2.f32 %v4705_v19  ;;  %v3202_v55 = vadd.f32 %v7819_v63, %v3201_v44  ;;  %v3203_v48 = vpop.f32.mrb[239].mxu0  ;;  %3465 = vmatmul.mubr.f32.gmra.mrb[88].mxu0 %v2781_v17  ;;  %v2783_v15 = vmax.f32 %v2453_v45, 0.0 }
 0x39f   :  { %5129 = vrcp.f32 %v4000_v29  ;;  %v2784_v31 = vmax.f32 %v2455_v50, 0.0  ;;  %v2458_v62 = vpop.f32.mrb[92].mxu1 }
 0x3a0   :  { %v5120_v3 = vpop.eup %5119  ;;  %v4706_v54 = vmul.f32 -1.442695, %v3202_v55  ;;  %v2459_v6 = vadd.f32 %v2458_v62, %v7214_v24  ;;  %v2460_v26 = vpop.f32.mrb[93].mxu1 }
 0x3a1   :  { %v5122_v8 = vpop.eup %5121  ;;  %v4001_v43 = vadd.f32 1.0, %v5120_v3  ;;  %v2461_v12 = vadd.f32 %v2460_v26, %v7220_v0  ;;  %v3206_v59 = vpop.f32.mrb[240].mxu0  ;;  %3469 = vmatprep.mubr.f32.mxu0 %v2784_v31 }
 0x3a2   :  { %5131 = vpow2.f32 %v4706_v54  ;;  %v3207_v34 = vadd.f32 %v7819_v63, %v3206_v59  ;;  %v3208_v61 = vpop.f32.mrb[241].mxu0  ;;  %3470 = vmatmul.mubr.f32.gmra.mrb[90].mxu0 %v2783_v15  ;;  %v2785_v1 = vmax.f32 %v2459_v6, 0.0 }
 0x3a3   :  { %5133 = vrcp.f32 %v4001_v43  ;;  %v2786_v5 = vmax.f32 %v2461_v12, 0.0  ;;  %v2464_v25 = vpop.f32.mrb[94].mxu1 }
 0x3a4   :  { %v5124_v22 = vpop.eup %5123  ;;  %v4707_v23 = vmul.f32 -1.442695, %v3207_v34  ;;  %v2465_v33 = vadd.f32 %v2464_v25, %v7214_v24  ;;  %v2466_v56 = vpop.f32.mrb[95].mxu1 }
 0x3a5   :  { %v5126_v37 = vpop.eup %5125  ;;  %v4002_v28 = vadd.f32 1.0, %v5124_v22  ;;  %v2467_v4 = vadd.f32 %v2466_v56, %v7220_v0  ;;  %v3211_v14 = vpop.f32.mrb[242].mxu0  ;;  %3474 = vmatprep.mubr.f32.mxu0 %v2786_v5 }
 0x3a6   :  { %5135 = vpow2.f32 %v4707_v23  ;;  %v3212_v20 = vadd.f32 %v7819_v63, %v3211_v14  ;;  %v3213_v49 = vpop.f32.mrb[243].mxu0  ;;  %3475 = vmatmul.mubr.f32.gmra.mrb[92].mxu0 %v2785_v1  ;;  %v2787_v30 = vmax.f32 %v2465_v33, 0.0 }
 0x3a7   :  { %5137 = vrcp.f32 %v4002_v28  ;;  %v2788_v60 = vmax.f32 %v2467_v4, 0.0  ;;  %v2470_v10 = vpop.f32.mrb[96].mxu1 }
 0x3a8   :  { %v5128_v7 = vpop.eup %5127  ;;  %v4708_v40 = vmul.f32 -1.442695, %v3212_v20  ;;  %v2471_v39 = vadd.f32 %v2470_v10, %v7214_v24  ;;  %v2472_v32 = vpop.f32.mrb[97].mxu1 }
 0x3a9   :  { %v5130_v27 = vpop.eup %5129  ;;  %v4003_v42 = vadd.f32 1.0, %v5128_v7  ;;  %v2473_v13 = vadd.f32 %v2472_v32, %v7220_v0  ;;  %v3216_v2 = vpop.f32.mrb[244].mxu0  ;;  %3479 = vmatprep.mubr.f32.mxu0 %v2788_v60 }
 0x3aa   :  { %5139 = vpow2.f32 %v4708_v40  ;;  %v3217_v11 = vadd.f32 %v7819_v63, %v3216_v2  ;;  %v3218_v51 = vpop.f32.mrb[245].mxu0  ;;  %3480 = vmatmul.mubr.f32.gmra.mrb[94].mxu0 %v2787_v30  ;;  %v2789_v47 = vmax.f32 %v2471_v39, 0.0 }
 0x3ab   :  { %5141 = vrcp.f32 %v4003_v42  ;;  %v2790_v53 = vmax.f32 %v2473_v13, 0.0  ;;  %v2476_v16 = vpop.f32.mrb[98].mxu1 }
 0x3ac   :  { %v5132_v38 = vpop.eup %5131  ;;  %v4709_v41 = vmul.f32 -1.442695, %v3217_v11  ;;  %v2477_v57 = vadd.f32 %v2476_v16, %v7214_v24  ;;  %v2478_v35 = vpop.f32.mrb[99].mxu1 }
 0x3ad   :  { %v5134_v36 = vpop.eup %5133  ;;  %v4004_v21 = vadd.f32 1.0, %v5132_v38  ;;  %v2479_v18 = vadd.f32 %v2478_v35, %v7220_v0  ;;  %v3221_v46 = vpop.f32.mrb[246].mxu0  ;;  %3484 = vmatprep.mubr.f32.mxu0 %v2790_v53 }
 0x3ae   :  { %5143 = vpow2.f32 %v4709_v41  ;;  %v3222_v9 = vadd.f32 %v7819_v63, %v3221_v46  ;;  %v3223_v17 = vpop.f32.mrb[247].mxu0  ;;  %3485 = vmatmul.mubr.f32.gmra.mrb[96].mxu0 %v2789_v47  ;;  %v2791_v52 = vmax.f32 %v2477_v57, 0.0 }
 0x3af   :  { %5145 = vrcp.f32 %v4004_v21  ;;  %v2792_v19 = vmax.f32 %v2479_v18, 0.0  ;;  %v2482_v45 = vpop.f32.mrb[100].mxu1 }
 0x3b0   :  { %v5136_v58 = vpop.eup %5135  ;;  %v4710_v29 = vmul.f32 -1.442695, %v3222_v9  ;;  %v2483_v50 = vadd.f32 %v2482_v45, %v7214_v24  ;;  %v2484_v44 = vpop.f32.mrb[101].mxu1 }
 0x3b1   :  { %v5138_v55 = vpop.eup %5137  ;;  %v4005_v48 = vadd.f32 1.0, %v5136_v58  ;;  %v2485_v31 = vadd.f32 %v2484_v44, %v7220_v0  ;;  %v3226_v62 = vpop.f32.mrb[248].mxu0  ;;  %3489 = vmatprep.mubr.f32.mxu0 %v2792_v19 }
 0x3b2   :  { %5147 = vpow2.f32 %v4710_v29  ;;  %v3227_v3 = vadd.f32 %v7819_v63, %v3226_v62  ;;  %v3228_v15 = vpop.f32.mrb[249].mxu0  ;;  %3490 = vmatmul.mubr.f32.gmra.mrb[98].mxu0 %v2791_v52  ;;  %v2793_v8 = vmax.f32 %v2483_v50, 0.0 }
 0x3b3   :  { %5149 = vrcp.f32 %v4005_v48  ;;  %v2794_v54 = vmax.f32 %v2485_v31, 0.0  ;;  %v2488_v6 = vpop.f32.mrb[102].mxu1 }
 0x3b4   :  { %v5140_v26 = vpop.eup %5139  ;;  %v4711_v43 = vmul.f32 -1.442695, %v3227_v3  ;;  %v2489_v12 = vadd.f32 %v2488_v6, %v7214_v24  ;;  %v2490_v59 = vpop.f32.mrb[103].mxu1 }
 0x3b5   :  { %v5142_v34 = vpop.eup %5141  ;;  %v4006_v61 = vadd.f32 1.0, %v5140_v26  ;;  %v2491_v5 = vadd.f32 %v2490_v59, %v7220_v0  ;;  %v3231_v25 = vpop.f32.mrb[250].mxu0  ;;  %3494 = vmatprep.mubr.f32.mxu0 %v2794_v54 }
 0x3b6   :  { %5151 = vpow2.f32 %v4711_v43  ;;  %v3232_v22 = vadd.f32 %v7819_v63, %v3231_v25  ;;  %v3233_v1 = vpop.f32.mrb[251].mxu0  ;;  %3495 = vmatmul.mubr.f32.gmra.mrb[100].mxu0 %v2793_v8  ;;  %v2795_v37 = vmax.f32 %v2489_v12, 0.0 }
 0x3b7   :  { %5153 = vrcp.f32 %v4006_v61  ;;  %v2796_v23 = vmax.f32 %v2491_v5, 0.0  ;;  %v2494_v33 = vpop.f32.mrb[104].mxu1 }
 0x3b8   :  { %v5144_v56 = vpop.eup %5143  ;;  %v4712_v28 = vmul.f32 -1.442695, %v3232_v22  ;;  %v2495_v4 = vadd.f32 %v2494_v33, %v7214_v24  ;;  %v2496_v14 = vpop.f32.mrb[105].mxu1 }
 0x3b9   :  { %v5146_v20 = vpop.eup %5145  ;;  %v4007_v49 = vadd.f32 1.0, %v5144_v56  ;;  %v2497_v60 = vadd.f32 %v2496_v14, %v7220_v0  ;;  %v3236_v10 = vpop.f32.mrb[252].mxu0  ;;  %3499 = vmatprep.mubr.f32.mxu0 %v2796_v23 }
 0x3ba   :  { %5155 = vpow2.f32 %v4712_v28  ;;  %v3237_v7 = vadd.f32 %v7819_v63, %v3236_v10  ;;  %v3238_v30 = vpop.f32.mrb[253].mxu0  ;;  %3500 = vmatmul.mubr.f32.gmra.mrb[102].mxu0 %v2795_v37  ;;  %v2797_v27 = vmax.f32 %v2495_v4, 0.0 }
 0x3bb   :  { %5157 = vrcp.f32 %v4007_v49  ;;  %v2798_v40 = vmax.f32 %v2497_v60, 0.0  ;;  %v2500_v39 = vpop.f32.mrb[106].mxu1 }
 0x3bc   :  { %v5148_v32 = vpop.eup %5147  ;;  %v4713_v42 = vmul.f32 -1.442695, %v3237_v7  ;;  %v2501_v13 = vadd.f32 %v2500_v39, %v7214_v24  ;;  %v2502_v2 = vpop.f32.mrb[107].mxu1 }
 0x3bd   :  { %v5150_v11 = vpop.eup %5149  ;;  %v4008_v51 = vadd.f32 1.0, %v5148_v32  ;;  %v2503_v53 = vadd.f32 %v2502_v2, %v7220_v0  ;;  %v3241_v16 = vpop.f32.mrb[254].mxu0  ;;  %3504 = vmatprep.mubr.f32.mxu0 %v2798_v40 }
 0x3be   :  { %5159 = vpow2.f32 %v4713_v42  ;;  %v3242_v38 = vadd.f32 %v7819_v63, %v3241_v16  ;;  %v3243_v47 = vpop.f32.mrb[255].mxu0  ;;  %3505 = vmatmul.mubr.f32.gmra.mrb[104].mxu0 %v2797_v27  ;;  %v2799_v36 = vmax.f32 %v2501_v13, 0.0 }
 0x3bf   :  { %5161 = vrcp.f32 %v4008_v51  ;;  %v2800_v41 = vmax.f32 %v2503_v53, 0.0  ;;  %v2506_v57 = vpop.f32.mrb[108].mxu1 }
 0x3c0   :  { %v5152_v35 = vpop.eup %5151  ;;  %v4714_v21 = vmul.f32 -1.442695, %v3242_v38  ;;  %v2507_v18 = vadd.f32 %v2506_v57, %v7214_v24  ;;  %v2508_v46 = vpop.f32.mrb[109].mxu1 }
 0x3c1   :  { %v5154_v9 = vpop.eup %5153  ;;  %v4009_v17 = vadd.f32 1.0, %v5152_v35  ;;  %v2509_v19 = vadd.f32 %v2508_v46, %v7220_v0  ;;  %v3246_v45 = vpop.f32.mrb[0].mxu0  ;;  %3509 = vmatprep.mubr.f32.mxu0 %v2800_v41 }
 0x3c2   :  { %5163 = vpow2.f32 %v4714_v21  ;;  %v3247_v58 = vadd.f32 %v7819_v63, %v3246_v45  ;;  %v3248_v52 = vpop.f32.mrb[1].mxu0  ;;  %3510 = vmatmul.mubr.f32.gmra.mrb[106].mxu0 %v2799_v36  ;;  %v2801_v55 = vmax.f32 %v2507_v18, 0.0 }
 0x3c3   :  { %5165 = vrcp.f32 %v4009_v17  ;;  %v2802_v29 = vmax.f32 %v2509_v19, 0.0  ;;  %v2512_v50 = vpop.f32.mrb[110].mxu1 }
 0x3c4   :  { %v5156_v44 = vpop.eup %5155  ;;  %v4715_v48 = vmul.f32 -1.442695, %v3247_v58  ;;  %v2513_v31 = vadd.f32 %v2512_v50, %v7214_v24  ;;  %v2514_v62 = vpop.f32.mrb[111].mxu1 }
 0x3c5   :  { %v5158_v3 = vpop.eup %5157  ;;  %v4010_v15 = vadd.f32 1.0, %v5156_v44  ;;  %v2515_v54 = vadd.f32 %v2514_v62, %v7220_v0  ;;  %v3251_v6 = vpop.f32.mrb[2].mxu0  ;;  %3514 = vmatprep.mubr.f32.mxu0 %v2802_v29 }
 0x3c6   :  { %5167 = vpow2.f32 %v4715_v48  ;;  %v3252_v26 = vadd.f32 %v7819_v63, %v3251_v6  ;;  %v3253_v8 = vpop.f32.mrb[3].mxu0  ;;  %3515 = vmatmul.mubr.f32.gmra.mrb[108].mxu0 %v2801_v55  ;;  %v2803_v34 = vmax.f32 %v2513_v31, 0.0 }
 0x3c7   :  { %5169 = vrcp.f32 %v4010_v15  ;;  %v2804_v43 = vmax.f32 %v2515_v54, 0.0  ;;  %v2518_v12 = vpop.f32.mrb[112].mxu1 }
 0x3c8   :  { %v5160_v59 = vpop.eup %5159  ;;  %v4716_v61 = vmul.f32 -1.442695, %v3252_v26  ;;  %v2519_v5 = vadd.f32 %v2518_v12, %v7214_v24  ;;  %v2520_v25 = vpop.f32.mrb[113].mxu1 }
 0x3c9   :  { %v5162_v22 = vpop.eup %5161  ;;  %v4011_v1 = vadd.f32 1.0, %v5160_v59  ;;  %v2521_v23 = vadd.f32 %v2520_v25, %v7220_v0  ;;  %v3256_v33 = vpop.f32.mrb[4].mxu0  ;;  %3519 = vmatprep.mubr.f32.mxu0 %v2804_v43 }
 0x3ca   :  { %5171 = vpow2.f32 %v4716_v61  ;;  %v3257_v56 = vadd.f32 %v7819_v63, %v3256_v33  ;;  %v3258_v37 = vpop.f32.mrb[5].mxu0  ;;  %3520 = vmatmul.mubr.f32.gmra.mrb[110].mxu0 %v2803_v34  ;;  %v2805_v20 = vmax.f32 %v2519_v5, 0.0 }
 0x3cb   :  { %5173 = vrcp.f32 %v4011_v1  ;;  %v2806_v28 = vmax.f32 %v2521_v23, 0.0  ;;  %v2524_v4 = vpop.f32.mrb[114].mxu1 }
 0x3cc   :  { %v5164_v14 = vpop.eup %5163  ;;  %v4717_v49 = vmul.f32 -1.442695, %v3257_v56  ;;  %v2525_v60 = vadd.f32 %v2524_v4, %v7214_v24  ;;  %v2526_v10 = vpop.f32.mrb[115].mxu1 }
 0x3cd   :  { %v5166_v7 = vpop.eup %5165  ;;  %v4012_v30 = vadd.f32 1.0, %v5164_v14  ;;  %v2527_v40 = vadd.f32 %v2526_v10, %v7220_v0  ;;  %v3261_v39 = vpop.f32.mrb[6].mxu0  ;;  %3524 = vmatprep.mubr.f32.mxu0 %v2806_v28 }
 0x3ce   :  { %5175 = vpow2.f32 %v4717_v49  ;;  %v3262_v32 = vadd.f32 %v7819_v63, %v3261_v39  ;;  %v3263_v27 = vpop.f32.mrb[7].mxu0  ;;  %3525 = vmatmul.mubr.f32.gmra.mrb[112].mxu0 %v2805_v20  ;;  %v2807_v11 = vmax.f32 %v2525_v60, 0.0 }
 0x3cf   :  { %5177 = vrcp.f32 %v4012_v30  ;;  %v2808_v42 = vmax.f32 %v2527_v40, 0.0  ;;  %v2530_v13 = vpop.f32.mrb[116].mxu1 }
 0x3d0   :  { %v5168_v2 = vpop.eup %5167  ;;  %v4718_v51 = vmul.f32 -1.442695, %v3262_v32  ;;  %v2531_v53 = vadd.f32 %v2530_v13, %v7214_v24  ;;  %v2532_v16 = vpop.f32.mrb[117].mxu1 }
 0x3d1   :  { %v5170_v38 = vpop.eup %5169  ;;  %v4013_v47 = vadd.f32 1.0, %v5168_v2  ;;  %v2533_v41 = vadd.f32 %v2532_v16, %v7220_v0  ;;  %v3266_v57 = vpop.f32.mrb[8].mxu0  ;;  %3529 = vmatprep.mubr.f32.mxu0 %v2808_v42 }
 0x3d2   :  { %5179 = vpow2.f32 %v4718_v51  ;;  %v3267_v35 = vadd.f32 %v7819_v63, %v3266_v57  ;;  %v3268_v36 = vpop.f32.mrb[9].mxu0  ;;  %3530 = vmatmul.mubr.f32.gmra.mrb[114].mxu0 %v2807_v11  ;;  %v2809_v9 = vmax.f32 %v2531_v53, 0.0 }
 0x3d3   :  { %5181 = vrcp.f32 %v4013_v47  ;;  %v2810_v21 = vmax.f32 %v2533_v41, 0.0  ;;  %v2536_v18 = vpop.f32.mrb[118].mxu1 }
 0x3d4   :  { %v5172_v46 = vpop.eup %5171  ;;  %v4719_v17 = vmul.f32 -1.442695, %v3267_v35  ;;  %v2537_v19 = vadd.f32 %v2536_v18, %v7214_v24  ;;  %v2538_v45 = vpop.f32.mrb[119].mxu1 }
 0x3d5   :  { %v5174_v58 = vpop.eup %5173  ;;  %v4014_v52 = vadd.f32 1.0, %v5172_v46  ;;  %v2539_v29 = vadd.f32 %v2538_v45, %v7220_v0  ;;  %v3271_v50 = vpop.f32.mrb[10].mxu0  ;;  %3534 = vmatprep.mubr.f32.mxu0 %v2810_v21 }
 0x3d6   :  { %5183 = vpow2.f32 %v4719_v17  ;;  %v3272_v44 = vadd.f32 %v7819_v63, %v3271_v50  ;;  %v3273_v55 = vpop.f32.mrb[11].mxu0  ;;  %3535 = vmatmul.mubr.f32.gmra.mrb[116].mxu0 %v2809_v9  ;;  %v2811_v3 = vmax.f32 %v2537_v19, 0.0 }
 0x3d7   :  { %5185 = vrcp.f32 %v4014_v52  ;;  %v2812_v48 = vmax.f32 %v2539_v29, 0.0  ;;  %v2542_v31 = vpop.f32.mrb[120].mxu1 }
 0x3d8   :  { %v5176_v62 = vpop.eup %5175  ;;  %v4720_v15 = vmul.f32 -1.442695, %v3272_v44  ;;  %v2543_v54 = vadd.f32 %v2542_v31, %v7214_v24  ;;  %v2544_v6 = vpop.f32.mrb[121].mxu1 }
 0x3d9   :  { %v5178_v26 = vpop.eup %5177  ;;  %v4015_v8 = vadd.f32 1.0, %v5176_v62  ;;  %v2545_v43 = vadd.f32 %v2544_v6, %v7220_v0  ;;  %v3276_v12 = vpop.f32.mrb[12].mxu0  ;;  %3539 = vmatprep.mubr.f32.mxu0 %v2812_v48 }
 0x3da   :  { %5187 = vpow2.f32 %v4720_v15  ;;  %v3277_v59 = vadd.f32 %v7819_v63, %v3276_v12  ;;  %v3278_v34 = vpop.f32.mrb[13].mxu0  ;;  %3540 = vmatmul.mubr.f32.gmra.mrb[118].mxu0 %v2811_v3  ;;  %v2813_v22 = vmax.f32 %v2543_v54, 0.0 }
 0x3db   :  { %5189 = vrcp.f32 %v4015_v8  ;;  %v2814_v61 = vmax.f32 %v2545_v43, 0.0  ;;  %v2548_v5 = vpop.f32.mrb[122].mxu1 }
 0x3dc   :  { %v5180_v25 = vpop.eup %5179  ;;  %v4721_v1 = vmul.f32 -1.442695, %v3277_v59  ;;  %v2549_v23 = vadd.f32 %v2548_v5, %v7214_v24  ;;  %v2550_v33 = vpop.f32.mrb[123].mxu1 }
 0x3dd   :  { %v5182_v56 = vpop.eup %5181  ;;  %v4016_v37 = vadd.f32 1.0, %v5180_v25  ;;  %v2551_v28 = vadd.f32 %v2550_v33, %v7220_v0  ;;  %v3281_v4 = vpop.f32.mrb[14].mxu0  ;;  %3544 = vmatprep.mubr.f32.mxu0 %v2814_v61 }
 0x3de   :  { %5191 = vpow2.f32 %v4721_v1  ;;  %v3282_v14 = vadd.f32 %v7819_v63, %v3281_v4  ;;  %v3283_v20 = vpop.f32.mrb[15].mxu0  ;;  %3545 = vmatmul.mubr.f32.gmra.mrb[120].mxu0 %v2813_v22  ;;  %v2815_v7 = vmax.f32 %v2549_v23, 0.0 }
 0x3df   :  { %5193 = vrcp.f32 %v4016_v37  ;;  %v2816_v49 = vmax.f32 %v2551_v28, 0.0  ;;  %v2554_v60 = vpop.f32.mrb[124].mxu1 }
 0x3e0   :  { %v5184_v10 = vpop.eup %5183  ;;  %v4722_v30 = vmul.f32 -1.442695, %v3282_v14  ;;  %v2555_v40 = vadd.f32 %v2554_v60, %v7214_v24  ;;  %v2556_v39 = vpop.f32.mrb[125].mxu1 }
 0x3e1   :  { %v5186_v32 = vpop.eup %5185  ;;  %v4017_v27 = vadd.f32 1.0, %v5184_v10  ;;  %v2557_v42 = vadd.f32 %v2556_v39, %v7220_v0  ;;  %v3286_v13 = vpop.f32.mrb[16].mxu0  ;;  %3549 = vmatprep.mubr.f32.mxu0 %v2816_v49 }
 0x3e2   :  { %5195 = vpow2.f32 %v4722_v30  ;;  %v3287_v2 = vadd.f32 %v7819_v63, %v3286_v13  ;;  %v3288_v11 = vpop.f32.mrb[17].mxu0  ;;  %3550 = vmatmul.mubr.f32.gmra.mrb[122].mxu0 %v2815_v7  ;;  %v2817_v38 = vmax.f32 %v2555_v40, 0.0 }
 0x3e3   :  { %5197 = vrcp.f32 %v4017_v27  ;;  %v2818_v51 = vmax.f32 %v2557_v42, 0.0  ;;  %v2560_v53 = vpop.f32.mrb[126].mxu1 }
 0x3e4   :  { %v5188_v16 = vpop.eup %5187  ;;  %v4723_v47 = vmul.f32 -1.442695, %v3287_v2  ;;  %v2561_v41 = vadd.f32 %v2560_v53, %v7214_v24  ;;  %v2562_v57 = vpop.f32.mrb[127].mxu1 }
 0x3e5   :  { %v5190_v35 = vpop.eup %5189  ;;  %v4018_v36 = vadd.f32 1.0, %v5188_v16  ;;  %v2563_v21 = vadd.f32 %v2562_v57, %v7220_v0  ;;  %v3291_v18 = vpop.f32.mrb[18].mxu0  ;;  %3554 = vmatprep.mubr.f32.mxu0 %v2818_v51 }
 0x3e6   :  { %5199 = vpow2.f32 %v4723_v47  ;;  %v3292_v46 = vadd.f32 %v7819_v63, %v3291_v18  ;;  %v3293_v9 = vpop.f32.mrb[19].mxu0  ;;  %3555 = vmatmul.mubr.f32.gmra.mrb[124].mxu0 %v2817_v38  ;;  %v2819_v45 = vmax.f32 %v2561_v41, 0.0 }
 0x3e7   :  { %5201 = vrcp.f32 %v4018_v36  ;;  %v2820_v17 = vmax.f32 %v2563_v21, 0.0 }
 0x3e8   :  { %v5192_v19 = vpop.eup %5191  ;;  %v4724_v58 = vmul.f32 -1.442695, %v3292_v46 }
 0x3e9   :  { %v5194_v52 = vpop.eup %5193  ;;  %v4019_v29 = vadd.f32 1.0, %v5192_v19  ;;  %v3296_v24 = vpop.f32.mrb[20].mxu0  ;;  %3559 = vmatprep.mubr.f32.mxu0 %v2820_v17 }
 0x3ea   :  { %5203 = vpow2.f32 %v4724_v58  ;;  %v3297_v50 = vadd.f32 %v7819_v63, %v3296_v24  ;;  %v3298_v0 = vpop.f32.mrb[21].mxu0  ;;  %3560 = vmatmul.mubr.f32.gmra.mrb[126].mxu0 %v2819_v45 }
 0x3eb   :  { %5205 = vrcp.f32 %v4019_v29 }
 0x3ec   :  { %v5196_v44 = vpop.eup %5195  ;;  %v4725_v55 = vmul.f32 -1.442695, %v3297_v50 }
 0x3ed   :  { %v5198_v48 = vpop.eup %5197  ;;  %v4020_v31 = vadd.f32 1.0, %v5196_v44  ;;  %v3301_v62 = vpop.f32.mrb[22].mxu0 }
 0x3ee   :  { %5207 = vpow2.f32 %v4725_v55  ;;  %v3302_v3 = vadd.f32 %v7819_v63, %v3301_v62  ;;  %v3303_v15 = vpop.f32.mrb[23].mxu0 }
 0x3ef   :  { %5209 = vrcp.f32 %v4020_v31 }
 0x3f0   :  { %v5200_v54 = vpop.eup %5199  ;;  %v4726_v6 = vmul.f32 -1.442695, %v3302_v3 }
 0x3f1   :  { %v5202_v26 = vpop.eup %5201  ;;  %v4021_v8 = vadd.f32 1.0, %v5200_v54  ;;  %v3306_v43 = vpop.f32.mrb[24].mxu0 }
 0x3f2   :  { %5211 = vpow2.f32 %v4726_v6  ;;  %v3307_v12 = vadd.f32 %v7819_v63, %v3306_v43  ;;  %v3308_v59 = vpop.f32.mrb[25].mxu0 }
 0x3f3   :  { %5213 = vrcp.f32 %v4021_v8 }
 0x3f4   :  { %v5204_v34 = vpop.eup %5203  ;;  %v4727_v61 = vmul.f32 -1.442695, %v3307_v12 }
 0x3f5   :  { %v5206_v5 = vpop.eup %5205  ;;  %v4022_v25 = vadd.f32 1.0, %v5204_v34  ;;  %v3311_v22 = vpop.f32.mrb[26].mxu0 }
 0x3f6   :  { %5215 = vpow2.f32 %v4727_v61  ;;  %v3312_v1 = vadd.f32 %v7819_v63, %v3311_v22  ;;  %v3313_v23 = vpop.f32.mrb[27].mxu0 }
 0x3f7   :  { %5217 = vrcp.f32 %v4022_v25 }
 0x3f8   :  { %v5208_v33 = vpop.eup %5207  ;;  %v4728_v56 = vmul.f32 -1.442695, %v3312_v1  ;;  %v7900_v1 = vld [vmem:[%s7950_s6] ss:$0 sm:$0xff] }
 0x3f9   :  { %v5210_v37 = vpop.eup %5209  ;;  %v4023_v28 = vadd.f32 1.0, %v5208_v33  ;;  %v3316_v4 = vpop.f32.mrb[28].mxu0 }
 0x3fa   :  { %5219 = vpow2.f32 %v4728_v56  ;;  %v3317_v14 = vadd.f32 %v7819_v63, %v3316_v4  ;;  %v3318_v20 = vpop.f32.mrb[29].mxu0 }
 0x3fb   :  { %5221 = vrcp.f32 %v4023_v28 }
 0x3fc   :  { %v5212_v49 = vpop.eup %5211  ;;  %v4729_v60 = vmul.f32 -1.442695, %v3317_v14 }
 0x3fd   :  { %v5214_v10 = vpop.eup %5213  ;;  %v4024_v7 = vadd.f32 1.0, %v5212_v49  ;;  %v3321_v30 = vpop.f32.mrb[30].mxu0 }
 0x3fe   :  { %5223 = vpow2.f32 %v4729_v60  ;;  %v3322_v40 = vadd.f32 %v7819_v63, %v3321_v30  ;;  %v3323_v39 = vpop.f32.mrb[31].mxu0 }
 0x3ff   :  { %5225 = vrcp.f32 %v4024_v7 }
 0x400   :  { %v5216_v32 = vpop.eup %5215  ;;  %v4730_v27 = vmul.f32 -1.442695, %v3322_v40 }
 0x401   :  { %v5218_v42 = vpop.eup %5217  ;;  %v4025_v13 = vadd.f32 1.0, %v5216_v32  ;;  %v3326_v2 = vpop.f32.mrb[32].mxu0 }
 0x402   :  { %5227 = vpow2.f32 %v4730_v27  ;;  %v3327_v11 = vadd.f32 %v7819_v63, %v3326_v2  ;;  %v3328_v51 = vpop.f32.mrb[33].mxu0 }
 0x403   :  { %5229 = vrcp.f32 %v4025_v13 }
 0x404   :  { %v5220_v53 = vpop.eup %5219  ;;  %v4731_v16 = vmul.f32 -1.442695, %v3327_v11 }
 0x405   :  { %v5222_v38 = vpop.eup %5221  ;;  %v4026_v47 = vadd.f32 1.0, %v5220_v53  ;;  %v3331_v41 = vpop.f32.mrb[34].mxu0 }
 0x406   :  { %5231 = vpow2.f32 %v4731_v16  ;;  %v3332_v57 = vadd.f32 %v7819_v63, %v3331_v41  ;;  %v3333_v35 = vpop.f32.mrb[35].mxu0 }
 0x407   :  { %5233 = vrcp.f32 %v4026_v47 }
 0x408   :  { %v5224_v36 = vpop.eup %5223  ;;  %v4732_v21 = vmul.f32 -1.442695, %v3332_v57 }
 0x409   :  { %v5226_v18 = vpop.eup %5225  ;;  %v4027_v46 = vadd.f32 1.0, %v5224_v36  ;;  %v3336_v9 = vpop.f32.mrb[36].mxu0 }
 0x40a   :  { %5235 = vpow2.f32 %v4732_v21  ;;  %v3337_v17 = vadd.f32 %v7819_v63, %v3336_v9  ;;  %v3338_v19 = vpop.f32.mrb[37].mxu0 }
 0x40b   :  { %5237 = vrcp.f32 %v4027_v46 }
 0x40c   :  { %v5228_v45 = vpop.eup %5227  ;;  %v4733_v58 = vmul.f32 -1.442695, %v3337_v17 }
 0x40d   :  { %v5230_v52 = vpop.eup %5229  ;;  %v4028_v29 = vadd.f32 1.0, %v5228_v45  ;;  %v3341_v24 = vpop.f32.mrb[38].mxu0 }
 0x40e   :  { %5239 = vpow2.f32 %v4733_v58  ;;  %v3342_v50 = vadd.f32 %v7819_v63, %v3341_v24  ;;  %v3343_v0 = vpop.f32.mrb[39].mxu0 }
 0x40f   :  { %5241 = vrcp.f32 %v4028_v29 }
 0x410   :  { %v5232_v44 = vpop.eup %5231  ;;  %v4734_v55 = vmul.f32 -1.442695, %v3342_v50 }
 0x411   :  { %v5234_v48 = vpop.eup %5233  ;;  %v4029_v31 = vadd.f32 1.0, %v5232_v44  ;;  %v3346_v62 = vpop.f32.mrb[40].mxu0 }
 0x412   :  { %5243 = vpow2.f32 %v4734_v55  ;;  %v3347_v3 = vadd.f32 %v7819_v63, %v3346_v62  ;;  %v3348_v15 = vpop.f32.mrb[41].mxu0 }
 0x413   :  { %5245 = vrcp.f32 %v4029_v31 }
 0x414   :  { %v5236_v54 = vpop.eup %5235  ;;  %v4735_v6 = vmul.f32 -1.442695, %v3347_v3 }
 0x415   :  { %v5238_v26 = vpop.eup %5237  ;;  %v4030_v8 = vadd.f32 1.0, %v5236_v54  ;;  %v3351_v43 = vpop.f32.mrb[42].mxu0 }
 0x416   :  { %5247 = vpow2.f32 %v4735_v6  ;;  %v3352_v12 = vadd.f32 %v7819_v63, %v3351_v43  ;;  %v3353_v59 = vpop.f32.mrb[43].mxu0 }
 0x417   :  { %5249 = vrcp.f32 %v4030_v8 }
 0x418   :  { %v5240_v34 = vpop.eup %5239  ;;  %v4736_v61 = vmul.f32 -1.442695, %v3352_v12 }
 0x419   :  { %v5242_v5 = vpop.eup %5241  ;;  %v4031_v25 = vadd.f32 1.0, %v5240_v34  ;;  %v3356_v22 = vpop.f32.mrb[44].mxu0 }
 0x41a   :  { %5251 = vpow2.f32 %v4736_v61  ;;  %v3357_v23 = vadd.f32 %v7900_v1, %v3356_v22  ;;  %v3358_v33 = vpop.f32.mrb[45].mxu0 }
 0x41b   :  { %5253 = vrcp.f32 %v4031_v25 }
 0x41c   :  { %v5244_v56 = vpop.eup %5243  ;;  %v4737_v37 = vmul.f32 -1.442695, %v3357_v23 }
 0x41d   :  { %v5246_v63 = vpop.eup %5245  ;;  %v4032_v28 = vadd.f32 1.0, %v5244_v56  ;;  %v3361_v4 = vpop.f32.mrb[46].mxu0 }
 0x41e   :  { %5255 = vpow2.f32 %v4737_v37  ;;  %v3362_v14 = vadd.f32 %v7900_v1, %v3361_v4  ;;  %v3363_v20 = vpop.f32.mrb[47].mxu0 }
 0x41f   :  { %5257 = vrcp.f32 %v4032_v28 }
 0x420   :  { %v5248_v49 = vpop.eup %5247  ;;  %v4738_v60 = vmul.f32 -1.442695, %v3362_v14 }
 0x421   :  { %v5250_v10 = vpop.eup %5249  ;;  %v4033_v7 = vadd.f32 1.0, %v5248_v49  ;;  %v3366_v30 = vpop.f32.mrb[48].mxu0 }
 0x422   :  { %5259 = vpow2.f32 %v4738_v60  ;;  %v3367_v40 = vadd.f32 %v7900_v1, %v3366_v30  ;;  %v3368_v39 = vpop.f32.mrb[49].mxu0 }
 0x423   :  { %5261 = vrcp.f32 %v4033_v7 }
 0x424   :  { %v5252_v32 = vpop.eup %5251  ;;  %v4739_v27 = vmul.f32 -1.442695, %v3367_v40 }
 0x425   :  { %v5254_v42 = vpop.eup %5253  ;;  %v4034_v13 = vadd.f32 1.0, %v5252_v32  ;;  %v3371_v2 = vpop.f32.mrb[50].mxu0 }
 0x426   :  { %5263 = vpow2.f32 %v4739_v27  ;;  %v3372_v11 = vadd.f32 %v7900_v1, %v3371_v2  ;;  %v3373_v51 = vpop.f32.mrb[51].mxu0 }
 0x427   :  { %5265 = vrcp.f32 %v4034_v13 }
 0x428   :  { %v5256_v53 = vpop.eup %5255  ;;  %v4740_v16 = vmul.f32 -1.442695, %v3372_v11 }
 0x429   :  { %v5258_v38 = vpop.eup %5257  ;;  %v4035_v47 = vadd.f32 1.0, %v5256_v53  ;;  %v3376_v41 = vpop.f32.mrb[52].mxu0 }
 0x42a   :  { %5267 = vpow2.f32 %v4740_v16  ;;  %v3377_v57 = vadd.f32 %v7900_v1, %v3376_v41  ;;  %v3378_v35 = vpop.f32.mrb[53].mxu0 }
 0x42b   :  { %5269 = vrcp.f32 %v4035_v47 }
 0x42c   :  { %v5260_v36 = vpop.eup %5259  ;;  %v4741_v21 = vmul.f32 -1.442695, %v3377_v57 }
 0x42d   :  { %v5262_v18 = vpop.eup %5261  ;;  %v4036_v46 = vadd.f32 1.0, %v5260_v36  ;;  %v3381_v9 = vpop.f32.mrb[54].mxu0 }
 0x42e   :  { %5271 = vpow2.f32 %v4741_v21  ;;  %v3382_v17 = vadd.f32 %v7900_v1, %v3381_v9  ;;  %v3383_v19 = vpop.f32.mrb[55].mxu0 }
 0x42f   :  { %5273 = vrcp.f32 %v4036_v46 }
 0x430   :  { %v5264_v45 = vpop.eup %5263  ;;  %v4742_v58 = vmul.f32 -1.442695, %v3382_v17 }
 0x431   :  { %v5266_v52 = vpop.eup %5265  ;;  %v4037_v29 = vadd.f32 1.0, %v5264_v45  ;;  %v3386_v24 = vpop.f32.mrb[56].mxu0 }
 0x432   :  { %5275 = vpow2.f32 %v4742_v58  ;;  %v3387_v50 = vadd.f32 %v7900_v1, %v3386_v24  ;;  %v3388_v0 = vpop.f32.mrb[57].mxu0 }
 0x433   :  { %5277 = vrcp.f32 %v4037_v29 }
 0x434   :  { %v5268_v44 = vpop.eup %5267  ;;  %v4743_v55 = vmul.f32 -1.442695, %v3387_v50 }
 0x435   :  { %v5270_v48 = vpop.eup %5269  ;;  %v4038_v31 = vadd.f32 1.0, %v5268_v44  ;;  %v3391_v62 = vpop.f32.mrb[58].mxu0 }
 0x436   :  { %5279 = vpow2.f32 %v4743_v55  ;;  %v3392_v3 = vadd.f32 %v7900_v1, %v3391_v62  ;;  %v3393_v15 = vpop.f32.mrb[59].mxu0 }
 0x437   :  { %5281 = vrcp.f32 %v4038_v31 }
 0x438   :  { %v5272_v54 = vpop.eup %5271  ;;  %v4744_v6 = vmul.f32 -1.442695, %v3392_v3 }
 0x439   :  { %v5274_v26 = vpop.eup %5273  ;;  %v4039_v8 = vadd.f32 1.0, %v5272_v54  ;;  %v3396_v43 = vpop.f32.mrb[60].mxu0 }
 0x43a   :  { %5283 = vpow2.f32 %v4744_v6  ;;  %v3397_v12 = vadd.f32 %v7900_v1, %v3396_v43  ;;  %v3398_v59 = vpop.f32.mrb[61].mxu0 }
 0x43b   :  { %5285 = vrcp.f32 %v4039_v8 }
 0x43c   :  { %v5276_v34 = vpop.eup %5275  ;;  %v4745_v61 = vmul.f32 -1.442695, %v3397_v12 }
 0x43d   :  { %v5278_v5 = vpop.eup %5277  ;;  %v4040_v25 = vadd.f32 1.0, %v5276_v34  ;;  %v3401_v22 = vpop.f32.mrb[62].mxu0 }
 0x43e   :  { %5287 = vpow2.f32 %v4745_v61  ;;  %v3402_v23 = vadd.f32 %v7900_v1, %v3401_v22  ;;  %v3403_v33 = vpop.f32.mrb[63].mxu0 }
 0x43f   :  { %5289 = vrcp.f32 %v4040_v25 }
 0x440   :  { %v5280_v56 = vpop.eup %5279  ;;  %v4746_v37 = vmul.f32 -1.442695, %v3402_v23 }
 0x441   :  { %v5282_v63 = vpop.eup %5281  ;;  %v4041_v28 = vadd.f32 1.0, %v5280_v56  ;;  %v3406_v4 = vpop.f32.mrb[64].mxu0 }
 0x442   :  { %5291 = vpow2.f32 %v4746_v37  ;;  %v3407_v14 = vadd.f32 %v7900_v1, %v3406_v4  ;;  %v3408_v20 = vpop.f32.mrb[65].mxu0 }
 0x443   :  { %5293 = vrcp.f32 %v4041_v28 }
 0x444   :  { %v5284_v49 = vpop.eup %5283  ;;  %v4747_v60 = vmul.f32 -1.442695, %v3407_v14 }
 0x445   :  { %v5286_v10 = vpop.eup %5285  ;;  %v4042_v7 = vadd.f32 1.0, %v5284_v49  ;;  %v3411_v30 = vpop.f32.mrb[66].mxu0 }
 0x446   :  { %5295 = vpow2.f32 %v4747_v60  ;;  %v3412_v40 = vadd.f32 %v7900_v1, %v3411_v30  ;;  %v3413_v39 = vpop.f32.mrb[67].mxu0 }
 0x447   :  { %5297 = vrcp.f32 %v4042_v7 }
 0x448   :  { %v5288_v32 = vpop.eup %5287  ;;  %v4748_v27 = vmul.f32 -1.442695, %v3412_v40 }
 0x449   :  { %v5290_v42 = vpop.eup %5289  ;;  %v4043_v13 = vadd.f32 1.0, %v5288_v32  ;;  %v3416_v2 = vpop.f32.mrb[68].mxu0 }
 0x44a   :  { %5299 = vpow2.f32 %v4748_v27  ;;  %v3417_v11 = vadd.f32 %v7900_v1, %v3416_v2  ;;  %v3418_v51 = vpop.f32.mrb[69].mxu0 }
 0x44b   :  { %5301 = vrcp.f32 %v4043_v13 }
 0x44c   :  { %v5292_v53 = vpop.eup %5291  ;;  %v4749_v16 = vmul.f32 -1.442695, %v3417_v11 }
 0x44d   :  { %v5294_v38 = vpop.eup %5293  ;;  %v4044_v47 = vadd.f32 1.0, %v5292_v53  ;;  %v3421_v41 = vpop.f32.mrb[70].mxu0 }
 0x44e   :  { %5303 = vpow2.f32 %v4749_v16  ;;  %v3422_v57 = vadd.f32 %v7900_v1, %v3421_v41  ;;  %v3423_v35 = vpop.f32.mrb[71].mxu0 }
 0x44f   :  { %5305 = vrcp.f32 %v4044_v47 }
 0x450   :  { %v5296_v36 = vpop.eup %5295  ;;  %v4750_v21 = vmul.f32 -1.442695, %v3422_v57 }
 0x451   :  { %v5298_v18 = vpop.eup %5297  ;;  %v4045_v46 = vadd.f32 1.0, %v5296_v36  ;;  %v3426_v9 = vpop.f32.mrb[72].mxu0 }
 0x452   :  { %5307 = vpow2.f32 %v4750_v21  ;;  %v3427_v17 = vadd.f32 %v7900_v1, %v3426_v9  ;;  %v3428_v19 = vpop.f32.mrb[73].mxu0 }
 0x453   :  { %5309 = vrcp.f32 %v4045_v46 }
 0x454   :  { %v5300_v45 = vpop.eup %5299  ;;  %v4751_v58 = vmul.f32 -1.442695, %v3427_v17 }
 0x455   :  { %v5302_v52 = vpop.eup %5301  ;;  %v4046_v29 = vadd.f32 1.0, %v5300_v45  ;;  %v3431_v24 = vpop.f32.mrb[74].mxu0 }
 0x456   :  { %5311 = vpow2.f32 %v4751_v58  ;;  %v3432_v50 = vadd.f32 %v7900_v1, %v3431_v24  ;;  %v3433_v0 = vpop.f32.mrb[75].mxu0 }
 0x457   :  { %5313 = vrcp.f32 %v4046_v29 }
 0x458   :  { %v5304_v44 = vpop.eup %5303  ;;  %v4752_v55 = vmul.f32 -1.442695, %v3432_v50 }
 0x459   :  { %v5306_v48 = vpop.eup %5305  ;;  %v4047_v31 = vadd.f32 1.0, %v5304_v44  ;;  %v3436_v62 = vpop.f32.mrb[76].mxu0 }
 0x45a   :  { %5315 = vpow2.f32 %v4752_v55  ;;  %v3437_v3 = vadd.f32 %v7900_v1, %v3436_v62  ;;  %v3438_v15 = vpop.f32.mrb[77].mxu0 }
 0x45b   :  { %5317 = vrcp.f32 %v4047_v31 }
 0x45c   :  { %v5308_v54 = vpop.eup %5307  ;;  %v4753_v6 = vmul.f32 -1.442695, %v3437_v3 }
 0x45d   :  { %v5310_v26 = vpop.eup %5309  ;;  %v4048_v8 = vadd.f32 1.0, %v5308_v54  ;;  %v3441_v43 = vpop.f32.mrb[78].mxu0 }
 0x45e   :  { %5319 = vpow2.f32 %v4753_v6  ;;  %v3442_v12 = vadd.f32 %v7900_v1, %v3441_v43  ;;  %v3443_v59 = vpop.f32.mrb[79].mxu0 }
 0x45f   :  { %5321 = vrcp.f32 %v4048_v8 }
 0x460   :  { %v5312_v34 = vpop.eup %5311  ;;  %v4754_v61 = vmul.f32 -1.442695, %v3442_v12 }
 0x461   :  { %v5314_v5 = vpop.eup %5313  ;;  %v4049_v25 = vadd.f32 1.0, %v5312_v34  ;;  %v3446_v22 = vpop.f32.mrb[80].mxu0 }
 0x462   :  { %5323 = vpow2.f32 %v4754_v61  ;;  %v3447_v23 = vadd.f32 %v7900_v1, %v3446_v22  ;;  %v3448_v33 = vpop.f32.mrb[81].mxu0 }
 0x463   :  { %5325 = vrcp.f32 %v4049_v25 }
 0x464   :  { %v5316_v56 = vpop.eup %5315  ;;  %v4755_v37 = vmul.f32 -1.442695, %v3447_v23 }
 0x465   :  { %v5318_v63 = vpop.eup %5317  ;;  %v4050_v28 = vadd.f32 1.0, %v5316_v56  ;;  %v3451_v4 = vpop.f32.mrb[82].mxu0 }
 0x466   :  { %5327 = vpow2.f32 %v4755_v37  ;;  %v3452_v14 = vadd.f32 %v7900_v1, %v3451_v4  ;;  %v3453_v20 = vpop.f32.mrb[83].mxu0 }
 0x467   :  { %5329 = vrcp.f32 %v4050_v28 }
 0x468   :  { %v5320_v49 = vpop.eup %5319  ;;  %v4756_v60 = vmul.f32 -1.442695, %v3452_v14 }
 0x469   :  { %v5322_v10 = vpop.eup %5321  ;;  %v4051_v7 = vadd.f32 1.0, %v5320_v49  ;;  %v3456_v30 = vpop.f32.mrb[84].mxu0 }
 0x46a   :  { %5331 = vpow2.f32 %v4756_v60  ;;  %v3457_v40 = vadd.f32 %v7900_v1, %v3456_v30  ;;  %v3458_v39 = vpop.f32.mrb[85].mxu0 }
 0x46b   :  { %5333 = vrcp.f32 %v4051_v7 }
 0x46c   :  { %v5324_v32 = vpop.eup %5323  ;;  %v4757_v27 = vmul.f32 -1.442695, %v3457_v40 }
 0x46d   :  { %v5326_v42 = vpop.eup %5325  ;;  %v4052_v13 = vadd.f32 1.0, %v5324_v32  ;;  %v3461_v2 = vpop.f32.mrb[86].mxu0 }
 0x46e   :  { %5335 = vpow2.f32 %v4757_v27  ;;  %v3462_v11 = vadd.f32 %v7900_v1, %v3461_v2  ;;  %v3463_v51 = vpop.f32.mrb[87].mxu0 }
 0x46f   :  { %5337 = vrcp.f32 %v4052_v13 }
 0x470   :  { %v5328_v53 = vpop.eup %5327  ;;  %v4758_v16 = vmul.f32 -1.442695, %v3462_v11 }
 0x471   :  { %v5330_v38 = vpop.eup %5329  ;;  %v4053_v47 = vadd.f32 1.0, %v5328_v53  ;;  %v3466_v41 = vpop.f32.mrb[88].mxu0 }
 0x472   :  { %5339 = vpow2.f32 %v4758_v16  ;;  %v3467_v57 = vadd.f32 %v7900_v1, %v3466_v41  ;;  %v3468_v35 = vpop.f32.mrb[89].mxu0 }
 0x473   :  { %5341 = vrcp.f32 %v4053_v47 }
 0x474   :  { %v5332_v36 = vpop.eup %5331  ;;  %v4759_v21 = vmul.f32 -1.442695, %v3467_v57 }
 0x475   :  { %v5334_v18 = vpop.eup %5333  ;;  %v4054_v46 = vadd.f32 1.0, %v5332_v36  ;;  %v3471_v9 = vpop.f32.mrb[90].mxu0 }
 0x476   :  { %5343 = vpow2.f32 %v4759_v21  ;;  %v3472_v17 = vadd.f32 %v7900_v1, %v3471_v9  ;;  %v3473_v19 = vpop.f32.mrb[91].mxu0 }
 0x477   :  { %5345 = vrcp.f32 %v4054_v46 }
 0x478   :  { %v5336_v45 = vpop.eup %5335  ;;  %v4760_v58 = vmul.f32 -1.442695, %v3472_v17 }
 0x479   :  { %v5338_v52 = vpop.eup %5337  ;;  %v4055_v29 = vadd.f32 1.0, %v5336_v45  ;;  %v3476_v24 = vpop.f32.mrb[92].mxu0 }
 0x47a   :  { %5347 = vpow2.f32 %v4760_v58  ;;  %v3477_v50 = vadd.f32 %v7900_v1, %v3476_v24  ;;  %v3478_v0 = vpop.f32.mrb[93].mxu0 }
 0x47b   :  { %5349 = vrcp.f32 %v4055_v29 }
 0x47c   :  { %v5340_v44 = vpop.eup %5339  ;;  %v4761_v55 = vmul.f32 -1.442695, %v3477_v50 }
 0x47d   :  { %v5342_v48 = vpop.eup %5341  ;;  %v4056_v31 = vadd.f32 1.0, %v5340_v44  ;;  %v3481_v62 = vpop.f32.mrb[94].mxu0 }
 0x47e   :  { %5351 = vpow2.f32 %v4761_v55  ;;  %v3482_v3 = vadd.f32 %v7900_v1, %v3481_v62  ;;  %v3483_v15 = vpop.f32.mrb[95].mxu0 }
 0x47f   :  { %5353 = vrcp.f32 %v4056_v31 }
 0x480   :  { %v5344_v54 = vpop.eup %5343  ;;  %v4762_v6 = vmul.f32 -1.442695, %v3482_v3 }
 0x481   :  { %v5346_v26 = vpop.eup %5345  ;;  %v4057_v8 = vadd.f32 1.0, %v5344_v54  ;;  %v3486_v43 = vpop.f32.mrb[96].mxu0 }
 0x482   :  { %5355 = vpow2.f32 %v4762_v6  ;;  %v3487_v12 = vadd.f32 %v7900_v1, %v3486_v43  ;;  %v3488_v59 = vpop.f32.mrb[97].mxu0 }
 0x483   :  { %5357 = vrcp.f32 %v4057_v8 }
 0x484   :  { %v5348_v34 = vpop.eup %5347  ;;  %v4763_v61 = vmul.f32 -1.442695, %v3487_v12 }
 0x485   :  { %v5350_v5 = vpop.eup %5349  ;;  %v4058_v25 = vadd.f32 1.0, %v5348_v34  ;;  %v3491_v22 = vpop.f32.mrb[98].mxu0 }
 0x486   :  { %5359 = vpow2.f32 %v4763_v61  ;;  %v3492_v23 = vadd.f32 %v7900_v1, %v3491_v22  ;;  %v3493_v33 = vpop.f32.mrb[99].mxu0 }
 0x487   :  { %5361 = vrcp.f32 %v4058_v25 }
 0x488   :  { %v5352_v56 = vpop.eup %5351  ;;  %v4764_v37 = vmul.f32 -1.442695, %v3492_v23 }
 0x489   :  { %v5354_v63 = vpop.eup %5353  ;;  %v4059_v28 = vadd.f32 1.0, %v5352_v56  ;;  %v3496_v4 = vpop.f32.mrb[100].mxu0 }
 0x48a   :  { %5363 = vpow2.f32 %v4764_v37  ;;  %v3497_v14 = vadd.f32 %v7900_v1, %v3496_v4  ;;  %v3498_v20 = vpop.f32.mrb[101].mxu0 }
 0x48b   :  { %5365 = vrcp.f32 %v4059_v28 }
 0x48c   :  { %v5356_v49 = vpop.eup %5355  ;;  %v4765_v60 = vmul.f32 -1.442695, %v3497_v14 }
 0x48d   :  { %v5358_v10 = vpop.eup %5357  ;;  %v4060_v7 = vadd.f32 1.0, %v5356_v49  ;;  %v3501_v30 = vpop.f32.mrb[102].mxu0 }
 0x48e   :  { %5367 = vpow2.f32 %v4765_v60  ;;  %v3502_v40 = vadd.f32 %v7900_v1, %v3501_v30  ;;  %v3503_v39 = vpop.f32.mrb[103].mxu0 }
 0x48f   :  { %5369 = vrcp.f32 %v4060_v7 }
 0x490   :  { %v5360_v32 = vpop.eup %5359  ;;  %v4766_v27 = vmul.f32 -1.442695, %v3502_v40 }
 0x491   :  { %v5362_v42 = vpop.eup %5361  ;;  %v4061_v13 = vadd.f32 1.0, %v5360_v32  ;;  %v3506_v2 = vpop.f32.mrb[104].mxu0 }
 0x492   :  { %5371 = vpow2.f32 %v4766_v27  ;;  %v3507_v11 = vadd.f32 %v7900_v1, %v3506_v2  ;;  %v3508_v51 = vpop.f32.mrb[105].mxu0 }
 0x493   :  { %5373 = vrcp.f32 %v4061_v13 }
 0x494   :  { %v5364_v53 = vpop.eup %5363  ;;  %v4767_v16 = vmul.f32 -1.442695, %v3507_v11 }
 0x495   :  { %v5366_v38 = vpop.eup %5365  ;;  %v4062_v47 = vadd.f32 1.0, %v5364_v53  ;;  %v3511_v41 = vpop.f32.mrb[106].mxu0 }
 0x496   :  { %5375 = vpow2.f32 %v4767_v16  ;;  %v3512_v57 = vadd.f32 %v7900_v1, %v3511_v41  ;;  %v3513_v35 = vpop.f32.mrb[107].mxu0 }
 0x497   :  { %5377 = vrcp.f32 %v4062_v47 }
 0x498   :  { %v5368_v36 = vpop.eup %5367  ;;  %v4768_v21 = vmul.f32 -1.442695, %v3512_v57 }
 0x499   :  { %v5370_v18 = vpop.eup %5369  ;;  %v4063_v46 = vadd.f32 1.0, %v5368_v36  ;;  %v3516_v9 = vpop.f32.mrb[108].mxu0 }
 0x49a   :  { %5379 = vpow2.f32 %v4768_v21  ;;  %v3517_v17 = vadd.f32 %v7900_v1, %v3516_v9  ;;  %v3518_v19 = vpop.f32.mrb[109].mxu0 }
 0x49b   :  { %5381 = vrcp.f32 %v4063_v46 }
 0x49c   :  { %v5372_v45 = vpop.eup %5371  ;;  %v4769_v58 = vmul.f32 -1.442695, %v3517_v17 }
 0x49d   :  { %v5374_v52 = vpop.eup %5373  ;;  %v4064_v29 = vadd.f32 1.0, %v5372_v45  ;;  %v3521_v24 = vpop.f32.mrb[110].mxu0 }
 0x49e   :  { %5383 = vpow2.f32 %v4769_v58  ;;  %v3522_v50 = vadd.f32 %v7900_v1, %v3521_v24  ;;  %v3523_v0 = vpop.f32.mrb[111].mxu0 }
 0x49f   :  { %5385 = vrcp.f32 %v4064_v29 }
 0x4a0   :  { %v5376_v44 = vpop.eup %5375  ;;  %v4770_v55 = vmul.f32 -1.442695, %v3522_v50 }
 0x4a1   :  { %v5378_v48 = vpop.eup %5377  ;;  %v4065_v31 = vadd.f32 1.0, %v5376_v44  ;;  %v3526_v62 = vpop.f32.mrb[112].mxu0 }
 0x4a2   :  { %5387 = vpow2.f32 %v4770_v55  ;;  %v3527_v3 = vadd.f32 %v7900_v1, %v3526_v62  ;;  %v3528_v15 = vpop.f32.mrb[113].mxu0 }
 0x4a3   :  { %5389 = vrcp.f32 %v4065_v31 }
 0x4a4   :  { %v5380_v54 = vpop.eup %5379  ;;  %v4771_v6 = vmul.f32 -1.442695, %v3527_v3 }
 0x4a5   :  { %v5382_v26 = vpop.eup %5381  ;;  %v4066_v8 = vadd.f32 1.0, %v5380_v54  ;;  %v3531_v43 = vpop.f32.mrb[114].mxu0 }
 0x4a6   :  { %5391 = vpow2.f32 %v4771_v6  ;;  %v3532_v12 = vadd.f32 %v7900_v1, %v3531_v43  ;;  %v3533_v59 = vpop.f32.mrb[115].mxu0 }
 0x4a7   :  { %5393 = vrcp.f32 %v4066_v8 }
 0x4a8   :  { %v5384_v34 = vpop.eup %5383  ;;  %v4772_v61 = vmul.f32 -1.442695, %v3532_v12 }
 0x4a9   :  { %v5386_v5 = vpop.eup %5385  ;;  %v4067_v25 = vadd.f32 1.0, %v5384_v34  ;;  %v3536_v22 = vpop.f32.mrb[116].mxu0 }
 0x4aa   :  { %5395 = vpow2.f32 %v4772_v61  ;;  %v3537_v23 = vadd.f32 %v7900_v1, %v3536_v22  ;;  %v3538_v33 = vpop.f32.mrb[117].mxu0 }
 0x4ab   :  { %5397 = vrcp.f32 %v4067_v25 }
 0x4ac   :  { %v5388_v56 = vpop.eup %5387  ;;  %v4773_v37 = vmul.f32 -1.442695, %v3537_v23 }
 0x4ad   :  { %v5390_v63 = vpop.eup %5389  ;;  %v4068_v28 = vadd.f32 1.0, %v5388_v56  ;;  %v3541_v4 = vpop.f32.mrb[118].mxu0 }
 0x4ae   :  { %5399 = vpow2.f32 %v4773_v37  ;;  %v3542_v14 = vadd.f32 %v7900_v1, %v3541_v4  ;;  %v3543_v20 = vpop.f32.mrb[119].mxu0 }
 0x4af   :  { %5401 = vrcp.f32 %v4068_v28 }
 0x4b0   :  { %v5392_v49 = vpop.eup %5391  ;;  %v4774_v60 = vmul.f32 -1.442695, %v3542_v14 }
 0x4b1   :  { %v5394_v10 = vpop.eup %5393  ;;  %v4069_v7 = vadd.f32 1.0, %v5392_v49  ;;  %v3546_v30 = vpop.f32.mrb[120].mxu0 }
 0x4b2   :  { %5403 = vpow2.f32 %v4774_v60  ;;  %v3547_v40 = vadd.f32 %v7900_v1, %v3546_v30  ;;  %v3548_v39 = vpop.f32.mrb[121].mxu0 }
 0x4b3   :  { %5405 = vrcp.f32 %v4069_v7 }
 0x4b4   :  { %v5396_v32 = vpop.eup %5395  ;;  %v4775_v27 = vmul.f32 -1.442695, %v3547_v40 }
 0x4b5   :  { %v5398_v42 = vpop.eup %5397  ;;  %v4070_v13 = vadd.f32 1.0, %v5396_v32  ;;  %v3551_v2 = vpop.f32.mrb[122].mxu0 }
 0x4b6   :  { %5407 = vpow2.f32 %v4775_v27  ;;  %v3552_v11 = vadd.f32 %v7900_v1, %v3551_v2  ;;  %v3553_v51 = vpop.f32.mrb[123].mxu0 }
 0x4b7   :  { %5409 = vrcp.f32 %v4070_v13 }
 0x4b8   :  { %v5400_v53 = vpop.eup %5399  ;;  %v4776_v16 = vmul.f32 -1.442695, %v3552_v11 }
 0x4b9   :  { %v5402_v38 = vpop.eup %5401  ;;  %v4071_v47 = vadd.f32 1.0, %v5400_v53  ;;  %v3556_v41 = vpop.f32.mrb[124].mxu0 }
 0x4ba   :  { %5411 = vpow2.f32 %v4776_v16  ;;  %v3557_v57 = vadd.f32 %v7900_v1, %v3556_v41  ;;  %v3558_v35 = vpop.f32.mrb[125].mxu0 }
 0x4bb   :  { %5413 = vrcp.f32 %v4071_v47 }
 0x4bc   :  { %v5404_v36 = vpop.eup %5403  ;;  %v4777_v21 = vmul.f32 -1.442695, %v3557_v57 }
 0x4bd   :  { %v5406_v18 = vpop.eup %5405  ;;  %v4072_v46 = vadd.f32 1.0, %v5404_v36  ;;  %v3561_v9 = vpop.f32.mrb[126].mxu0 }
 0x4be   :  { %5415 = vpow2.f32 %v4777_v21  ;;  %v3562_v17 = vadd.f32 %v7900_v1, %v3561_v9  ;;  %v3563_v19 = vpop.f32.mrb[127].mxu0 }
 0x4bf   :  { %5417 = vrcp.f32 %v4072_v46 }
 0x4c0   :  { %v5408_v45 = vpop.eup %5407  ;;  %v4778_v58 = vmul.f32 -1.442695, %v3562_v17 }
 0x4c1   :  { %v5410_v52 = vpop.eup %5409  ;;  %v4073_v29 = vadd.f32 1.0, %v5408_v45 }
 0x4c2   :  { %5419 = vpow2.f32 %v4778_v58 }
 0x4c3   :  { %5421 = vrcp.f32 %v4073_v29 }
 0x4c4   :  { %v5412_v24 = vpop.eup %5411 }
 0x4c5   :  { %v5414_v50 = vpop.eup %5413  ;;  %v4074_v0 = vadd.f32 1.0, %v5412_v24 }
 0x4c7   :  { %5423 = vrcp.f32 %v4074_v0 }
 0x4c8   :  { %v5416_v44 = vpop.eup %5415 }
 0x4c9   :  { %v5418_v55 = vpop.eup %5417  ;;  %v4075_v48 = vadd.f32 1.0, %v5416_v44 }
 0x4cb   :  { %5425 = vrcp.f32 %v4075_v48 }
 0x4cc   :  { %v5420_v31 = vpop.eup %5419 }
 0x4cd   :  { %v5422_v62 = vpop.eup %5421  ;;  %v4076_v3 = vadd.f32 1.0, %v5420_v31 }
 0x4cf   :  { %5427 = vrcp.f32 %v4076_v3 }
 0x4d1   :  { %v5424_v1 = vpop.eup %5423 }
 0x4d5   :  { %v5426_v15 = vpop.eup %5425 }
 0x4d9   :  { %v5428_v54 = vpop.eup %5427 }

</bundles_post_ra>
